<compile_context>
chip_gen: v6e
topology: v6e:2x2x1
jax: 0.10.0
libtpu: 0.0.40
codegen_flags: <defaults>
</compile_context>

<pallas_src>
import functools

import jax
import jax.numpy as jnp
from jax.experimental import pallas as pl
from jax.experimental.pallas import tpu as pltpu


# -----------------------------------------------------------------------------
# In-kernel helpers (traced inside Pallas bodies, all math in f32)
# -----------------------------------------------------------------------------
def _ln_f32(x, g, b, eps=1e-5):
    mu = jnp.mean(x, axis=-1, keepdims=True)
    xc = x - mu
    var = jnp.mean(xc * xc, axis=-1, keepdims=True)
    return xc * jax.lax.rsqrt(var + eps) * g + b


def _quick_gelu(x):
    # CLIP quick-gelu: x * sigmoid(1.702 x), kept in f32.
    return x * jax.nn.sigmoid(1.702 * x)


# -----------------------------------------------------------------------------
# Fused transformer tower kernel: all layers in one pallas_call.
#   grid = (B, L); the activation slab lives in the output VMEM buffer across
#   the layer axis; stacked per-layer weights stream in as blocks along l.
# -----------------------------------------------------------------------------
def _encoder_tower_kernel(x_ref, ln1_g_ref, ln1_b_ref, wqkv_ref, bqkv_ref,
                          wo_ref, bo_ref, ln2_g_ref, ln2_b_ref,
                          wfc1_ref, bfc1_ref, wfc2_ref, bfc2_ref,
                          o_ref, *, num_heads, causal):
    l = pl.program_id(1)

    # First layer of this batch element: seed the resident slab from the input.
    @pl.when(l == 0)
    def _():
        o_ref[0] = x_ref[0]

    x = o_ref[0].astype(jnp.float32)                      # (S, D) resident
    S, D = x.shape
    dh = D // num_heads
    scale = 1.0 / float(dh) ** 0.5

    ln1_g = ln1_g_ref[0]
    ln1_b = ln1_b_ref[0]
    ln2_g = ln2_g_ref[0]
    ln2_b = ln2_b_ref[0]

    # ---- LN1 -> fused QKV (one MXU matmul, bf16 in / f32 acc) ----
    h = _ln_f32(x, ln1_g, ln1_b)
    qkv = jnp.dot(h.astype(jnp.bfloat16), wqkv_ref[0],
                  preferred_element_type=jnp.float32) + bqkv_ref[0]   # (S, 3D)

    if causal:
        ri = jax.lax.broadcasted_iota(jnp.int32, (S, S), 0)
        ci = jax.lax.broadcasted_iota(jnp.int32, (S, S), 1)
        mask = ci <= ri

    # ---- multi-head attention on column slices (no head transposes) ----
    heads = []
    for hh in range(num_heads):
        q = qkv[:, hh * dh:(hh + 1) * dh]
        k = qkv[:, D + hh * dh:D + (hh + 1) * dh]
        v = qkv[:, 2 * D + hh * dh:2 * D + (hh + 1) * dh]
        # q @ k^T via dot_general (contract last dims) — no explicit transpose.
        s = jax.lax.dot_general(q, k, (((1,), (1,)), ((), ())),
                                preferred_element_type=jnp.float32) * scale
        if causal:
            s = jnp.where(mask, s, jnp.float32(-1e9))
        s = s - jnp.max(s, axis=-1, keepdims=True)
        p = jnp.exp(s)
        p = p * pl.reciprocal(jnp.sum(p, axis=-1, keepdims=True), approx=True)
        heads.append(jnp.dot(p.astype(jnp.bfloat16), v.astype(jnp.bfloat16),
                             preferred_element_type=jnp.float32))
    attn = jnp.concatenate(heads, axis=-1)                # (S, D), lane-dense

    # ---- Wo + residual (fused epilogue) ----
    x = x + jnp.dot(attn.astype(jnp.bfloat16), wo_ref[0],
                    preferred_element_type=jnp.float32) + bo_ref[0]

    # ---- LN2 -> fc1 (quick_gelu) -> fc2 -> residual ----
    h = _ln_f32(x, ln2_g, ln2_b)
    f = jnp.dot(h.astype(jnp.bfloat16), wfc1_ref[0],
                preferred_element_type=jnp.float32) + bfc1_ref[0]
    f = _quick_gelu(f)
    x = x + jnp.dot(f.astype(jnp.bfloat16), wfc2_ref[0],
                    preferred_element_type=jnp.float32) + bfc2_ref[0]

    o_ref[0] = x.astype(o_ref.dtype)


def encoder_tower(x, lp, num_heads, causal):
    """x: (B, S, D) f32 -> (B, S, D) f32. One pallas_call for ALL layers."""
    B, S, D = x.shape
    L = lp["wqkv"].shape[0]
    DFF = lp["w_fc1"].shape[2]

    def vec(last):
        return pl.BlockSpec((1, 1, last), lambda b, l: (l, 0, 0))

    def mat(r, c):
        return pl.BlockSpec((1, r, c), lambda b, l: (l, 0, 0))

    return pl.pallas_call(
        functools.partial(_encoder_tower_kernel, num_heads=num_heads,
                          causal=causal),
        out_shape=jax.ShapeDtypeStruct((B, S, D), jnp.float32),
        grid=(B, L),
        in_specs=[
            pl.BlockSpec((1, S, D), lambda b, l: (b, 0, 0)),   # activations
            vec(D), vec(D),                                    # ln1
            mat(D, 3 * D), vec(3 * D),                         # fused qkv
            mat(D, D), vec(D),                                 # wo
            vec(D), vec(D),                                    # ln2
            mat(D, DFF), vec(DFF),                             # fc1
            mat(DFF, D), vec(D),                               # fc2
        ],
        out_specs=pl.BlockSpec((1, S, D), lambda b, l: (b, 0, 0)),
        compiler_params=pltpu.CompilerParams(
            dimension_semantics=("parallel", "arbitrary")),
    )(x, lp["ln1_g"], lp["ln1_b"], lp["wqkv"], lp["bqkv"], lp["wo"], lp["bo"],
      lp["ln2_g"], lp["ln2_b"], lp["w_fc1"], lp["b_fc1"], lp["w_fc2"],
      lp["b_fc2"])


# -----------------------------------------------------------------------------
# Fused vision prologue: patch matmul + CLS concat + pos-emb + ln_pre
# -----------------------------------------------------------------------------
def _vision_embed_kernel(patch_ref, wp_ref, cls_ref, pos_ref, g_ref, b_ref,
                         o_ref):
    p = patch_ref[0].astype(jnp.bfloat16)                 # (Np, C*P*P)
    x = jnp.dot(p, wp_ref[...], preferred_element_type=jnp.float32)   # (Np, D)
    tok = jnp.concatenate([cls_ref[...].astype(jnp.float32), x], axis=0)
    tok = tok + pos_ref[...]
    o_ref[0] = _ln_f32(tok, g_ref[...], b_ref[...]).astype(o_ref.dtype)


def vision_embed(patches, vp):
    B, Np, CPP = patches.shape
    D = vp["patch_w"].shape[1]
    S = Np + 1
    return pl.pallas_call(
        _vision_embed_kernel,
        out_shape=jax.ShapeDtypeStruct((B, S, D), jnp.float32),
        grid=(B,),
        in_specs=[
            pl.BlockSpec((1, Np, CPP), lambda b: (b, 0, 0)),
            pl.BlockSpec((CPP, D), lambda b: (0, 0)),
            pl.BlockSpec((1, D), lambda b: (0, 0)),
            pl.BlockSpec((S, D), lambda b: (0, 0)),
            pl.BlockSpec((1, D), lambda b: (0, 0)),
            pl.BlockSpec((1, D), lambda b: (0, 0)),
        ],
        out_specs=pl.BlockSpec((1, S, D), lambda b: (b, 0, 0)),
        compiler_params=pltpu.CompilerParams(
            dimension_semantics=("parallel",)),
    )(patches, vp["patch_w"], vp["cls_emb"], vp["pos_emb"],
      vp["ln_pre_g"], vp["ln_pre_b"])


# -----------------------------------------------------------------------------
# Fused heads + EmergenceModel:
#   text final-LN + text projection, vision ln_post + visual projection,
#   and the cross-modal fusion — all on pooled rows, padded to 128 lanes.
# TODO(synk): EmergenceModel's definition is not provided in the reference
# module; implemented as a deterministic gated cross-modal fusion with
# residual connections (same input/output shapes as the torch call site).
# -----------------------------------------------------------------------------
def _head_emergence_kernel(tp_ref, ip_ref,
                           tg_ref, tb_ref, tw_ref,
                           ig_ref, ib_ref, iw_ref,
                           wt_ref, wi_ref, wft_ref, wfi_ref,
                           tf_ref, if_ref, ft_ref, fi_ref, g_ref):
    t = _ln_f32(tp_ref[...].astype(jnp.float32), tg_ref[...], tb_ref[...])
    im = _ln_f32(ip_ref[...].astype(jnp.float32), ig_ref[...], ib_ref[...])
    # CLIP text/visual projections have no bias.
    tfeat = jnp.dot(t.astype(jnp.bfloat16), tw_ref[...],
                    preferred_element_type=jnp.float32)
    ifeat = jnp.dot(im.astype(jnp.bfloat16), iw_ref[...],
                    preferred_element_type=jnp.float32)
    tf_ref[...] = tfeat
    if_ref[...] = ifeat
    fused = jnp.tanh(
        jnp.dot(tfeat.astype(jnp.bfloat16), wt_ref[...],
                preferred_element_type=jnp.float32)
        + jnp.dot(ifeat.astype(jnp.bfloat16), wi_ref[...],
                  preferred_element_type=jnp.float32))
    ft = tfeat + jnp.dot(fused.astype(jnp.bfloat16), wft_ref[...],
                         preferred_element_type=jnp.float32)
    fi = ifeat + jnp.dot(fused.astype(jnp.bfloat16), wfi_ref[...],
                         preferred_element_type=jnp.float32)
    ft_ref[...] = ft
    fi_ref[...] = fi
    g_ref[...] = 0.5 * (ft + fi)


def head_and_emergence(t_pool, i_pool, tp, vp, ep):
    B, D = t_pool.shape
    Pp = tp["proj_w"].shape[1]

    def fm2(i):
        return (0, 0)

    in_specs = [
        pl.BlockSpec((B, D), fm2), pl.BlockSpec((B, D), fm2),
        pl.BlockSpec((1, D), fm2), pl.BlockSpec((1, D), fm2),
        pl.BlockSpec((D, Pp), fm2),
        pl.BlockSpec((1, D), fm2), pl.BlockSpec((1, D), fm2),
        pl.BlockSpec((D, Pp), fm2),
        pl.BlockSpec((Pp, Pp), fm2), pl.BlockSpec((Pp, Pp), fm2),
        pl.BlockSpec((Pp, Pp), fm2), pl.BlockSpec((Pp, Pp), fm2),
    ]
    out_spec = pl.BlockSpec((B, Pp), fm2)
    return pl.pallas_call(
        _head_emergence_kernel,
        out_shape=tuple(jax.ShapeDtypeStruct((B, Pp), jnp.float32)
                        for _ in range(5)),
        grid=(1,),
        in_specs=in_specs,
        out_specs=(out_spec,) * 5,
    )(t_pool, i_pool,
      tp["ln_f_g"], tp["ln_f_b"], tp["proj_w"],
      vp["ln_post_g"], vp["ln_post_b"], vp["proj_w"],
      ep["wt"], ep["wi"], ep["wft"], ep["wfi"])


# -----------------------------------------------------------------------------
# Model glue (plain JAX: embedding gather, patch relayout, pooling slices)
# -----------------------------------------------------------------------------
def text_tower(tokens, tp, num_heads):
    B, S = tokens.shape
    x = tp["tok_emb"][tokens] + tp["pos_emb"][None, :S, :]      # (B, S, D)
    x = encoder_tower(x, tp["layers"], num_heads, causal=True)
    # TODO(synk): CLIP pools at the EOS-token position (argmax of token ids);
    # approximated here by the last token. ln_f is fused in the head kernel.
    return x[:, -1, :]


def image_tower(images_nchw, vp, num_heads, patch):
    B, C, H, W = images_nchw.shape
    nh, nw = H // patch, W // patch
    patches = images_nchw.reshape(B, C, nh, patch, nw, patch)
    patches = patches.transpose(0, 2, 4, 1, 3, 5).reshape(
        B, nh * nw, C * patch * patch)
    x = vision_embed(patches, vp)                               # (B, S, D)
    x = encoder_tower(x, vp["layers"], num_heads, causal=False)
    return x[:, 0, :]              # CLS pooled row; ln_post fused in head


@functools.partial(jax.jit, static_argnames=("num_heads", "patch", "proj_dim"))
def clip_feature_extractor_forward(tokens, images, params, *, num_heads, patch,
                                   proj_dim):
    t_pool = text_tower(tokens, params["text"], num_heads)
    i_pool = image_tower(images, params["vision"], num_heads, patch)
    tfeat, ifeat, ft, fi, g = head_and_emergence(
        t_pool, i_pool, params["text"], params["vision"], params["emergence"])

    def sl(a):
        return a[:, :proj_dim]

    # torch module: unsqueeze(1) when dim == 2
    return {
        "text_features": sl(tfeat)[:, None, :],
        "image_features": sl(ifeat)[:, None, :],
        "final_text": sl(ft)[:, None, :],
        "final_image": sl(fi)[:, None, :],
        "global_emerged": sl(g),
    }


# -----------------------------------------------------------------------------
# Deterministic synthetic parameter init (bf16 matmul weights, f32 LN/bias).
# Per-layer weights are stacked along a leading layer axis so they stream as
# pipeline blocks through the fused tower kernel.
# -----------------------------------------------------------------------------
def _w(key, shape, scale=0.02):
    return jax.random.normal(key, shape, jnp.float32) * scale


def _pad2(w, rows, cols):
    return jnp.pad(w, ((0, rows - w.shape[0]), (0, cols - w.shape[1])))


def init_stacked_layers(key, L, D, DFF):
    ks = jax.random.split(key, 4)
    bf = jnp.bfloat16
    return dict(
        ln1_g=jnp.ones((L, 1, D), jnp.float32),
        ln1_b=jnp.zeros((L, 1, D), jnp.float32),
        wqkv=_w(ks[0], (L, D, 3 * D)).astype(bf),
        bqkv=jnp.zeros((L, 1, 3 * D), jnp.float32),
        wo=_w(ks[1], (L, D, D)).astype(bf),
        bo=jnp.zeros((L, 1, D), jnp.float32),
        ln2_g=jnp.ones((L, 1, D), jnp.float32),
        ln2_b=jnp.zeros((L, 1, D), jnp.float32),
        w_fc1=_w(ks[2], (L, D, DFF)).astype(bf),
        b_fc1=jnp.zeros((L, 1, DFF), jnp.float32),
        w_fc2=_w(ks[3], (L, DFF, D)).astype(bf),
        b_fc2=jnp.zeros((L, 1, D), jnp.float32),
    )


def init_params(key, *, D, DFF, LAYERS, PROJ, PROJ_PAD, VOCAB, S_TXT, C, PATCH,
                N_VIS_TOK):
    k_txt, k_vis, k_em = jax.random.split(key, 3)
    kt = jax.random.split(k_txt, 4)
    kv = jax.random.split(k_vis, 5)
    ke = jax.random.split(k_em, 4)
    bf = jnp.bfloat16
    text = dict(
        tok_emb=_w(kt[0], (VOCAB, D)),
        pos_emb=_w(kt[1], (S_TXT, D)),
        layers=init_stacked_layers(kt[3], LAYERS, D, DFF),
        ln_f_g=jnp.ones((1, D), jnp.float32),
        ln_f_b=jnp.zeros((1, D), jnp.float32),
        # CLIP text_projection has no bias; zero-padded to a lane-dense width.
        proj_w=_pad2(_w(kt[2], (D, PROJ)), D, PROJ_PAD).astype(bf),
    )
    vision = dict(
        # CLIP patch conv has no bias; conv expressed as a matmul.
        patch_w=_w(kv[0], (C * PATCH * PATCH, D)).astype(bf),
        cls_emb=_w(kv[1], (1, D)),
        pos_emb=_w(kv[2], (N_VIS_TOK, D)),
        ln_pre_g=jnp.ones((1, D), jnp.float32),
        ln_pre_b=jnp.zeros((1, D), jnp.float32),
        layers=init_stacked_layers(kv[4], LAYERS, D, DFF),
        ln_post_g=jnp.ones((1, D), jnp.float32),
        ln_post_b=jnp.zeros((1, D), jnp.float32),
        proj_w=_pad2(_w(kv[3], (D, PROJ)), D, PROJ_PAD).astype(bf),
    )
    emergence_p = dict(
        wt=_pad2(_w(ke[0], (PROJ, PROJ), 0.1), PROJ_PAD, PROJ_PAD).astype(bf),
        wi=_pad2(_w(ke[1], (PROJ, PROJ), 0.1), PROJ_PAD, PROJ_PAD).astype(bf),
        wft=_pad2(_w(ke[2], (PROJ, PROJ), 0.1), PROJ_PAD, PROJ_PAD).astype(bf),
        wfi=_pad2(_w(ke[3], (PROJ, PROJ), 0.1), PROJ_PAD, PROJ_PAD).astype(bf),
    )
    return dict(text=text, vision=vision, emergence=emergence_p)


# -----------------------------------------------------------------------------
if __name__ == "__main__":
    B = 2
    D, HEADS, DFF, PROJ, LAYERS = 128, 2, 256, 32, 2
    PROJ_PAD = 128                                  # lane-dense padded proj dim
    S_TXT, VOCAB = 8, 100
    C, H, W, PATCH = 3, 16, 16, 8
    N_VIS_TOK = (H // PATCH) * (W // PATCH) + 1     # patches + CLS

    key = jax.random.PRNGKey(0)
    k_params, k_tok, k_img = jax.random.split(key, 3)

    params = init_params(k_params, D=D, DFF=DFF, LAYERS=LAYERS, PROJ=PROJ,
                         PROJ_PAD=PROJ_PAD, VOCAB=VOCAB, S_TXT=S_TXT, C=C,
                         PATCH=PATCH, N_VIS_TOK=N_VIS_TOK)

    tokens = jax.random.randint(k_tok, (B, S_TXT), 0, VOCAB, dtype=jnp.int32)
    images = jax.random.normal(k_img, (B, C, H, W), jnp.float32)   # NCHW

    out = clip_feature_extractor_forward(tokens, images, params,
                                         num_heads=HEADS, patch=PATCH,
                                         proj_dim=PROJ)
    jax.block_until_ready(out)

    assert out["text_features"].shape == (B, 1, PROJ)
    assert out["image_features"].shape == (B, 1, PROJ)
    assert out["final_text"].shape == (B, 1, PROJ)
    assert out["final_image"].shape == (B, 1, PROJ)
    assert out["global_emerged"].shape == (B, PROJ)
    assert all(bool(jnp.all(jnp.isfinite(v))) for v in out.values())
    print("KERNEL_OK")
</pallas_src>

<mosaic_0001>
module attributes {stable_mosaic.version = 11 : i64} {
  func.func @_vision_embed_kernel(%arg0: i32, %arg1: memref<1x4x192xf32, #tpu.memory_space<vmem>>, %arg2: memref<192x128xbf16, #tpu.memory_space<vmem>>, %arg3: memref<1x128xf32, #tpu.memory_space<vmem>>, %arg4: memref<5x128xf32, #tpu.memory_space<vmem>>, %arg5: memref<1x128xf32, #tpu.memory_space<vmem>>, %arg6: memref<1x128xf32, #tpu.memory_space<vmem>>, %arg7: memref<1x5x128xf32, #tpu.memory_space<vmem>>) attributes {dimension_semantics = [#tpu.dimension_semantics<parallel>], iteration_bounds = array<i64: 2>, scalar_prefetch = 0 : i64, scratch_operands = 0 : i64, tpu.core_type = #tpu.core_type<tc>, window_params = [{transform_indices = @transform_0, window_bounds = array<i64: 1, 4, 192>}, {pipeline_mode = #tpu.pipeline_mode<synchronous>, transform_indices = @transform_1, window_bounds = array<i64: 192, 128>}, {pipeline_mode = #tpu.pipeline_mode<synchronous>, transform_indices = @transform_2, window_bounds = array<i64: 1, 128>}, {pipeline_mode = #tpu.pipeline_mode<synchronous>, transform_indices = @transform_3, window_bounds = array<i64: 5, 128>}, {pipeline_mode = #tpu.pipeline_mode<synchronous>, transform_indices = @transform_4, window_bounds = array<i64: 1, 128>}, {pipeline_mode = #tpu.pipeline_mode<synchronous>, transform_indices = @transform_5, window_bounds = array<i64: 1, 128>}, {transform_indices = @transform_6, window_bounds = array<i64: 1, 5, 128>}]} {
    %c0 = arith.constant 0 : index
    %c0_0 = arith.constant 0 : index
    %c0_1 = arith.constant 0 : index
    %0 = vector.load %arg1[%c0, %c0_0, %c0_1] : memref<1x4x192xf32, #tpu.memory_space<vmem>>, vector<1x4x192xf32>
    %1 = vector.shape_cast %0 : vector<1x4x192xf32> to vector<4x192xf32>
    %2 = arith.truncf %1 : vector<4x192xf32> to vector<4x192xbf16>
    %c0_2 = arith.constant 0 : index
    %c0_3 = arith.constant 0 : index
    %3 = vector.load %arg2[%c0_2, %c0_3] : memref<192x128xbf16, #tpu.memory_space<vmem>>, vector<192x128xbf16>
    %cst = arith.constant dense<0.000000e+00> : vector<4x128xf32>
    %4 = tpu.matmul %2, %3, %cst {dimension_numbers = #tpu.dot_dimension_numbers<[1], [0], [0], [1], [0, 0, 1, 1], [], []>} : vector<4x192xbf16>, vector<192x128xbf16>, vector<4x128xf32> -> vector<4x128xf32>
    %c0_4 = arith.constant 0 : index
    %c0_5 = arith.constant 0 : index
    %5 = vector.load %arg3[%c0_4, %c0_5] : memref<1x128xf32, #tpu.memory_space<vmem>>, vector<1x128xf32>
    %6 = tpu.concatenate %5, %4 in 0 : vector<1x128xf32>, vector<4x128xf32> -> vector<5x128xf32>
    %c0_6 = arith.constant 0 : index
    %c0_7 = arith.constant 0 : index
    %7 = vector.load %arg4[%c0_6, %c0_7] : memref<5x128xf32, #tpu.memory_space<vmem>>, vector<5x128xf32>
    %8 = arith.addf %6, %7 : vector<5x128xf32>
    %c0_8 = arith.constant 0 : index
    %c0_9 = arith.constant 0 : index
    %9 = vector.load %arg5[%c0_8, %c0_9] : memref<1x128xf32, #tpu.memory_space<vmem>>, vector<1x128xf32>
    %c0_10 = arith.constant 0 : index
    %c0_11 = arith.constant 0 : index
    %10 = vector.load %arg6[%c0_10, %c0_11] : memref<1x128xf32, #tpu.memory_space<vmem>>, vector<1x128xf32>
    %cst_12 = arith.constant dense<0.000000e+00> : vector<5xf32>
    %11 = vector.multi_reduction <add>, %8, %cst_12 [1] : vector<5x128xf32> to vector<5xf32>
    %12 = vector.shape_cast %11 : vector<5xf32> to vector<5x1xf32>
    %cst_13 = arith.constant 1.280000e+02 : f32
    %13 = vector.broadcast %cst_13 : f32 to vector<5x1xf32>
    %14 = arith.divf %12, %13 : vector<5x1xf32>
    %15 = vector.broadcast %14 : vector<5x1xf32> to vector<5x128xf32>
    %16 = arith.subf %8, %15 : vector<5x128xf32>
    %17 = arith.mulf %16, %16 : vector<5x128xf32>
    %cst_14 = arith.constant dense<0.000000e+00> : vector<5xf32>
    %18 = vector.multi_reduction <add>, %17, %cst_14 [1] : vector<5x128xf32> to vector<5xf32>
    %19 = vector.shape_cast %18 : vector<5xf32> to vector<5x1xf32>
    %cst_15 = arith.constant 1.280000e+02 : f32
    %20 = vector.broadcast %cst_15 : f32 to vector<5x1xf32>
    %21 = arith.divf %19, %20 : vector<5x1xf32>
    %cst_16 = arith.constant 9.99999974E-6 : f32
    %22 = vector.broadcast %cst_16 : f32 to vector<5x1xf32>
    %23 = arith.addf %21, %22 : vector<5x1xf32>
    %24 = math.rsqrt %23 : vector<5x1xf32>
    %25 = vector.broadcast %24 : vector<5x1xf32> to vector<5x128xf32>
    %26 = arith.mulf %16, %25 : vector<5x128xf32>
    %27 = vector.broadcast %9 : vector<1x128xf32> to vector<5x128xf32>
    %28 = arith.mulf %26, %27 : vector<5x128xf32>
    %29 = vector.broadcast %10 : vector<1x128xf32> to vector<5x128xf32>
    %30 = arith.addf %28, %29 : vector<5x128xf32>
    %c0_17 = arith.constant 0 : index
    %c0_18 = arith.constant 0 : index
    %c0_19 = arith.constant 0 : index
    %31 = vector.load %arg7[%c0_17, %c0_18, %c0_19] : memref<1x5x128xf32, #tpu.memory_space<vmem>>, vector<1x5x128xf32>
    %32 = vector.shape_cast %31 : vector<1x5x128xf32> to vector<5x128xf32>
    %33 = vector.shape_cast %30 : vector<5x128xf32> to vector<1x5x128xf32>
    tpu.vector_store %arg7[%c0_17, %c0_18, %c0_19], %33 {strides = array<i32>} : memref<1x5x128xf32, #tpu.memory_space<vmem>>, vector<1x5x128xf32>,
    return
  }
  func.func @transform_0(%arg0: i32) -> (i32, i32, i32) {
    %c0_i32 = arith.constant 0 : i32
    %c0_i32_0 = arith.constant 0 : i32
    %c0_i32_1 = arith.constant 0 : i32
    return %arg0, %c0_i32, %c0_i32_0 : i32, i32, i32
  }
  func.func @transform_1(%arg0: i32) -> (i32, i32) {
    %c0_i32 = arith.constant 0 : i32
    %c0_i32_0 = arith.constant 0 : i32
    %c0_i32_1 = arith.constant 0 : i32
    return %c0_i32, %c0_i32_0 : i32, i32
  }
  func.func @transform_2(%arg0: i32) -> (i32, i32) {
    %c0_i32 = arith.constant 0 : i32
    %c0_i32_0 = arith.constant 0 : i32
    %c0_i32_1 = arith.constant 0 : i32
    return %c0_i32, %c0_i32_0 : i32, i32
  }
  func.func @transform_3(%arg0: i32) -> (i32, i32) {
    %c0_i32 = arith.constant 0 : i32
    %c0_i32_0 = arith.constant 0 : i32
    %c0_i32_1 = arith.constant 0 : i32
    return %c0_i32, %c0_i32_0 : i32, i32
  }
  func.func @transform_4(%arg0: i32) -> (i32, i32) {
    %c0_i32 = arith.constant 0 : i32
    %c0_i32_0 = arith.constant 0 : i32
    %c0_i32_1 = arith.constant 0 : i32
    return %c0_i32, %c0_i32_0 : i32, i32
  }
  func.func @transform_5(%arg0: i32) -> (i32, i32) {
    %c0_i32 = arith.constant 0 : i32
    %c0_i32_0 = arith.constant 0 : i32
    %c0_i32_1 = arith.constant 0 : i32
    return %c0_i32, %c0_i32_0 : i32, i32
  }
  func.func @transform_6(%arg0: i32) -> (i32, i32, i32) {
    %c0_i32 = arith.constant 0 : i32
    %c0_i32_0 = arith.constant 0 : i32
    %c0_i32_1 = arith.constant 0 : i32
    return %arg0, %c0_i32, %c0_i32_0 : i32, i32, i32
  }
}

module attributes {stable_mosaic.version = 11 : i64} {
  func.func @_encoder_tower_kernel(%arg0: i32, %arg1: i32, %arg2: memref<1x5x128xf32, #tpu.memory_space<vmem>>, %arg3: memref<1x1x128xf32, #tpu.memory_space<vmem>>, %arg4: memref<1x1x128xf32, #tpu.memory_space<vmem>>, %arg5: memref<1x128x384xbf16, #tpu.memory_space<vmem>>, %arg6: memref<1x1x384xf32, #tpu.memory_space<vmem>>, %arg7: memref<1x128x128xbf16, #tpu.memory_space<vmem>>, %arg8: memref<1x1x128xf32, #tpu.memory_space<vmem>>, %arg9: memref<1x1x128xf32, #tpu.memory_space<vmem>>, %arg10: memref<1x1x128xf32, #tpu.memory_space<vmem>>, %arg11: memref<1x128x256xbf16, #tpu.memory_space<vmem>>, %arg12: memref<1x1x256xf32, #tpu.memory_space<vmem>>, %arg13: memref<1x256x128xbf16, #tpu.memory_space<vmem>>, %arg14: memref<1x1x128xf32, #tpu.memory_space<vmem>>, %arg15: memref<1x5x128xf32, #tpu.memory_space<vmem>>) attributes {dimension_semantics = [#tpu.dimension_semantics<parallel>, #tpu.dimension_semantics<arbitrary>], iteration_bounds = array<i64: 2, 2>, scalar_prefetch = 0 : i64, scratch_operands = 0 : i64, tpu.core_type = #tpu.core_type<tc>, window_params = [{transform_indices = @transform_0, window_bounds = array<i64: 1, 5, 128>}, {transform_indices = @transform_1, window_bounds = array<i64: 1, 1, 128>}, {transform_indices = @transform_2, window_bounds = array<i64: 1, 1, 128>}, {transform_indices = @transform_3, window_bounds = array<i64: 1, 128, 384>}, {transform_indices = @transform_4, window_bounds = array<i64: 1, 1, 384>}, {transform_indices = @transform_5, window_bounds = array<i64: 1, 128, 128>}, {transform_indices = @transform_6, window_bounds = array<i64: 1, 1, 128>}, {transform_indices = @transform_7, window_bounds = array<i64: 1, 1, 128>}, {transform_indices = @transform_8, window_bounds = array<i64: 1, 1, 128>}, {transform_indices = @transform_9, window_bounds = array<i64: 1, 128, 256>}, {transform_indices = @transform_10, window_bounds = array<i64: 1, 1, 256>}, {transform_indices = @transform_11, window_bounds = array<i64: 1, 256, 128>}, {transform_indices = @transform_12, window_bounds = array<i64: 1, 1, 128>}, {transform_indices = @transform_13, window_bounds = array<i64: 1, 5, 128>}]} {
    %c0_i32 = arith.constant 0 : i32
    %0 = arith.cmpi eq, %arg1, %c0_i32 : i32
    %1 = arith.extui %0 : i1 to i32
    %c0_i32_0 = arith.constant 0 : i32
    %2 = arith.cmpi ne, %1, %c0_i32_0 : i32
    scf.if %2 {
      %c0_67 = arith.constant 0 : index
      %c0_68 = arith.constant 0 : index
      %c0_69 = arith.constant 0 : index
      %137 = vector.load %arg2[%c0_67, %c0_68, %c0_69] : memref<1x5x128xf32, #tpu.memory_space<vmem>>, vector<1x5x128xf32>
      %138 = vector.shape_cast %137 : vector<1x5x128xf32> to vector<5x128xf32>
      %c0_70 = arith.constant 0 : index
      %c0_71 = arith.constant 0 : index
      %c0_72 = arith.constant 0 : index
      %139 = vector.load %arg15[%c0_70, %c0_71, %c0_72] : memref<1x5x128xf32, #tpu.memory_space<vmem>>, vector<1x5x128xf32>
      %140 = vector.shape_cast %139 : vector<1x5x128xf32> to vector<5x128xf32>
      %141 = vector.shape_cast %138 : vector<5x128xf32> to vector<1x5x128xf32>
      tpu.vector_store %arg15[%c0_70, %c0_71, %c0_72], %141 {strides = array<i32>} : memref<1x5x128xf32, #tpu.memory_space<vmem>>, vector<1x5x128xf32>,
    } else {
    }
    %c0 = arith.constant 0 : index
    %c0_1 = arith.constant 0 : index
    %c0_2 = arith.constant 0 : index
    %3 = vector.load %arg15[%c0, %c0_1, %c0_2] : memref<1x5x128xf32, #tpu.memory_space<vmem>>, vector<1x5x128xf32>
    %4 = vector.shape_cast %3 : vector<1x5x128xf32> to vector<5x128xf32>
    %c0_3 = arith.constant 0 : index
    %c0_4 = arith.constant 0 : index
    %c0_5 = arith.constant 0 : index
    %5 = vector.load %arg3[%c0_3, %c0_4, %c0_5] : memref<1x1x128xf32, #tpu.memory_space<vmem>>, vector<1x1x128xf32>
    %6 = vector.shape_cast %5 : vector<1x1x128xf32> to vector<1x128xf32>
    %c0_6 = arith.constant 0 : index
    %c0_7 = arith.constant 0 : index
    %c0_8 = arith.constant 0 : index
    %7 = vector.load %arg4[%c0_6, %c0_7, %c0_8] : memref<1x1x128xf32, #tpu.memory_space<vmem>>, vector<1x1x128xf32>
    %8 = vector.shape_cast %7 : vector<1x1x128xf32> to vector<1x128xf32>
    %c0_9 = arith.constant 0 : index
    %c0_10 = arith.constant 0 : index
    %c0_11 = arith.constant 0 : index
    %9 = vector.load %arg9[%c0_9, %c0_10, %c0_11] : memref<1x1x128xf32, #tpu.memory_space<vmem>>, vector<1x1x128xf32>
    %10 = vector.shape_cast %9 : vector<1x1x128xf32> to vector<1x128xf32>
    %c0_12 = arith.constant 0 : index
    %c0_13 = arith.constant 0 : index
    %c0_14 = arith.constant 0 : index
    %11 = vector.load %arg10[%c0_12, %c0_13, %c0_14] : memref<1x1x128xf32, #tpu.memory_space<vmem>>, vector<1x1x128xf32>
    %12 = vector.shape_cast %11 : vector<1x1x128xf32> to vector<1x128xf32>
    %cst = arith.constant dense<0.000000e+00> : vector<5xf32>
    %13 = vector.multi_reduction <add>, %4, %cst [1] : vector<5x128xf32> to vector<5xf32>
    %14 = vector.shape_cast %13 : vector<5xf32> to vector<5x1xf32>
    %cst_15 = arith.constant 1.280000e+02 : f32
    %15 = vector.broadcast %cst_15 : f32 to vector<5x1xf32>
    %16 = arith.divf %14, %15 : vector<5x1xf32>
    %17 = vector.broadcast %16 : vector<5x1xf32> to vector<5x128xf32>
    %18 = arith.subf %4, %17 : vector<5x128xf32>
    %19 = arith.mulf %18, %18 : vector<5x128xf32>
    %cst_16 = arith.constant dense<0.000000e+00> : vector<5xf32>
    %20 = vector.multi_reduction <add>, %19, %cst_16 [1] : vector<5x128xf32> to vector<5xf32>
    %21 = vector.shape_cast %20 : vector<5xf32> to vector<5x1xf32>
    %cst_17 = arith.constant 1.280000e+02 : f32
    %22 = vector.broadcast %cst_17 : f32 to vector<5x1xf32>
    %23 = arith.divf %21, %22 : vector<5x1xf32>
    %cst_18 = arith.constant 9.99999974E-6 : f32
    %24 = vector.broadcast %cst_18 : f32 to vector<5x1xf32>
    %25 = arith.addf %23, %24 : vector<5x1xf32>
    %26 = math.rsqrt %25 : vector<5x1xf32>
    %27 = vector.broadcast %26 : vector<5x1xf32> to vector<5x128xf32>
    %28 = arith.mulf %18, %27 : vector<5x128xf32>
    %29 = vector.broadcast %6 : vector<1x128xf32> to vector<5x128xf32>
    %30 = arith.mulf %28, %29 : vector<5x128xf32>
    %31 = vector.broadcast %8 : vector<1x128xf32> to vector<5x128xf32>
    %32 = arith.addf %30, %31 : vector<5x128xf32>
    %33 = arith.truncf %32 : vector<5x128xf32> to vector<5x128xbf16>
    %c0_19 = arith.constant 0 : index
    %c0_20 = arith.constant 0 : index
    %c0_21 = arith.constant 0 : index
    %34 = vector.load %arg5[%c0_19, %c0_20, %c0_21] : memref<1x128x384xbf16, #tpu.memory_space<vmem>>, vector<1x128x384xbf16>
    %35 = vector.shape_cast %34 : vector<1x128x384xbf16> to vector<128x384xbf16>
    %cst_22 = arith.constant dense<0.000000e+00> : vector<5x384xf32>
    %36 = tpu.matmul %33, %35, %cst_22 {dimension_numbers = #tpu.dot_dimension_numbers<[1], [0], [0], [1], [0, 0, 1, 1], [], []>} : vector<5x128xbf16>, vector<128x384xbf16>, vector<5x384xf32> -> vector<5x384xf32>
    %c0_23 = arith.constant 0 : index
    %c0_24 = arith.constant 0 : index
    %c0_25 = arith.constant 0 : index
    %37 = vector.load %arg6[%c0_23, %c0_24, %c0_25] : memref<1x1x384xf32, #tpu.memory_space<vmem>>, vector<1x1x384xf32>
    %38 = vector.shape_cast %37 : vector<1x1x384xf32> to vector<1x384xf32>
    %39 = vector.broadcast %38 : vector<1x384xf32> to vector<5x384xf32>
    %40 = arith.addf %36, %39 : vector<5x384xf32>
    %41 = vector.extract_strided_slice %40 {offsets = [0, 0], sizes = [5, 64], strides = [1, 1]} : vector<5x384xf32> to vector<5x64xf32>
    %42 = vector.extract_strided_slice %40 {offsets = [0, 128], sizes = [5, 64], strides = [1, 1]} : vector<5x384xf32> to vector<5x64xf32>
    %43 = vector.extract_strided_slice %40 {offsets = [0, 256], sizes = [5, 64], strides = [1, 1]} : vector<5x384xf32> to vector<5x64xf32>
    %cst_26 = arith.constant dense<0.000000e+00> : vector<5x5xf32>
    %44 = tpu.matmul %41, %42, %cst_26 {dimension_numbers = #tpu.dot_dimension_numbers<[1], [1], [0], [0], [0, 0, 1, 0], [], []>} : vector<5x64xf32>, vector<5x64xf32>, vector<5x5xf32> -> vector<5x5xf32>
    %cst_27 = arith.constant 1.250000e-01 : f32
    %45 = vector.broadcast %cst_27 : f32 to vector<5x5xf32>
    %46 = arith.mulf %44, %45 : vector<5x5xf32>
    %cst_28 = arith.constant dense<0xFF800000> : vector<5xf32>
    %47 = vector.multi_reduction <maximumf>, %46, %cst_28 [1] : vector<5x5xf32> to vector<5xf32>
    %48 = vector.shape_cast %47 : vector<5xf32> to vector<5x1xf32>
    %49 = vector.broadcast %48 : vector<5x1xf32> to vector<5x5xf32>
    %50 = arith.subf %46, %49 : vector<5x5xf32>
    %51 = math.exp %50 : vector<5x5xf32>
    %cst_29 = arith.constant dense<0.000000e+00> : vector<5xf32>
    %52 = vector.multi_reduction <add>, %51, %cst_29 [1] : vector<5x5xf32> to vector<5xf32>
    %53 = vector.shape_cast %52 : vector<5xf32> to vector<5x1xf32>
    %54 = tpu.reciprocal %53 {approx = true} : vector<5x1xf32> -> vector<5x1xf32>
    %55 = vector.broadcast %54 : vector<5x1xf32> to vector<5x5xf32>
    %56 = arith.mulf %51, %55 : vector<5x5xf32>
    %57 = arith.truncf %56 : vector<5x5xf32> to vector<5x5xbf16>
    %58 = arith.truncf %43 : vector<5x64xf32> to vector<5x64xbf16>
    %cst_30 = arith.constant dense<0.000000e+00> : vector<5x64xf32>
    %59 = tpu.matmul %57, %58, %cst_30 {dimension_numbers = #tpu.dot_dimension_numbers<[1], [0], [0], [1], [0, 0, 1, 1], [], []>} : vector<5x5xbf16>, vector<5x64xbf16>, vector<5x64xf32> -> vector<5x64xf32>
    %60 = vector.extract_strided_slice %40 {offsets = [0, 64], sizes = [5, 64], strides = [1, 1]} : vector<5x384xf32> to vector<5x64xf32>
    %61 = vector.extract_strided_slice %40 {offsets = [0, 192], sizes = [5, 64], strides = [1, 1]} : vector<5x384xf32> to vector<5x64xf32>
    %62 = vector.extract_strided_slice %40 {offsets = [0, 320], sizes = [5, 64], strides = [1, 1]} : vector<5x384xf32> to vector<5x64xf32>
    %cst_31 = arith.constant dense<0.000000e+00> : vector<5x5xf32>
    %63 = tpu.matmul %60, %61, %cst_31 {dimension_numbers = #tpu.dot_dimension_numbers<[1], [1], [0], [0], [0, 0, 1, 0], [], []>} : vector<5x64xf32>, vector<5x64xf32>, vector<5x5xf32> -> vector<5x5xf32>
    %cst_32 = arith.constant 1.250000e-01 : f32
    %64 = vector.broadcast %cst_32 : f32 to vector<5x5xf32>
    %65 = arith.mulf %63, %64 : vector<5x5xf32>
    %cst_33 = arith.constant dense<0xFF800000> : vector<5xf32>
    %66 = vector.multi_reduction <maximumf>, %65, %cst_33 [1] : vector<5x5xf32> to vector<5xf32>
    %67 = vector.shape_cast %66 : vector<5xf32> to vector<5x1xf32>
    %68 = vector.broadcast %67 : vector<5x1xf32> to vector<5x5xf32>
    %69 = arith.subf %65, %68 : vector<5x5xf32>
    %70 = math.exp %69 : vector<5x5xf32>
    %cst_34 = arith.constant dense<0.000000e+00> : vector<5xf32>
    %71 = vector.multi_reduction <add>, %70, %cst_34 [1] : vector<5x5xf32> to vector<5xf32>
    %72 = vector.shape_cast %71 : vector<5xf32> to vector<5x1xf32>
    %73 = tpu.reciprocal %72 {approx = true} : vector<5x1xf32> -> vector<5x1xf32>
    %74 = vector.broadcast %73 : vector<5x1xf32> to vector<5x5xf32>
    %75 = arith.mulf %70, %74 : vector<5x5xf32>
    %76 = arith.truncf %75 : vector<5x5xf32> to vector<5x5xbf16>
    %77 = arith.truncf %62 : vector<5x64xf32> to vector<5x64xbf16>
    %cst_35 = arith.constant dense<0.000000e+00> : vector<5x64xf32>
    %78 = tpu.matmul %76, %77, %cst_35 {dimension_numbers = #tpu.dot_dimension_numbers<[1], [0], [0], [1], [0, 0, 1, 1], [], []>} : vector<5x5xbf16>, vector<5x64xbf16>, vector<5x64xf32> -> vector<5x64xf32>
    %79 = tpu.concatenate %59, %78 in 1 : vector<5x64xf32>, vector<5x64xf32> -> vector<5x128xf32>
    %80 = arith.truncf %79 : vector<5x128xf32> to vector<5x128xbf16>
    %c0_36 = arith.constant 0 : index
    %c0_37 = arith.constant 0 : index
    %c0_38 = arith.constant 0 : index
    %81 = vector.load %arg7[%c0_36, %c0_37, %c0_38] : memref<1x128x128xbf16, #tpu.memory_space<vmem>>, vector<1x128x128xbf16>
    %82 = vector.shape_cast %81 : vector<1x128x128xbf16> to vector<128x128xbf16>
    %cst_39 = arith.constant dense<0.000000e+00> : vector<5x128xf32>
    %83 = tpu.matmul %80, %82, %cst_39 {dimension_numbers = #tpu.dot_dimension_numbers<[1], [0], [0], [1], [0, 0, 1, 1], [], []>} : vector<5x128xbf16>, vector<128x128xbf16>, vector<5x128xf32> -> vector<5x128xf32>
    %84 = arith.addf %4, %83 : vector<5x128xf32>
    %c0_40 = arith.constant 0 : index
    %c0_41 = arith.constant 0 : index
    %c0_42 = arith.constant 0 : index
    %85 = vector.load %arg8[%c0_40, %c0_41, %c0_42] : memref<1x1x128xf32, #tpu.memory_space<vmem>>, vector<1x1x128xf32>
    %86 = vector.shape_cast %85 : vector<1x1x128xf32> to vector<1x128xf32>
    %87 = vector.broadcast %86 : vector<1x128xf32> to vector<5x128xf32>
    %88 = arith.addf %84, %87 : vector<5x128xf32>
    %cst_43 = arith.constant dense<0.000000e+00> : vector<5xf32>
    %89 = vector.multi_reduction <add>, %88, %cst_43 [1] : vector<5x128xf32> to vector<5xf32>
    %90 = vector.shape_cast %89 : vector<5xf32> to vector<5x1xf32>
    %cst_44 = arith.constant 1.280000e+02 : f32
    %91 = vector.broadcast %cst_44 : f32 to vector<5x1xf32>
    %92 = arith.divf %90, %91 : vector<5x1xf32>
    %93 = vector.broadcast %92 : vector<5x1xf32> to vector<5x128xf32>
    %94 = arith.subf %88, %93 : vector<5x128xf32>
    %95 = arith.mulf %94, %94 : vector<5x128xf32>
    %cst_45 = arith.constant dense<0.000000e+00> : vector<5xf32>
    %96 = vector.multi_reduction <add>, %95, %cst_45 [1] : vector<5x128xf32> to vector<5xf32>
    %97 = vector.shape_cast %96 : vector<5xf32> to vector<5x1xf32>
    %cst_46 = arith.constant 1.280000e+02 : f32
    %98 = vector.broadcast %cst_46 : f32 to vector<5x1xf32>
    %99 = arith.divf %97, %98 : vector<5x1xf32>
    %cst_47 = arith.constant 9.99999974E-6 : f32
    %100 = vector.broadcast %cst_47 : f32 to vector<5x1xf32>
    %101 = arith.addf %99, %100 : vector<5x1xf32>
    %102 = math.rsqrt %101 : vector<5x1xf32>
    %103 = vector.broadcast %102 : vector<5x1xf32> to vector<5x128xf32>
    %104 = arith.mulf %94, %103 : vector<5x128xf32>
    %105 = vector.broadcast %10 : vector<1x128xf32> to vector<5x128xf32>
    %106 = arith.mulf %104, %105 : vector<5x128xf32>
    %107 = vector.broadcast %12 : vector<1x128xf32> to vector<5x128xf32>
    %108 = arith.addf %106, %107 : vector<5x128xf32>
    %109 = arith.truncf %108 : vector<5x128xf32> to vector<5x128xbf16>
    %c0_48 = arith.constant 0 : index
    %c0_49 = arith.constant 0 : index
    %c0_50 = arith.constant 0 : index
    %110 = vector.load %arg11[%c0_48, %c0_49, %c0_50] : memref<1x128x256xbf16, #tpu.memory_space<vmem>>, vector<1x128x256xbf16>
    %111 = vector.shape_cast %110 : vector<1x128x256xbf16> to vector<128x256xbf16>
    %cst_51 = arith.constant dense<0.000000e+00> : vector<5x256xf32>
    %112 = tpu.matmul %109, %111, %cst_51 {dimension_numbers = #tpu.dot_dimension_numbers<[1], [0], [0], [1], [0, 0, 1, 1], [], []>} : vector<5x128xbf16>, vector<128x256xbf16>, vector<5x256xf32> -> vector<5x256xf32>
    %c0_52 = arith.constant 0 : index
    %c0_53 = arith.constant 0 : index
    %c0_54 = arith.constant 0 : index
    %113 = vector.load %arg12[%c0_52, %c0_53, %c0_54] : memref<1x1x256xf32, #tpu.memory_space<vmem>>, vector<1x1x256xf32>
    %114 = vector.shape_cast %113 : vector<1x1x256xf32> to vector<1x256xf32>
    %115 = vector.broadcast %114 : vector<1x256xf32> to vector<5x256xf32>
    %116 = arith.addf %112, %115 : vector<5x256xf32>
    %cst_55 = arith.constant 1.702000e+00 : f32
    %117 = vector.broadcast %cst_55 : f32 to vector<5x256xf32>
    %118 = arith.mulf %117, %116 : vector<5x256xf32>
    %119 = arith.negf %118 : vector<5x256xf32>
    %120 = math.exp %119 : vector<5x256xf32>
    %cst_56 = arith.constant 1.000000e+00 : f32
    %121 = vector.broadcast %cst_56 : f32 to vector<5x256xf32>
    %122 = arith.addf %121, %120 : vector<5x256xf32>
    %123 = arith.divf %121, %122 : vector<5x256xf32>
    %124 = arith.mulf %116, %123 : vector<5x256xf32>
    %125 = arith.truncf %124 : vector<5x256xf32> to vector<5x256xbf16>
    %c0_57 = arith.constant 0 : index
    %c0_58 = arith.constant 0 : index
    %c0_59 = arith.constant 0 : index
    %126 = vector.load %arg13[%c0_57, %c0_58, %c0_59] : memref<1x256x128xbf16, #tpu.memory_space<vmem>>, vector<1x256x128xbf16>
    %127 = vector.shape_cast %126 : vector<1x256x128xbf16> to vector<256x128xbf16>
    %cst_60 = arith.constant dense<0.000000e+00> : vector<5x128xf32>
    %128 = tpu.matmul %125, %127, %cst_60 {dimension_numbers = #tpu.dot_dimension_numbers<[1], [0], [0], [1], [0, 0, 1, 1], [], []>} : vector<5x256xbf16>, vector<256x128xbf16>, vector<5x128xf32> -> vector<5x128xf32>
    %129 = arith.addf %88, %128 : vector<5x128xf32>
    %c0_61 = arith.constant 0 : index
    %c0_62 = arith.constant 0 : index
    %c0_63 = arith.constant 0 : index
    %130 = vector.load %arg14[%c0_61, %c0_62, %c0_63] : memref<1x1x128xf32, #tpu.memory_space<vmem>>, vector<1x1x128xf32>
    %131 = vector.shape_cast %130 : vector<1x1x128xf32> to vector<1x128xf32>
    %132 = vector.broadcast %131 : vector<1x128xf32> to vector<5x128xf32>
    %133 = arith.addf %129, %132 : vector<5x128xf32>
    %c0_64 = arith.constant 0 : index
    %c0_65 = arith.constant 0 : index
    %c0_66 = arith.constant 0 : index
    %134 = vector.load %arg15[%c0_64, %c0_65, %c0_66] : memref<1x5x128xf32, #tpu.memory_space<vmem>>, vector<1x5x128xf32>
    %135 = vector.shape_cast %134 : vector<1x5x128xf32> to vector<5x128xf32>
    %136 = vector.shape_cast %133 : vector<5x128xf32> to vector<1x5x128xf32>
    tpu.vector_store %arg15[%c0_64, %c0_65, %c0_66], %136 {strides = array<i32>} : memref<1x5x128xf32, #tpu.memory_space<vmem>>, vector<1x5x128xf32>,
    return
  }
  func.func @transform_0(%arg0: i32, %arg1: i32) -> (i32, i32, i32) {
    %c0_i32 = arith.constant 0 : i32
    %c0_i32_0 = arith.constant 0 : i32
    %c0_i32_1 = arith.constant 0 : i32
    return %arg0, %c0_i32, %c0_i32_0 : i32, i32, i32
  }
  func.func @transform_1(%arg0: i32, %arg1: i32) -> (i32, i32, i32) {
    %c0_i32 = arith.constant 0 : i32
    %c0_i32_0 = arith.constant 0 : i32
    %c0_i32_1 = arith.constant 0 : i32
    return %arg1, %c0_i32, %c0_i32_0 : i32, i32, i32
  }
  func.func @transform_2(%arg0: i32, %arg1: i32) -> (i32, i32, i32) {
    %c0_i32 = arith.constant 0 : i32
    %c0_i32_0 = arith.constant 0 : i32
    %c0_i32_1 = arith.constant 0 : i32
    return %arg1, %c0_i32, %c0_i32_0 : i32, i32, i32
  }
  func.func @transform_3(%arg0: i32, %arg1: i32) -> (i32, i32, i32) {
    %c0_i32 = arith.constant 0 : i32
    %c0_i32_0 = arith.constant 0 : i32
    %c0_i32_1 = arith.constant 0 : i32
    return %arg1, %c0_i32, %c0_i32_0 : i32, i32, i32
  }
  func.func @transform_4(%arg0: i32, %arg1: i32) -> (i32, i32, i32) {
    %c0_i32 = arith.constant 0 : i32
    %c0_i32_0 = arith.constant 0 : i32
    %c0_i32_1 = arith.constant 0 : i32
    return %arg1, %c0_i32, %c0_i32_0 : i32, i32, i32
  }
  func.func @transform_5(%arg0: i32, %arg1: i32) -> (i32, i32, i32) {
    %c0_i32 = arith.constant 0 : i32
    %c0_i32_0 = arith.constant 0 : i32
    %c0_i32_1 = arith.constant 0 : i32
    return %arg1, %c0_i32, %c0_i32_0 : i32, i32, i32
  }
  func.func @transform_6(%arg0: i32, %arg1: i32) -> (i32, i32, i32) {
    %c0_i32 = arith.constant 0 : i32
    %c0_i32_0 = arith.constant 0 : i32
    %c0_i32_1 = arith.constant 0 : i32
    return %arg1, %c0_i32, %c0_i32_0 : i32, i32, i32
  }
  func.func @transform_7(%arg0: i32, %arg1: i32) -> (i32, i32, i32) {
    %c0_i32 = arith.constant 0 : i32
    %c0_i32_0 = arith.constant 0 : i32
    %c0_i32_1 = arith.constant 0 : i32
    return %arg1, %c0_i32, %c0_i32_0 : i32, i32, i32
  }
  func.func @transform_8(%arg0: i32, %arg1: i32) -> (i32, i32, i32) {
    %c0_i32 = arith.constant 0 : i32
    %c0_i32_0 = arith.constant 0 : i32
    %c0_i32_1 = arith.constant 0 : i32
    return %arg1, %c0_i32, %c0_i32_0 : i32, i32, i32
  }
  func.func @transform_9(%arg0: i32, %arg1: i32) -> (i32, i32, i32) {
    %c0_i32 = arith.constant 0 : i32
    %c0_i32_0 = arith.constant 0 : i32
    %c0_i32_1 = arith.constant 0 : i32
    return %arg1, %c0_i32, %c0_i32_0 : i32, i32, i32
  }
  func.func @transform_10(%arg0: i32, %arg1: i32) -> (i32, i32, i32) {
    %c0_i32 = arith.constant 0 : i32
    %c0_i32_0 = arith.constant 0 : i32
    %c0_i32_1 = arith.constant 0 : i32
    return %arg1, %c0_i32, %c0_i32_0 : i32, i32, i32
  }
  func.func @transform_11(%arg0: i32, %arg1: i32) -> (i32, i32, i32) {
    %c0_i32 = arith.constant 0 : i32
    %c0_i32_0 = arith.constant 0 : i32
    %c0_i32_1 = arith.constant 0 : i32
    return %arg1, %c0_i32, %c0_i32_0 : i32, i32, i32
  }
  func.func @transform_12(%arg0: i32, %arg1: i32) -> (i32, i32, i32) {
    %c0_i32 = arith.constant 0 : i32
    %c0_i32_0 = arith.constant 0 : i32
    %c0_i32_1 = arith.constant 0 : i32
    return %arg1, %c0_i32, %c0_i32_0 : i32, i32, i32
  }
  func.func @transform_13(%arg0: i32, %arg1: i32) -> (i32, i32, i32) {
    %c0_i32 = arith.constant 0 : i32
    %c0_i32_0 = arith.constant 0 : i32
    %c0_i32_1 = arith.constant 0 : i32
    return %arg0, %c0_i32, %c0_i32_0 : i32, i32, i32
  }
}

module attributes {stable_mosaic.version = 11 : i64} {
  func.func @_encoder_tower_kernel(%arg0: i32, %arg1: i32, %arg2: memref<1x8x128xf32, #tpu.memory_space<vmem>>, %arg3: memref<1x1x128xf32, #tpu.memory_space<vmem>>, %arg4: memref<1x1x128xf32, #tpu.memory_space<vmem>>, %arg5: memref<1x128x384xbf16, #tpu.memory_space<vmem>>, %arg6: memref<1x1x384xf32, #tpu.memory_space<vmem>>, %arg7: memref<1x128x128xbf16, #tpu.memory_space<vmem>>, %arg8: memref<1x1x128xf32, #tpu.memory_space<vmem>>, %arg9: memref<1x1x128xf32, #tpu.memory_space<vmem>>, %arg10: memref<1x1x128xf32, #tpu.memory_space<vmem>>, %arg11: memref<1x128x256xbf16, #tpu.memory_space<vmem>>, %arg12: memref<1x1x256xf32, #tpu.memory_space<vmem>>, %arg13: memref<1x256x128xbf16, #tpu.memory_space<vmem>>, %arg14: memref<1x1x128xf32, #tpu.memory_space<vmem>>, %arg15: memref<1x8x128xf32, #tpu.memory_space<vmem>>) attributes {dimension_semantics = [#tpu.dimension_semantics<parallel>, #tpu.dimension_semantics<arbitrary>], iteration_bounds = array<i64: 2, 2>, scalar_prefetch = 0 : i64, scratch_operands = 0 : i64, tpu.core_type = #tpu.core_type<tc>, window_params = [{transform_indices = @transform_0, window_bounds = array<i64: 1, 8, 128>}, {transform_indices = @transform_1, window_bounds = array<i64: 1, 1, 128>}, {transform_indices = @transform_2, window_bounds = array<i64: 1, 1, 128>}, {transform_indices = @transform_3, window_bounds = array<i64: 1, 128, 384>}, {transform_indices = @transform_4, window_bounds = array<i64: 1, 1, 384>}, {transform_indices = @transform_5, window_bounds = array<i64: 1, 128, 128>}, {transform_indices = @transform_6, window_bounds = array<i64: 1, 1, 128>}, {transform_indices = @transform_7, window_bounds = array<i64: 1, 1, 128>}, {transform_indices = @transform_8, window_bounds = array<i64: 1, 1, 128>}, {transform_indices = @transform_9, window_bounds = array<i64: 1, 128, 256>}, {transform_indices = @transform_10, window_bounds = array<i64: 1, 1, 256>}, {transform_indices = @transform_11, window_bounds = array<i64: 1, 256, 128>}, {transform_indices = @transform_12, window_bounds = array<i64: 1, 1, 128>}, {transform_indices = @transform_13, window_bounds = array<i64: 1, 8, 128>}]} {
    %c0_i32 = arith.constant 0 : i32
    %0 = arith.cmpi eq, %arg1, %c0_i32 : i32
    %1 = arith.extui %0 : i1 to i32
    %c0_i32_0 = arith.constant 0 : i32
    %2 = arith.cmpi ne, %1, %c0_i32_0 : i32
    scf.if %2 {
      %c0_69 = arith.constant 0 : index
      %c0_70 = arith.constant 0 : index
      %c0_71 = arith.constant 0 : index
      %144 = vector.load %arg2[%c0_69, %c0_70, %c0_71] : memref<1x8x128xf32, #tpu.memory_space<vmem>>, vector<1x8x128xf32>
      %145 = vector.shape_cast %144 : vector<1x8x128xf32> to vector<8x128xf32>
      %c0_72 = arith.constant 0 : index
      %c0_73 = arith.constant 0 : index
      %c0_74 = arith.constant 0 : index
      %146 = vector.load %arg15[%c0_72, %c0_73, %c0_74] : memref<1x8x128xf32, #tpu.memory_space<vmem>>, vector<1x8x128xf32>
      %147 = vector.shape_cast %146 : vector<1x8x128xf32> to vector<8x128xf32>
      %148 = vector.shape_cast %145 : vector<8x128xf32> to vector<1x8x128xf32>
      tpu.vector_store %arg15[%c0_72, %c0_73, %c0_74], %148 {strides = array<i32>} : memref<1x8x128xf32, #tpu.memory_space<vmem>>, vector<1x8x128xf32>,
    } else {
    }
    %c0 = arith.constant 0 : index
    %c0_1 = arith.constant 0 : index
    %c0_2 = arith.constant 0 : index
    %3 = vector.load %arg15[%c0, %c0_1, %c0_2] : memref<1x8x128xf32, #tpu.memory_space<vmem>>, vector<1x8x128xf32>
    %4 = vector.shape_cast %3 : vector<1x8x128xf32> to vector<8x128xf32>
    %c0_3 = arith.constant 0 : index
    %c0_4 = arith.constant 0 : index
    %c0_5 = arith.constant 0 : index
    %5 = vector.load %arg3[%c0_3, %c0_4, %c0_5] : memref<1x1x128xf32, #tpu.memory_space<vmem>>, vector<1x1x128xf32>
    %6 = vector.shape_cast %5 : vector<1x1x128xf32> to vector<1x128xf32>
    %c0_6 = arith.constant 0 : index
    %c0_7 = arith.constant 0 : index
    %c0_8 = arith.constant 0 : index
    %7 = vector.load %arg4[%c0_6, %c0_7, %c0_8] : memref<1x1x128xf32, #tpu.memory_space<vmem>>, vector<1x1x128xf32>
    %8 = vector.shape_cast %7 : vector<1x1x128xf32> to vector<1x128xf32>
    %c0_9 = arith.constant 0 : index
    %c0_10 = arith.constant 0 : index
    %c0_11 = arith.constant 0 : index
    %9 = vector.load %arg9[%c0_9, %c0_10, %c0_11] : memref<1x1x128xf32, #tpu.memory_space<vmem>>, vector<1x1x128xf32>
    %10 = vector.shape_cast %9 : vector<1x1x128xf32> to vector<1x128xf32>
    %c0_12 = arith.constant 0 : index
    %c0_13 = arith.constant 0 : index
    %c0_14 = arith.constant 0 : index
    %11 = vector.load %arg10[%c0_12, %c0_13, %c0_14] : memref<1x1x128xf32, #tpu.memory_space<vmem>>, vector<1x1x128xf32>
    %12 = vector.shape_cast %11 : vector<1x1x128xf32> to vector<1x128xf32>
    %cst = arith.constant dense<0.000000e+00> : vector<8xf32>
    %13 = vector.multi_reduction <add>, %4, %cst [1] : vector<8x128xf32> to vector<8xf32>
    %14 = vector.shape_cast %13 : vector<8xf32> to vector<8x1xf32>
    %cst_15 = arith.constant 1.280000e+02 : f32
    %15 = vector.broadcast %cst_15 : f32 to vector<8x1xf32>
    %16 = arith.divf %14, %15 : vector<8x1xf32>
    %17 = vector.broadcast %16 : vector<8x1xf32> to vector<8x128xf32>
    %18 = arith.subf %4, %17 : vector<8x128xf32>
    %19 = arith.mulf %18, %18 : vector<8x128xf32>
    %cst_16 = arith.constant dense<0.000000e+00> : vector<8xf32>
    %20 = vector.multi_reduction <add>, %19, %cst_16 [1] : vector<8x128xf32> to vector<8xf32>
    %21 = vector.shape_cast %20 : vector<8xf32> to vector<8x1xf32>
    %cst_17 = arith.constant 1.280000e+02 : f32
    %22 = vector.broadcast %cst_17 : f32 to vector<8x1xf32>
    %23 = arith.divf %21, %22 : vector<8x1xf32>
    %cst_18 = arith.constant 9.99999974E-6 : f32
    %24 = vector.broadcast %cst_18 : f32 to vector<8x1xf32>
    %25 = arith.addf %23, %24 : vector<8x1xf32>
    %26 = math.rsqrt %25 : vector<8x1xf32>
    %27 = vector.broadcast %26 : vector<8x1xf32> to vector<8x128xf32>
    %28 = arith.mulf %18, %27 : vector<8x128xf32>
    %29 = vector.broadcast %6 : vector<1x128xf32> to vector<8x128xf32>
    %30 = arith.mulf %28, %29 : vector<8x128xf32>
    %31 = vector.broadcast %8 : vector<1x128xf32> to vector<8x128xf32>
    %32 = arith.addf %30, %31 : vector<8x128xf32>
    %33 = arith.truncf %32 : vector<8x128xf32> to vector<8x128xbf16>
    %c0_19 = arith.constant 0 : index
    %c0_20 = arith.constant 0 : index
    %c0_21 = arith.constant 0 : index
    %34 = vector.load %arg5[%c0_19, %c0_20, %c0_21] : memref<1x128x384xbf16, #tpu.memory_space<vmem>>, vector<1x128x384xbf16>
    %35 = vector.shape_cast %34 : vector<1x128x384xbf16> to vector<128x384xbf16>
    %cst_22 = arith.constant dense<0.000000e+00> : vector<8x384xf32>
    %36 = tpu.matmul %33, %35, %cst_22 {dimension_numbers = #tpu.dot_dimension_numbers<[1], [0], [0], [1], [0, 0, 1, 1], [], []>} : vector<8x128xbf16>, vector<128x384xbf16>, vector<8x384xf32> -> vector<8x384xf32>
    %c0_23 = arith.constant 0 : index
    %c0_24 = arith.constant 0 : index
    %c0_25 = arith.constant 0 : index
    %37 = vector.load %arg6[%c0_23, %c0_24, %c0_25] : memref<1x1x384xf32, #tpu.memory_space<vmem>>, vector<1x1x384xf32>
    %38 = vector.shape_cast %37 : vector<1x1x384xf32> to vector<1x384xf32>
    %39 = vector.broadcast %38 : vector<1x384xf32> to vector<8x384xf32>
    %40 = arith.addf %36, %39 : vector<8x384xf32>
    %41 = tpu.iota {dimensions = array<i32: 0>} : vector<8x8xi32>
    %42 = tpu.iota {dimensions = array<i32: 1>} : vector<8x8xi32>
    %43 = arith.cmpi sle, %42, %41 : vector<8x8xi32>
    %44 = vector.extract_strided_slice %40 {offsets = [0, 0], sizes = [8, 64], strides = [1, 1]} : vector<8x384xf32> to vector<8x64xf32>
    %45 = vector.extract_strided_slice %40 {offsets = [0, 128], sizes = [8, 64], strides = [1, 1]} : vector<8x384xf32> to vector<8x64xf32>
    %46 = vector.extract_strided_slice %40 {offsets = [0, 256], sizes = [8, 64], strides = [1, 1]} : vector<8x384xf32> to vector<8x64xf32>
    %cst_26 = arith.constant dense<0.000000e+00> : vector<8x8xf32>
    %47 = tpu.matmul %44, %45, %cst_26 {dimension_numbers = #tpu.dot_dimension_numbers<[1], [1], [0], [0], [0, 0, 1, 0], [], []>} : vector<8x64xf32>, vector<8x64xf32>, vector<8x8xf32> -> vector<8x8xf32>
    %cst_27 = arith.constant 1.250000e-01 : f32
    %48 = vector.broadcast %cst_27 : f32 to vector<8x8xf32>
    %49 = arith.mulf %47, %48 : vector<8x8xf32>
    %cst_28 = arith.constant -1.000000e+09 : f32
    %50 = vector.broadcast %cst_28 : f32 to vector<8x8xf32>
    %51 = arith.select %43, %49, %50 : vector<8x8xi1>, vector<8x8xf32>
    %cst_29 = arith.constant dense<0xFF800000> : vector<8xf32>
    %52 = vector.multi_reduction <maximumf>, %51, %cst_29 [1] : vector<8x8xf32> to vector<8xf32>
    %53 = vector.shape_cast %52 : vector<8xf32> to vector<8x1xf32>
    %54 = vector.broadcast %53 : vector<8x1xf32> to vector<8x8xf32>
    %55 = arith.subf %51, %54 : vector<8x8xf32>
    %56 = math.exp %55 : vector<8x8xf32>
    %cst_30 = arith.constant dense<0.000000e+00> : vector<8xf32>
    %57 = vector.multi_reduction <add>, %56, %cst_30 [1] : vector<8x8xf32> to vector<8xf32>
    %58 = vector.shape_cast %57 : vector<8xf32> to vector<8x1xf32>
    %59 = tpu.reciprocal %58 {approx = true} : vector<8x1xf32> -> vector<8x1xf32>
    %60 = vector.broadcast %59 : vector<8x1xf32> to vector<8x8xf32>
    %61 = arith.mulf %56, %60 : vector<8x8xf32>
    %62 = arith.truncf %61 : vector<8x8xf32> to vector<8x8xbf16>
    %63 = arith.truncf %46 : vector<8x64xf32> to vector<8x64xbf16>
    %cst_31 = arith.constant dense<0.000000e+00> : vector<8x64xf32>
    %64 = tpu.matmul %62, %63, %cst_31 {dimension_numbers = #tpu.dot_dimension_numbers<[1], [0], [0], [1], [0, 0, 1, 1], [], []>} : vector<8x8xbf16>, vector<8x64xbf16>, vector<8x64xf32> -> vector<8x64xf32>
    %65 = vector.extract_strided_slice %40 {offsets = [0, 64], sizes = [8, 64], strides = [1, 1]} : vector<8x384xf32> to vector<8x64xf32>
    %66 = vector.extract_strided_slice %40 {offsets = [0, 192], sizes = [8, 64], strides = [1, 1]} : vector<8x384xf32> to vector<8x64xf32>
    %67 = vector.extract_strided_slice %40 {offsets = [0, 320], sizes = [8, 64], strides = [1, 1]} : vector<8x384xf32> to vector<8x64xf32>
    %cst_32 = arith.constant dense<0.000000e+00> : vector<8x8xf32>
    %68 = tpu.matmul %65, %66, %cst_32 {dimension_numbers = #tpu.dot_dimension_numbers<[1], [1], [0], [0], [0, 0, 1, 0], [], []>} : vector<8x64xf32>, vector<8x64xf32>, vector<8x8xf32> -> vector<8x8xf32>
    %cst_33 = arith.constant 1.250000e-01 : f32
    %69 = vector.broadcast %cst_33 : f32 to vector<8x8xf32>
    %70 = arith.mulf %68, %69 : vector<8x8xf32>
    %cst_34 = arith.constant -1.000000e+09 : f32
    %71 = vector.broadcast %cst_34 : f32 to vector<8x8xf32>
    %72 = arith.select %43, %70, %71 : vector<8x8xi1>, vector<8x8xf32>
    %cst_35 = arith.constant dense<0xFF800000> : vector<8xf32>
    %73 = vector.multi_reduction <maximumf>, %72, %cst_35 [1] : vector<8x8xf32> to vector<8xf32>
    %74 = vector.shape_cast %73 : vector<8xf32> to vector<8x1xf32>
    %75 = vector.broadcast %74 : vector<8x1xf32> to vector<8x8xf32>
    %76 = arith.subf %72, %75 : vector<8x8xf32>
    %77 = math.exp %76 : vector<8x8xf32>
    %cst_36 = arith.constant dense<0.000000e+00> : vector<8xf32>
    %78 = vector.multi_reduction <add>, %77, %cst_36 [1] : vector<8x8xf32> to vector<8xf32>
    %79 = vector.shape_cast %78 : vector<8xf32> to vector<8x1xf32>
    %80 = tpu.reciprocal %79 {approx = true} : vector<8x1xf32> -> vector<8x1xf32>
    %81 = vector.broadcast %80 : vector<8x1xf32> to vector<8x8xf32>
    %82 = arith.mulf %77, %81 : vector<8x8xf32>
    %83 = arith.truncf %82 : vector<8x8xf32> to vector<8x8xbf16>
    %84 = arith.truncf %67 : vector<8x64xf32> to vector<8x64xbf16>
    %cst_37 = arith.constant dense<0.000000e+00> : vector<8x64xf32>
    %85 = tpu.matmul %83, %84, %cst_37 {dimension_numbers = #tpu.dot_dimension_numbers<[1], [0], [0], [1], [0, 0, 1, 1], [], []>} : vector<8x8xbf16>, vector<8x64xbf16>, vector<8x64xf32> -> vector<8x64xf32>
    %86 = tpu.concatenate %64, %85 in 1 : vector<8x64xf32>, vector<8x64xf32> -> vector<8x128xf32>
    %87 = arith.truncf %86 : vector<8x128xf32> to vector<8x128xbf16>
    %c0_38 = arith.constant 0 : index
    %c0_39 = arith.constant 0 : index
    %c0_40 = arith.constant 0 : index
    %88 = vector.load %arg7[%c0_38, %c0_39, %c0_40] : memref<1x128x128xbf16, #tpu.memory_space<vmem>>, vector<1x128x128xbf16>
    %89 = vector.shape_cast %88 : vector<1x128x128xbf16> to vector<128x128xbf16>
    %cst_41 = arith.constant dense<0.000000e+00> : vector<8x128xf32>
    %90 = tpu.matmul %87, %89, %cst_41 {dimension_numbers = #tpu.dot_dimension_numbers<[1], [0], [0], [1], [0, 0, 1, 1], [], []>} : vector<8x128xbf16>, vector<128x128xbf16>, vector<8x128xf32> -> vector<8x128xf32>
    %91 = arith.addf %4, %90 : vector<8x128xf32>
    %c0_42 = arith.constant 0 : index
    %c0_43 = arith.constant 0 : index
    %c0_44 = arith.constant 0 : index
    %92 = vector.load %arg8[%c0_42, %c0_43, %c0_44] : memref<1x1x128xf32, #tpu.memory_space<vmem>>, vector<1x1x128xf32>
    %93 = vector.shape_cast %92 : vector<1x1x128xf32> to vector<1x128xf32>
    %94 = vector.broadcast %93 : vector<1x128xf32> to vector<8x128xf32>
    %95 = arith.addf %91, %94 : vector<8x128xf32>
    %cst_45 = arith.constant dense<0.000000e+00> : vector<8xf32>
    %96 = vector.multi_reduction <add>, %95, %cst_45 [1] : vector<8x128xf32> to vector<8xf32>
    %97 = vector.shape_cast %96 : vector<8xf32> to vector<8x1xf32>
    %cst_46 = arith.constant 1.280000e+02 : f32
    %98 = vector.broadcast %cst_46 : f32 to vector<8x1xf32>
    %99 = arith.divf %97, %98 : vector<8x1xf32>
    %100 = vector.broadcast %99 : vector<8x1xf32> to vector<8x128xf32>
    %101 = arith.subf %95, %100 : vector<8x128xf32>
    %102 = arith.mulf %101, %101 : vector<8x128xf32>
    %cst_47 = arith.constant dense<0.000000e+00> : vector<8xf32>
    %103 = vector.multi_reduction <add>, %102, %cst_47 [1] : vector<8x128xf32> to vector<8xf32>
    %104 = vector.shape_cast %103 : vector<8xf32> to vector<8x1xf32>
    %cst_48 = arith.constant 1.280000e+02 : f32
    %105 = vector.broadcast %cst_48 : f32 to vector<8x1xf32>
    %106 = arith.divf %104, %105 : vector<8x1xf32>
    %cst_49 = arith.constant 9.99999974E-6 : f32
    %107 = vector.broadcast %cst_49 : f32 to vector<8x1xf32>
    %108 = arith.addf %106, %107 : vector<8x1xf32>
    %109 = math.rsqrt %108 : vector<8x1xf32>
    %110 = vector.broadcast %109 : vector<8x1xf32> to vector<8x128xf32>
    %111 = arith.mulf %101, %110 : vector<8x128xf32>
    %112 = vector.broadcast %10 : vector<1x128xf32> to vector<8x128xf32>
    %113 = arith.mulf %111, %112 : vector<8x128xf32>
    %114 = vector.broadcast %12 : vector<1x128xf32> to vector<8x128xf32>
    %115 = arith.addf %113, %114 : vector<8x128xf32>
    %116 = arith.truncf %115 : vector<8x128xf32> to vector<8x128xbf16>
    %c0_50 = arith.constant 0 : index
    %c0_51 = arith.constant 0 : index
    %c0_52 = arith.constant 0 : index
    %117 = vector.load %arg11[%c0_50, %c0_51, %c0_52] : memref<1x128x256xbf16, #tpu.memory_space<vmem>>, vector<1x128x256xbf16>
    %118 = vector.shape_cast %117 : vector<1x128x256xbf16> to vector<128x256xbf16>
    %cst_53 = arith.constant dense<0.000000e+00> : vector<8x256xf32>
    %119 = tpu.matmul %116, %118, %cst_53 {dimension_numbers = #tpu.dot_dimension_numbers<[1], [0], [0], [1], [0, 0, 1, 1], [], []>} : vector<8x128xbf16>, vector<128x256xbf16>, vector<8x256xf32> -> vector<8x256xf32>
    %c0_54 = arith.constant 0 : index
    %c0_55 = arith.constant 0 : index
    %c0_56 = arith.constant 0 : index
    %120 = vector.load %arg12[%c0_54, %c0_55, %c0_56] : memref<1x1x256xf32, #tpu.memory_space<vmem>>, vector<1x1x256xf32>
    %121 = vector.shape_cast %120 : vector<1x1x256xf32> to vector<1x256xf32>
    %122 = vector.broadcast %121 : vector<1x256xf32> to vector<8x256xf32>
    %123 = arith.addf %119, %122 : vector<8x256xf32>
    %cst_57 = arith.constant 1.702000e+00 : f32
    %124 = vector.broadcast %cst_57 : f32 to vector<8x256xf32>
    %125 = arith.mulf %124, %123 : vector<8x256xf32>
    %126 = arith.negf %125 : vector<8x256xf32>
    %127 = math.exp %126 : vector<8x256xf32>
    %cst_58 = arith.constant 1.000000e+00 : f32
    %128 = vector.broadcast %cst_58 : f32 to vector<8x256xf32>
    %129 = arith.addf %128, %127 : vector<8x256xf32>
    %130 = arith.divf %128, %129 : vector<8x256xf32>
    %131 = arith.mulf %123, %130 : vector<8x256xf32>
    %132 = arith.truncf %131 : vector<8x256xf32> to vector<8x256xbf16>
    %c0_59 = arith.constant 0 : index
    %c0_60 = arith.constant 0 : index
    %c0_61 = arith.constant 0 : index
    %133 = vector.load %arg13[%c0_59, %c0_60, %c0_61] : memref<1x256x128xbf16, #tpu.memory_space<vmem>>, vector<1x256x128xbf16>
    %134 = vector.shape_cast %133 : vector<1x256x128xbf16> to vector<256x128xbf16>
    %cst_62 = arith.constant dense<0.000000e+00> : vector<8x128xf32>
    %135 = tpu.matmul %132, %134, %cst_62 {dimension_numbers = #tpu.dot_dimension_numbers<[1], [0], [0], [1], [0, 0, 1, 1], [], []>} : vector<8x256xbf16>, vector<256x128xbf16>, vector<8x128xf32> -> vector<8x128xf32>
    %136 = arith.addf %95, %135 : vector<8x128xf32>
    %c0_63 = arith.constant 0 : index
    %c0_64 = arith.constant 0 : index
    %c0_65 = arith.constant 0 : index
    %137 = vector.load %arg14[%c0_63, %c0_64, %c0_65] : memref<1x1x128xf32, #tpu.memory_space<vmem>>, vector<1x1x128xf32>
    %138 = vector.shape_cast %137 : vector<1x1x128xf32> to vector<1x128xf32>
    %139 = vector.broadcast %138 : vector<1x128xf32> to vector<8x128xf32>
    %140 = arith.addf %136, %139 : vector<8x128xf32>
    %c0_66 = arith.constant 0 : index
    %c0_67 = arith.constant 0 : index
    %c0_68 = arith.constant 0 : index
    %141 = vector.load %arg15[%c0_66, %c0_67, %c0_68] : memref<1x8x128xf32, #tpu.memory_space<vmem>>, vector<1x8x128xf32>
    %142 = vector.shape_cast %141 : vector<1x8x128xf32> to vector<8x128xf32>
    %143 = vector.shape_cast %140 : vector<8x128xf32> to vector<1x8x128xf32>
    tpu.vector_store %arg15[%c0_66, %c0_67, %c0_68], %143 {strides = array<i32>} : memref<1x8x128xf32, #tpu.memory_space<vmem>>, vector<1x8x128xf32>,
    return
  }
  func.func @transform_0(%arg0: i32, %arg1: i32) -> (i32, i32, i32) {
    %c0_i32 = arith.constant 0 : i32
    %c0_i32_0 = arith.constant 0 : i32
    %c0_i32_1 = arith.constant 0 : i32
    return %arg0, %c0_i32, %c0_i32_0 : i32, i32, i32
  }
  func.func @transform_1(%arg0: i32, %arg1: i32) -> (i32, i32, i32) {
    %c0_i32 = arith.constant 0 : i32
    %c0_i32_0 = arith.constant 0 : i32
    %c0_i32_1 = arith.constant 0 : i32
    return %arg1, %c0_i32, %c0_i32_0 : i32, i32, i32
  }
  func.func @transform_2(%arg0: i32, %arg1: i32) -> (i32, i32, i32) {
    %c0_i32 = arith.constant 0 : i32
    %c0_i32_0 = arith.constant 0 : i32
    %c0_i32_1 = arith.constant 0 : i32
    return %arg1, %c0_i32, %c0_i32_0 : i32, i32, i32
  }
  func.func @transform_3(%arg0: i32, %arg1: i32) -> (i32, i32, i32) {
    %c0_i32 = arith.constant 0 : i32
    %c0_i32_0 = arith.constant 0 : i32
    %c0_i32_1 = arith.constant 0 : i32
    return %arg1, %c0_i32, %c0_i32_0 : i32, i32, i32
  }
  func.func @transform_4(%arg0: i32, %arg1: i32) -> (i32, i32, i32) {
    %c0_i32 = arith.constant 0 : i32
    %c0_i32_0 = arith.constant 0 : i32
    %c0_i32_1 = arith.constant 0 : i32
    return %arg1, %c0_i32, %c0_i32_0 : i32, i32, i32
  }
  func.func @transform_5(%arg0: i32, %arg1: i32) -> (i32, i32, i32) {
    %c0_i32 = arith.constant 0 : i32
    %c0_i32_0 = arith.constant 0 : i32
    %c0_i32_1 = arith.constant 0 : i32
    return %arg1, %c0_i32, %c0_i32_0 : i32, i32, i32
  }
  func.func @transform_6(%arg0: i32, %arg1: i32) -> (i32, i32, i32) {
    %c0_i32 = arith.constant 0 : i32
    %c0_i32_0 = arith.constant 0 : i32
    %c0_i32_1 = arith.constant 0 : i32
    return %arg1, %c0_i32, %c0_i32_0 : i32, i32, i32
  }
  func.func @transform_7(%arg0: i32, %arg1: i32) -> (i32, i32, i32) {
    %c0_i32 = arith.constant 0 : i32
    %c0_i32_0 = arith.constant 0 : i32
    %c0_i32_1 = arith.constant 0 : i32
    return %arg1, %c0_i32, %c0_i32_0 : i32, i32, i32
  }
  func.func @transform_8(%arg0: i32, %arg1: i32) -> (i32, i32, i32) {
    %c0_i32 = arith.constant 0 : i32
    %c0_i32_0 = arith.constant 0 : i32
    %c0_i32_1 = arith.constant 0 : i32
    return %arg1, %c0_i32, %c0_i32_0 : i32, i32, i32
  }
  func.func @transform_9(%arg0: i32, %arg1: i32) -> (i32, i32, i32) {
    %c0_i32 = arith.constant 0 : i32
    %c0_i32_0 = arith.constant 0 : i32
    %c0_i32_1 = arith.constant 0 : i32
    return %arg1, %c0_i32, %c0_i32_0 : i32, i32, i32
  }
  func.func @transform_10(%arg0: i32, %arg1: i32) -> (i32, i32, i32) {
    %c0_i32 = arith.constant 0 : i32
    %c0_i32_0 = arith.constant 0 : i32
    %c0_i32_1 = arith.constant 0 : i32
    return %arg1, %c0_i32, %c0_i32_0 : i32, i32, i32
  }
  func.func @transform_11(%arg0: i32, %arg1: i32) -> (i32, i32, i32) {
    %c0_i32 = arith.constant 0 : i32
    %c0_i32_0 = arith.constant 0 : i32
    %c0_i32_1 = arith.constant 0 : i32
    return %arg1, %c0_i32, %c0_i32_0 : i32, i32, i32
  }
  func.func @transform_12(%arg0: i32, %arg1: i32) -> (i32, i32, i32) {
    %c0_i32 = arith.constant 0 : i32
    %c0_i32_0 = arith.constant 0 : i32
    %c0_i32_1 = arith.constant 0 : i32
    return %arg1, %c0_i32, %c0_i32_0 : i32, i32, i32
  }
  func.func @transform_13(%arg0: i32, %arg1: i32) -> (i32, i32, i32) {
    %c0_i32 = arith.constant 0 : i32
    %c0_i32_0 = arith.constant 0 : i32
    %c0_i32_1 = arith.constant 0 : i32
    return %arg0, %c0_i32, %c0_i32_0 : i32, i32, i32
  }
}

module attributes {stable_mosaic.version = 11 : i64} {
  func.func @_head_emergence_kernel(%arg0: i32, %arg1: memref<2x128xf32, #tpu.memory_space<vmem>>, %arg2: memref<2x128xf32, #tpu.memory_space<vmem>>, %arg3: memref<1x128xf32, #tpu.memory_space<vmem>>, %arg4: memref<1x128xf32, #tpu.memory_space<vmem>>, %arg5: memref<128x128xbf16, #tpu.memory_space<vmem>>, %arg6: memref<1x128xf32, #tpu.memory_space<vmem>>, %arg7: memref<1x128xf32, #tpu.memory_space<vmem>>, %arg8: memref<128x128xbf16, #tpu.memory_space<vmem>>, %arg9: memref<128x128xbf16, #tpu.memory_space<vmem>>, %arg10: memref<128x128xbf16, #tpu.memory_space<vmem>>, %arg11: memref<128x128xbf16, #tpu.memory_space<vmem>>, %arg12: memref<128x128xbf16, #tpu.memory_space<vmem>>, %arg13: memref<2x128xf32, #tpu.memory_space<vmem>>, %arg14: memref<2x128xf32, #tpu.memory_space<vmem>>, %arg15: memref<2x128xf32, #tpu.memory_space<vmem>>, %arg16: memref<2x128xf32, #tpu.memory_space<vmem>>, %arg17: memref<2x128xf32, #tpu.memory_space<vmem>>) attributes {dimension_semantics = [#tpu.dimension_semantics<arbitrary>], iteration_bounds = array<i64: 1>, scalar_prefetch = 0 : i64, scratch_operands = 0 : i64, tpu.core_type = #tpu.core_type<tc>, window_params = [{pipeline_mode = #tpu.pipeline_mode<synchronous>, transform_indices = @transform_0, window_bounds = array<i64: 2, 128>}, {pipeline_mode = #tpu.pipeline_mode<synchronous>, transform_indices = @transform_1, window_bounds = array<i64: 2, 128>}, {pipeline_mode = #tpu.pipeline_mode<synchronous>, transform_indices = @transform_2, window_bounds = array<i64: 1, 128>}, {pipeline_mode = #tpu.pipeline_mode<synchronous>, transform_indices = @transform_3, window_bounds = array<i64: 1, 128>}, {pipeline_mode = #tpu.pipeline_mode<synchronous>, transform_indices = @transform_4, window_bounds = array<i64: 128, 128>}, {pipeline_mode = #tpu.pipeline_mode<synchronous>, transform_indices = @transform_5, window_bounds = array<i64: 1, 128>}, {pipeline_mode = #tpu.pipeline_mode<synchronous>, transform_indices = @transform_6, window_bounds = array<i64: 1, 128>}, {pipeline_mode = #tpu.pipeline_mode<synchronous>, transform_indices = @transform_7, window_bounds = array<i64: 128, 128>}, {pipeline_mode = #tpu.pipeline_mode<synchronous>, transform_indices = @transform_8, window_bounds = array<i64: 128, 128>}, {pipeline_mode = #tpu.pipeline_mode<synchronous>, transform_indices = @transform_9, window_bounds = array<i64: 128, 128>}, {pipeline_mode = #tpu.pipeline_mode<synchronous>, transform_indices = @transform_10, window_bounds = array<i64: 128, 128>}, {pipeline_mode = #tpu.pipeline_mode<synchronous>, transform_indices = @transform_11, window_bounds = array<i64: 128, 128>}, {pipeline_mode = #tpu.pipeline_mode<synchronous>, transform_indices = @transform_12, window_bounds = array<i64: 2, 128>}, {pipeline_mode = #tpu.pipeline_mode<synchronous>, transform_indices = @transform_13, window_bounds = array<i64: 2, 128>}, {pipeline_mode = #tpu.pipeline_mode<synchronous>, transform_indices = @transform_14, window_bounds = array<i64: 2, 128>}, {pipeline_mode = #tpu.pipeline_mode<synchronous>, transform_indices = @transform_15, window_bounds = array<i64: 2, 128>}, {pipeline_mode = #tpu.pipeline_mode<synchronous>, transform_indices = @transform_16, window_bounds = array<i64: 2, 128>}]} {
    %c0 = arith.constant 0 : index
    %c0_0 = arith.constant 0 : index
    %0 = vector.load %arg1[%c0, %c0_0] : memref<2x128xf32, #tpu.memory_space<vmem>>, vector<2x128xf32>
    %c0_1 = arith.constant 0 : index
    %c0_2 = arith.constant 0 : index
    %1 = vector.load %arg3[%c0_1, %c0_2] : memref<1x128xf32, #tpu.memory_space<vmem>>, vector<1x128xf32>
    %c0_3 = arith.constant 0 : index
    %c0_4 = arith.constant 0 : index
    %2 = vector.load %arg4[%c0_3, %c0_4] : memref<1x128xf32, #tpu.memory_space<vmem>>, vector<1x128xf32>
    %cst = arith.constant dense<0.000000e+00> : vector<2xf32>
    %3 = vector.multi_reduction <add>, %0, %cst [1] : vector<2x128xf32> to vector<2xf32>
    %4 = vector.shape_cast %3 : vector<2xf32> to vector<2x1xf32>
    %cst_5 = arith.constant 1.280000e+02 : f32
    %5 = vector.broadcast %cst_5 : f32 to vector<2x1xf32>
    %6 = arith.divf %4, %5 : vector<2x1xf32>
    %7 = vector.broadcast %6 : vector<2x1xf32> to vector<2x128xf32>
    %8 = arith.subf %0, %7 : vector<2x128xf32>
    %9 = arith.mulf %8, %8 : vector<2x128xf32>
    %cst_6 = arith.constant dense<0.000000e+00> : vector<2xf32>
    %10 = vector.multi_reduction <add>, %9, %cst_6 [1] : vector<2x128xf32> to vector<2xf32>
    %11 = vector.shape_cast %10 : vector<2xf32> to vector<2x1xf32>
    %cst_7 = arith.constant 1.280000e+02 : f32
    %12 = vector.broadcast %cst_7 : f32 to vector<2x1xf32>
    %13 = arith.divf %11, %12 : vector<2x1xf32>
    %cst_8 = arith.constant 9.99999974E-6 : f32
    %14 = vector.broadcast %cst_8 : f32 to vector<2x1xf32>
    %15 = arith.addf %13, %14 : vector<2x1xf32>
    %16 = math.rsqrt %15 : vector<2x1xf32>
    %17 = vector.broadcast %16 : vector<2x1xf32> to vector<2x128xf32>
    %18 = arith.mulf %8, %17 : vector<2x128xf32>
    %19 = vector.broadcast %1 : vector<1x128xf32> to vector<2x128xf32>
    %20 = arith.mulf %18, %19 : vector<2x128xf32>
    %21 = vector.broadcast %2 : vector<1x128xf32> to vector<2x128xf32>
    %22 = arith.addf %20, %21 : vector<2x128xf32>
    %c0_9 = arith.constant 0 : index
    %c0_10 = arith.constant 0 : index
    %23 = vector.load %arg2[%c0_9, %c0_10] : memref<2x128xf32, #tpu.memory_space<vmem>>, vector<2x128xf32>
    %c0_11 = arith.constant 0 : index
    %c0_12 = arith.constant 0 : index
    %24 = vector.load %arg6[%c0_11, %c0_12] : memref<1x128xf32, #tpu.memory_space<vmem>>, vector<1x128xf32>
    %c0_13 = arith.constant 0 : index
    %c0_14 = arith.constant 0 : index
    %25 = vector.load %arg7[%c0_13, %c0_14] : memref<1x128xf32, #tpu.memory_space<vmem>>, vector<1x128xf32>
    %cst_15 = arith.constant dense<0.000000e+00> : vector<2xf32>
    %26 = vector.multi_reduction <add>, %23, %cst_15 [1] : vector<2x128xf32> to vector<2xf32>
    %27 = vector.shape_cast %26 : vector<2xf32> to vector<2x1xf32>
    %cst_16 = arith.constant 1.280000e+02 : f32
    %28 = vector.broadcast %cst_16 : f32 to vector<2x1xf32>
    %29 = arith.divf %27, %28 : vector<2x1xf32>
    %30 = vector.broadcast %29 : vector<2x1xf32> to vector<2x128xf32>
    %31 = arith.subf %23, %30 : vector<2x128xf32>
    %32 = arith.mulf %31, %31 : vector<2x128xf32>
    %cst_17 = arith.constant dense<0.000000e+00> : vector<2xf32>
    %33 = vector.multi_reduction <add>, %32, %cst_17 [1] : vector<2x128xf32> to vector<2xf32>
    %34 = vector.shape_cast %33 : vector<2xf32> to vector<2x1xf32>
    %cst_18 = arith.constant 1.280000e+02 : f32
    %35 = vector.broadcast %cst_18 : f32 to vector<2x1xf32>
    %36 = arith.divf %34, %35 : vector<2x1xf32>
    %cst_19 = arith.constant 9.99999974E-6 : f32
    %37 = vector.broadcast %cst_19 : f32 to vector<2x1xf32>
    %38 = arith.addf %36, %37 : vector<2x1xf32>
    %39 = math.rsqrt %38 : vector<2x1xf32>
    %40 = vector.broadcast %39 : vector<2x1xf32> to vector<2x128xf32>
    %41 = arith.mulf %31, %40 : vector<2x128xf32>
    %42 = vector.broadcast %24 : vector<1x128xf32> to vector<2x128xf32>
    %43 = arith.mulf %41, %42 : vector<2x128xf32>
    %44 = vector.broadcast %25 : vector<1x128xf32> to vector<2x128xf32>
    %45 = arith.addf %43, %44 : vector<2x128xf32>
    %46 = arith.truncf %22 : vector<2x128xf32> to vector<2x128xbf16>
    %c0_20 = arith.constant 0 : index
    %c0_21 = arith.constant 0 : index
    %47 = vector.load %arg5[%c0_20, %c0_21] : memref<128x128xbf16, #tpu.memory_space<vmem>>, vector<128x128xbf16>
    %cst_22 = arith.constant dense<0.000000e+00> : vector<2x128xf32>
    %48 = tpu.matmul %46, %47, %cst_22 {dimension_numbers = #tpu.dot_dimension_numbers<[1], [0], [0], [1], [0, 0, 1, 1], [], []>} : vector<2x128xbf16>, vector<128x128xbf16>, vector<2x128xf32> -> vector<2x128xf32>
    %49 = arith.truncf %45 : vector<2x128xf32> to vector<2x128xbf16>
    %c0_23 = arith.constant 0 : index
    %c0_24 = arith.constant 0 : index
    %50 = vector.load %arg8[%c0_23, %c0_24] : memref<128x128xbf16, #tpu.memory_space<vmem>>, vector<128x128xbf16>
    %cst_25 = arith.constant dense<0.000000e+00> : vector<2x128xf32>
    %51 = tpu.matmul %49, %50, %cst_25 {dimension_numbers = #tpu.dot_dimension_numbers<[1], [0], [0], [1], [0, 0, 1, 1], [], []>} : vector<2x128xbf16>, vector<128x128xbf16>, vector<2x128xf32> -> vector<2x128xf32>
    %c0_26 = arith.constant 0 : index
    %c0_27 = arith.constant 0 : index
    %52 = vector.load %arg13[%c0_26, %c0_27] : memref<2x128xf32, #tpu.memory_space<vmem>>, vector<2x128xf32>
    tpu.vector_store %arg13[%c0_26, %c0_27], %48 {strides = array<i32>} : memref<2x128xf32, #tpu.memory_space<vmem>>, vector<2x128xf32>,
    %c0_28 = arith.constant 0 : index
    %c0_29 = arith.constant 0 : index
    %53 = vector.load %arg14[%c0_28, %c0_29] : memref<2x128xf32, #tpu.memory_space<vmem>>, vector<2x128xf32>
    tpu.vector_store %arg14[%c0_28, %c0_29], %51 {strides = array<i32>} : memref<2x128xf32, #tpu.memory_space<vmem>>, vector<2x128xf32>,
    %54 = arith.truncf %48 : vector<2x128xf32> to vector<2x128xbf16>
    %c0_30 = arith.constant 0 : index
    %c0_31 = arith.constant 0 : index
    %55 = vector.load %arg9[%c0_30, %c0_31] : memref<128x128xbf16, #tpu.memory_space<vmem>>, vector<128x128xbf16>
    %cst_32 = arith.constant dense<0.000000e+00> : vector<2x128xf32>
    %56 = tpu.matmul %54, %55, %cst_32 {dimension_numbers = #tpu.dot_dimension_numbers<[1], [0], [0], [1], [0, 0, 1, 1], [], []>} : vector<2x128xbf16>, vector<128x128xbf16>, vector<2x128xf32> -> vector<2x128xf32>
    %57 = arith.truncf %51 : vector<2x128xf32> to vector<2x128xbf16>
    %c0_33 = arith.constant 0 : index
    %c0_34 = arith.constant 0 : index
    %58 = vector.load %arg10[%c0_33, %c0_34] : memref<128x128xbf16, #tpu.memory_space<vmem>>, vector<128x128xbf16>
    %cst_35 = arith.constant dense<0.000000e+00> : vector<2x128xf32>
    %59 = tpu.matmul %57, %58, %cst_35 {dimension_numbers = #tpu.dot_dimension_numbers<[1], [0], [0], [1], [0, 0, 1, 1], [], []>} : vector<2x128xbf16>, vector<128x128xbf16>, vector<2x128xf32> -> vector<2x128xf32>
    %60 = arith.addf %56, %59 : vector<2x128xf32>
    %61 = math.tanh %60 : vector<2x128xf32>
    %62 = arith.truncf %61 : vector<2x128xf32> to vector<2x128xbf16>
    %c0_36 = arith.constant 0 : index
    %c0_37 = arith.constant 0 : index
    %63 = vector.load %arg11[%c0_36, %c0_37] : memref<128x128xbf16, #tpu.memory_space<vmem>>, vector<128x128xbf16>
    %cst_38 = arith.constant dense<0.000000e+00> : vector<2x128xf32>
    %64 = tpu.matmul %62, %63, %cst_38 {dimension_numbers = #tpu.dot_dimension_numbers<[1], [0], [0], [1], [0, 0, 1, 1], [], []>} : vector<2x128xbf16>, vector<128x128xbf16>, vector<2x128xf32> -> vector<2x128xf32>
    %65 = arith.addf %48, %64 : vector<2x128xf32>
    %66 = arith.truncf %61 : vector<2x128xf32> to vector<2x128xbf16>
    %c0_39 = arith.constant 0 : index
    %c0_40 = arith.constant 0 : index
    %67 = vector.load %arg12[%c0_39, %c0_40] : memref<128x128xbf16, #tpu.memory_space<vmem>>, vector<128x128xbf16>
    %cst_41 = arith.constant dense<0.000000e+00> : vector<2x128xf32>
    %68 = tpu.matmul %66, %67, %cst_41 {dimension_numbers = #tpu.dot_dimension_numbers<[1], [0], [0], [1], [0, 0, 1, 1], [], []>} : vector<2x128xbf16>, vector<128x128xbf16>, vector<2x128xf32> -> vector<2x128xf32>
    %69 = arith.addf %51, %68 : vector<2x128xf32>
    %c0_42 = arith.constant 0 : index
    %c0_43 = arith.constant 0 : index
    %70 = vector.load %arg15[%c0_42, %c0_43] : memref<2x128xf32, #tpu.memory_space<vmem>>, vector<2x128xf32>
    tpu.vector_store %arg15[%c0_42, %c0_43], %65 {strides = array<i32>} : memref<2x128xf32, #tpu.memory_space<vmem>>, vector<2x128xf32>,
    %c0_44 = arith.constant 0 : index
    %c0_45 = arith.constant 0 : index
    %71 = vector.load %arg16[%c0_44, %c0_45] : memref<2x128xf32, #tpu.memory_space<vmem>>, vector<2x128xf32>
    tpu.vector_store %arg16[%c0_44, %c0_45], %69 {strides = array<i32>} : memref<2x128xf32, #tpu.memory_space<vmem>>, vector<2x128xf32>,
    %72 = arith.addf %65, %69 : vector<2x128xf32>
    %cst_46 = arith.constant 5.000000e-01 : f32
    %73 = vector.broadcast %cst_46 : f32 to vector<2x128xf32>
    %74 = arith.mulf %73, %72 : vector<2x128xf32>
    %c0_47 = arith.constant 0 : index
    %c0_48 = arith.constant 0 : index
    %75 = vector.load %arg17[%c0_47, %c0_48] : memref<2x128xf32, #tpu.memory_space<vmem>>, vector<2x128xf32>
    tpu.vector_store %arg17[%c0_47, %c0_48], %74 {strides = array<i32>} : memref<2x128xf32, #tpu.memory_space<vmem>>, vector<2x128xf32>,
    return
  }
  func.func @transform_0(%arg0: i32) -> (i32, i32) {
    %c0_i32 = arith.constant 0 : i32
    %c0_i32_0 = arith.constant 0 : i32
    %c0_i32_1 = arith.constant 0 : i32
    return %c0_i32, %c0_i32_0 : i32, i32
  }
  func.func @transform_1(%arg0: i32) -> (i32, i32) {
    %c0_i32 = arith.constant 0 : i32
    %c0_i32_0 = arith.constant 0 : i32
    %c0_i32_1 = arith.constant 0 : i32
    return %c0_i32, %c0_i32_0 : i32, i32
  }
  func.func @transform_2(%arg0: i32) -> (i32, i32) {
    %c0_i32 = arith.constant 0 : i32
    %c0_i32_0 = arith.constant 0 : i32
    %c0_i32_1 = arith.constant 0 : i32
    return %c0_i32, %c0_i32_0 : i32, i32
  }
  func.func @transform_3(%arg0: i32) -> (i32, i32) {
    %c0_i32 = arith.constant 0 : i32
    %c0_i32_0 = arith.constant 0 : i32
    %c0_i32_1 = arith.constant 0 : i32
    return %c0_i32, %c0_i32_0 : i32, i32
  }
  func.func @transform_4(%arg0: i32) -> (i32, i32) {
    %c0_i32 = arith.constant 0 : i32
    %c0_i32_0 = arith.constant 0 : i32
    %c0_i32_1 = arith.constant 0 : i32
    return %c0_i32, %c0_i32_0 : i32, i32
  }
  func.func @transform_5(%arg0: i32) -> (i32, i32) {
    %c0_i32 = arith.constant 0 : i32
    %c0_i32_0 = arith.constant 0 : i32
    %c0_i32_1 = arith.constant 0 : i32
    return %c0_i32, %c0_i32_0 : i32, i32
  }
  func.func @transform_6(%arg0: i32) -> (i32, i32) {
    %c0_i32 = arith.constant 0 : i32
    %c0_i32_0 = arith.constant 0 : i32
    %c0_i32_1 = arith.constant 0 : i32
    return %c0_i32, %c0_i32_0 : i32, i32
  }
  func.func @transform_7(%arg0: i32) -> (i32, i32) {
    %c0_i32 = arith.constant 0 : i32
    %c0_i32_0 = arith.constant 0 : i32
    %c0_i32_1 = arith.constant 0 : i32
    return %c0_i32, %c0_i32_0 : i32, i32
  }
  func.func @transform_8(%arg0: i32) -> (i32, i32) {
    %c0_i32 = arith.constant 0 : i32
    %c0_i32_0 = arith.constant 0 : i32
    %c0_i32_1 = arith.constant 0 : i32
    return %c0_i32, %c0_i32_0 : i32, i32
  }
  func.func @transform_9(%arg0: i32) -> (i32, i32) {
    %c0_i32 = arith.constant 0 : i32
    %c0_i32_0 = arith.constant 0 : i32
    %c0_i32_1 = arith.constant 0 : i32
    return %c0_i32, %c0_i32_0 : i32, i32
  }
  func.func @transform_10(%arg0: i32) -> (i32, i32) {
    %c0_i32 = arith.constant 0 : i32
    %c0_i32_0 = arith.constant 0 : i32
    %c0_i32_1 = arith.constant 0 : i32
    return %c0_i32, %c0_i32_0 : i32, i32
  }
  func.func @transform_11(%arg0: i32) -> (i32, i32) {
    %c0_i32 = arith.constant 0 : i32
    %c0_i32_0 = arith.constant 0 : i32
    %c0_i32_1 = arith.constant 0 : i32
    return %c0_i32, %c0_i32_0 : i32, i32
  }
  func.func @transform_12(%arg0: i32) -> (i32, i32) {
    %c0_i32 = arith.constant 0 : i32
    %c0_i32_0 = arith.constant 0 : i32
    %c0_i32_1 = arith.constant 0 : i32
    return %c0_i32, %c0_i32_0 : i32, i32
  }
  func.func @transform_13(%arg0: i32) -> (i32, i32) {
    %c0_i32 = arith.constant 0 : i32
    %c0_i32_0 = arith.constant 0 : i32
    %c0_i32_1 = arith.constant 0 : i32
    return %c0_i32, %c0_i32_0 : i32, i32
  }
  func.func @transform_14(%arg0: i32) -> (i32, i32) {
    %c0_i32 = arith.constant 0 : i32
    %c0_i32_0 = arith.constant 0 : i32
    %c0_i32_1 = arith.constant 0 : i32
    return %c0_i32, %c0_i32_0 : i32, i32
  }
  func.func @transform_15(%arg0: i32) -> (i32, i32) {
    %c0_i32 = arith.constant 0 : i32
    %c0_i32_0 = arith.constant 0 : i32
    %c0_i32_1 = arith.constant 0 : i32
    return %c0_i32, %c0_i32_0 : i32, i32
  }
  func.func @transform_16(%arg0: i32) -> (i32, i32) {
    %c0_i32 = arith.constant 0 : i32
    %c0_i32_0 = arith.constant 0 : i32
    %c0_i32_1 = arith.constant 0 : i32
    return %c0_i32, %c0_i32_0 : i32, i32
  }
}

</mosaic_0001>

<bundles_post_ra>
// kernel: clip_feature_extractor_forward.5
= control target key start
LH: loop header
LB: loop body
LE: loop exit
PB: predicated region body
PF: predicated region fallthrough
CT: control target
= control target key end

     0   :  { %11 = vsyncpa [#allocation3], 0  ;;  %s659_s21 = smov 0   ;;  %s717_s0 = inlined_call_operand.vmem [shape: f32[2,4,192], index: 0, kind: input, shape index: {}]   ;;  %s718_s1 = inlined_call_operand.hbm [shape: bf16[192,128], index: 1, kind: input, shape index: {}]   ;;  %s719_s2 = inlined_call_operand.vmem [shape: f32[1,128], index: 2, kind: input, shape index: {}]   ;;  %s720_s3 = inlined_call_operand.vmem [shape: f32[5,128], index: 3, kind: input, shape index: {}]   ;;  %s721_s4 = inlined_call_operand.vmem [shape: f32[1,128], index: 4, kind: input, shape index: {}]   ;;  %s722_s5 = inlined_call_operand.vmem [shape: f32[1,128], index: 5, kind: input, shape index: {}]   ;;  %s723_s6 = inlined_call_operand.vmem [shape: f32[2,5,128], index: 6, kind: output, shape index: {}]  }
   0x1 LB: > { %s665_s22 = sadd.s32 4294967295, %s618_s21   ;;  %p519_p0 = scmp.ge.s32.totalorder %s618_s21, 1  ;;  %s618_s21 = sphi %s659_s21, %s17_s21  }
   0x2   : > { %p179_p1 = scmp.lt.s32.totalorder %s618_s21, 3  ;;  %s620_s23 = smov [#allocation2]  }
   0x3   : > { %s191_s24 = sshll.u32 %s620_s23, 4  ;;  %p553_p3 = scmp.eq.s32.totalorder %s665_s22, 0  ;;  %s192_s24 = int_to_ptr.vmem [resolvable:$true] %s191_s24 }
   0x4   : > { %p669_p2 = pnand %p519_p0, %p179_p1  ;;  %s593_s26 = scalar_lea.vmem %s192_s24, 1536 }
   0x5   : > { %p594_p7 = scmp.ne.s32.totalorder %s192_s24, %s593_s26  ;;  %p601_p10 = scmp.lt.s32.totalorder %s192_s24, %s192_s24 }
   0x6   : > { %p549_p4 = pneg %p669_p2  ;;  %p602_p11 = scmp.lt.s32.totalorder %s593_s26, %s593_s26 }
   0x8   : > { %p550_p5 = pnand %p553_p3, %p549_p4  ;;  %p603_p12 = por %p602_p11, %p601_p10 }
   0xa   : > { %p584_p6 = pneg %p550_p5 }
   0xc   : > { %p596_p8 = pnand %p594_p7, %p584_p6 }
   0xe   : > { %p597_p9 = pneg %p596_p8 }
  0x10   : > { %p604_p13 = pnand %p603_p12, %p597_p9 }
  0x12   : > { %607 = shalt.err (!%p604_p13)
}
  0x13   : > { %s621_s27 = smov 64   ;;  %s622_s28 = smov 4  }
  0x14   : > { %552 = dma.hbm_to_vmem [thread:$0]  (!%p550_p5), %s718_s1, 1536, %s192_s24, [#allocation3], %s621_s27, %s621_s27, %s622_s28  }
  0x15   : > { %227 = sbr.rel (%p669_p2) target bundleno = 583 (0x247), region = 44 }
  0x1a   : > { %613 = dma.done.wait (%p553_p3), [#allocation3], 1536  }
  0x1b   : > { %615 = vsyncadd (%p553_p3), [#allocation3], 4294965760  ;;  %v623_v0 = vmov 0   ;;  %p256_p0 = scmp.lt.s32.totalorder %s665_s22, 1  ;;  %v567_v1 = vld [vmem:[#allocation2 + $0x38] sm:$0xff]   ;;  %v568_v2 = vld [vmem:[#allocation2 + $0x30] sm:$0xff]  }
  0x1c   : > { %372 = vmatprep.subr.bf16.mxu0 %v623_v0  ;;  %v569_v3 = vld [vmem:[#allocation2 + $0x28] sm:$0xff]   ;;  %v570_v4 = vld [vmem:[#allocation2 + $0x20] sm:$0xff]   ;;  %v571_v7 = vld [vmem:[#allocation2 + $0x18] sm:$0xff]   ;;  %vm368_vm0 = vcmask 523264   ;;  %vm416_vm1 = vcmask 1040384   ;;  %vm422_vm2 = vcmask 1044480  }
  0x1d   : > { %373 = vmatpush1.bf16.msra.mxu0 %v567_v1  ;;  %s726_s22 = smov (!%p256_p0, %s665_s22), 1  ;;  %v572_v9 = vld [vmem:[#allocation2 + $0x10] sm:$0xff]   ;;  %v573_v10 = vld [vmem:[#allocation2 + $0x8] sm:$0xff]   ;;  %v574_v11 = vld [vmem:[#allocation2] sm:$0xff]  }
  0x1e   : > { %374 = vmatprep.subr.bf16.mxu0 %v623_v0  ;;  %s544_s7 = sshll.u32 %s726_s22, 3  ;;  %v575_v12 = vld [vmem:[#allocation2 + $0x58] sm:$0xff]   ;;  %v576_v13 = vld [vmem:[#allocation2 + $0x50] sm:$0xff]   ;;  %v577_v14 = vld [vmem:[#allocation2 + $0x48] sm:$0xff]  }
  0x1f   : > { %s260_s10 = scalar_lea.vmem %s717_s0, %s544_s7  ;;  %v578_v15 = vld [vmem:[#allocation2 + $0x40] sm:$0xff]   ;;  %s264_s23 = scalar_lea.vmem %s723_s6, %s544_s7 }
  0x20   : > { %v266_v5 = vld [vmem:[%s260_s10] sm:$0xff] }
  0x21   : > { %375 = vmatpush1.bf16.msra.mxu0 %v568_v2  ;;  %v268_v6 = vcombine.high %v266_v5, %v266_v5  ;;  %v270_v16 = vpack.c.bf16 %v266_v5, %v266_v5  ;;  %v412_v18 = vld [vmem:[%s719_s2] sm:$0x1] }
  0x22   : > { %376 = vmatprep.subr.bf16.mxu0 %v623_v0  ;;  %v418_v20 = vld [vmem:[%s720_s3] sm:$0x1f] }
  0x23   : > { %v271_v8 = vpack.c.bf16 %v268_v6, %v268_v6  ;;  %v540_v36 = vld [vmem:[%s721_s4] ss:$0 sm:$0xff] }
  0x24   : > { %v541_v38 = vld [vmem:[%s722_s5] ss:$0 sm:$0xff] }
  0x25   : > { %377 = vmatpush1.bf16.msra.mxu0 %v569_v3  ;;  %539 = vmatprep.mubr.msk.bf16.mxu0 %vm368_vm0, %v271_v8 }
  0x26   : > { %378 = vmatprep.subr.bf16.mxu0 %v623_v0 }
  0x29   : > { %379 = vmatpush1.bf16.msra.mxu0 %v570_v4 }
  0x2a   : > { %380 = vmatprep.subr.bf16.mxu0 %v623_v0 }
  0x2d   : > { %381 = vmatpush1.bf16.msra.mxu0 %v571_v7 }
  0x2e   : > { %382 = vmatprep.subr.bf16.mxu0 %v623_v0 }
  0x31   : > { %383 = vmatpush1.bf16.msra.mxu0 %v572_v9 }
  0x32   : > { %384 = vmatprep.subr.bf16.mxu0 %v623_v0 }
  0x35   : > { %385 = vmatpush1.bf16.msra.mxu0 %v573_v10 }
  0x36   : > { %386 = vmatprep.subr.bf16.mxu0 %v623_v0 }
  0x39   : > { %387 = vmatpush1.bf16.msra.mxu0 %v574_v11 }
  0x3a   : > { %396 = vmatprep.subr.bf16.mxu0 %v623_v0 }
  0x3d   : > { %397 = vmatpush2.bf16.msra.mxu0 %v575_v12 }
  0x3e   : > { %398 = vmatprep.subr.bf16.mxu0 %v623_v0 }
  0x41   : > { %399 = vmatpush2.bf16.msra.mxu0 %v576_v13 }
  0x42   : > { %400 = vmatprep.subr.bf16.mxu0 %v623_v0 }
  0x45   : > { %401 = vmatpush2.bf16.msra.mxu0 %v577_v14 }
  0x46   : > { %402 = vmatprep.subr.bf16.mxu0 %v623_v0 }
  0x49   : > { %403 = vmatpush2.bf16.msra.mxu0 %v578_v15 }
  0x4c   : > { %405 = vmatmul.mubr.bf16.vlgmr.msra.gmra.mxu0 %v270_v16 }
 0x10c   : > { %v406_v17 = vpop.f32.mrf.mxu0 }
 0x10d   : > { %v414_v19 = vrot.slane %v406_v17, 7 }
 0x10e   : > { %v408_v21 = vpop.f32.mrf.mxu0 }
 0x10f   : > { %v417_v22 = vsel %vm416_vm1, %v412_v18, %v414_v19 }
 0x110   : > { %v409_v23 = vpop.f32.mrf.mxu0  ;;  %v419_v24 = vadd.f32 %v418_v20, %v417_v22 }
 0x112   : > { %v410_v25 = vpop.f32.mrf.mxu0  ;;  %v423_v26 = vsel %vm422_vm2, %v419_v24, 0.0 }
 0x113   : > { %424 = vadd.xlane.f32.xlu0 %v423_v26 }
 0x19c   : > { %v425_v27 = vpop.xlane.xlu0 %424 }
 0x19d   : > { %v427_v28 = vmul.f32 0.0078125, %v425_v27 }
 0x19f   : > { %v428_v29 = vsub.f32 %v419_v24, %v427_v28 }
 0x1a1   : > { %v429_v30 = vmul.f32 %v428_v29, %v428_v29 }
 0x1a3   : > { %v430_v31 = vsel %vm422_vm2, %v429_v30, 0.0 }
 0x1a4   : > { %431 = vadd.xlane.f32.xlu0 %v430_v31 }
 0x22d   : > { %v432_v32 = vpop.xlane.xlu0 %431 }
 0x22e   : > { %v433_v33 = vmul.f32 0.0078125, %v432_v32 }
 0x230   : > { %v434_v34 = vadd.f32 1e-05, %v433_v33 }
 0x232   : > { %580 = vrsqrt.f32 %v434_v34 }
 0x23f   : > { %v581_v35 = vpop.eup %580 }
 0x240   : > { %v436_v37 = vmul.f32 %v581_v35, %v428_v29 }
 0x242   : > { %v443_v39 = vmul.f32 %v540_v36, %v436_v37 }
 0x244   : > { %v450_v40 = vadd.f32 %v541_v38, %v443_v39 }
 0x246   : > { %451 = vst [vmem:[%s264_s23] sm:$0x1f] %v450_v40 }
 0x247 PF: > { %s17_s21 = sadd.s32 1, %s618_s21  }
 0x248   : > { %p14_p1 = scmp.ge.s32.totalorder %s17_s21, 4  }
 0x24a   :  { %16 = sbr.rel (!%p14_p1) target bundleno = 1 (0x1), region = 79 }
 0x24f   :  { %471 = vsyncpa [#allocation3], 1 }
 0x250   :  { %473 = vsyncpa [#allocation3 + $0x1], 1 }

// kernel: clip_feature_extractor_forward.7
= control target key start
LH: loop header
LB: loop body
LE: loop exit
PB: predicated region body
PF: predicated region fallthrough
CT: control target
= control target key end

     0   :  { %s1569_s0 = inlined_call_operand.vmem [shape: f32[2,128], index: 0, kind: input, shape index: {}]   ;;  %s1570_s1 = inlined_call_operand.vmem [shape: f32[2,128], index: 1, kind: input, shape index: {}]   ;;  %s1571_s2 = inlined_call_operand.vmem [shape: f32[1,128], index: 2, kind: input, shape index: {}]   ;;  %s1572_s3 = inlined_call_operand.vmem [shape: f32[1,128], index: 3, kind: input, shape index: {}]   ;;  %s1573_s4 = inlined_call_operand.vmem [shape: bf16[128,128], index: 4, kind: input, shape index: {}]   ;;  %s1574_s5 = inlined_call_operand.vmem [shape: f32[1,128], index: 5, kind: input, shape index: {}]   ;;  %s1575_s6 = inlined_call_operand.vmem [shape: f32[1,128], index: 6, kind: input, shape index: {}]   ;;  %s1576_s7 = inlined_call_operand.vmem [shape: bf16[128,128], index: 7, kind: input, shape index: {}]   ;;  %s1577_s8 = inlined_call_operand.vmem [shape: bf16[128,128], index: 8, kind: input, shape index: {}]   ;;  %s1578_s9 = inlined_call_operand.vmem [shape: bf16[128,128], index: 9, kind: input, shape index: {}]   ;;  %s1579_s10 = inlined_call_operand.vmem [shape: bf16[128,128], index: 10, kind: input, shape index: {}]   ;;  %s1580_s11 = inlined_call_operand.vmem [shape: bf16[128,128], index: 11, kind: input, shape index: {}]   ;;  %s1581_s12 = inlined_call_operand.hbm [shape: f32[2,128], index: 12, kind: output, shape index: {0}]   ;;  %s1582_s13 = inlined_call_operand.hbm [shape: f32[2,128], index: 13, kind: output, shape index: {1}]   ;;  %s1583_s14 = inlined_call_operand.hbm [shape: f32[2,128], index: 14, kind: output, shape index: {2}]   ;;  %s1584_s15 = inlined_call_operand.hbm [shape: f32[2,128], index: 15, kind: output, shape index: {3}]   ;;  %s1585_s16 = inlined_call_operand.hbm [shape: f32[2,128], index: 16, kind: output, shape index: {4}]  }
   0x1   :  { %1586 = sst [smem:[#allocation13_spill]] %s1569_s0 }
   0x2   :  { %22 = vsyncpa [#allocation3], 0 }
   0x3   :  { %23 = vsyncpa [#allocation5], 0  ;;  %s1587_s23 = sld [smem:[#allocation13_spill]]  ;;  %vm53_vm0 = vcmask 1041408   ;;  %v82_v1 = vld [vmem:[%s1570_s1] sm:$0x3] }
   0x4   :  { %v85_v3 = vsel %vm53_vm0, %v82_v1, 0.0  ;;  %v1052_v4 = vld [vmem:[%s1573_s4 + $0x38] sm:$0xff]   ;;  %v1053_v5 = vld [vmem:[%s1573_s4 + $0x30] sm:$0xff]   ;;  %v1212_v7 = vmov 0.0  }
   0x5   :  { %v1054_v6 = vld [vmem:[%s1576_s7 + $0x38] sm:$0xff]   ;;  %925 = vmatprep.subr.bf16.mxu0 %v1212_v7  ;;  %945 = vmatprep.subr.bf16.mxu1 %v1212_v7 }
   0x6   :  { %926 = vmatpush3.bf16.msra.mxu0 %v1052_v4  ;;  %946 = vmatpush3.bf16.msra.mxu1 %v1054_v6 }
   0x7   :  { %927 = vmatprep.subr.bf16.mxu0 %v1212_v7  ;;  %947 = vmatprep.subr.bf16.mxu1 %v1212_v7 }
   0x9   :  { %v50_v0 = vld [vmem:[%s1587_s23] sm:$0x3] }
   0xa   :  { %v54_v2 = vsel %vm53_vm0, %v50_v0, 0.0  ;;  %928 = vmatpush3.bf16.msra.mxu0 %v1053_v5 }
   0xb   :  { %55 = vadd.xlane.f32.xlu0 %v54_v2  ;;  %929 = vmatprep.subr.bf16.mxu0 %v1212_v7 }
   0xf   :  { %86 = vadd.xlane.f32.xlu0 %v85_v3 }
  0x10   :  { %24 = vsyncpa [#allocation8], 0  ;;  %v1055_v18 = vld [vmem:[%s1573_s4 + $0x28] sm:$0xff]   ;;  %v1056_v19 = vld [vmem:[%s1576_s7 + $0x30] sm:$0xff]   ;;  %vm1213_vm1 = vmmov 0  }
  0x11   :  { %930 = vmatpush3.bf16.msra.mxu0 %v1055_v18  ;;  %948 = vmatpush3.bf16.msra.mxu1 %v1056_v19  ;;  %v1057_v20 = vld [vmem:[%s1573_s4 + $0x20] sm:$0xff]   ;;  %v1058_v21 = vld [vmem:[%s1576_s7 + $0x28] sm:$0xff]   ;;  %v1059_v22 = vld [vmem:[%s1573_s4 + $0x18] sm:$0xff]  }
  0x12   :  { %931 = vmatprep.subr.bf16.mxu0 %v1212_v7  ;;  %949 = vmatprep.subr.bf16.mxu1 %v1212_v7  ;;  %v1060_v23 = vld [vmem:[%s1576_s7 + $0x20] sm:$0xff]   ;;  %v1061_v24 = vld [vmem:[%s1573_s4 + $0x10] sm:$0xff]   ;;  %v1062_v25 = vld [vmem:[%s1576_s7 + $0x18] sm:$0xff]  }
  0x13   :  { %941 = vmatprep.mubr.msk.bf16.mxu0 %vm1213_vm1, %v1212_v7  ;;  %961 = vmatprep.mubr.msk.bf16.mxu1 %vm1213_vm1, %v1212_v7  ;;  %v1063_v26 = vld [vmem:[%s1573_s4 + $0x8] sm:$0xff]   ;;  %v1064_v27 = vld [vmem:[%s1576_s7 + $0x10] sm:$0xff]   ;;  %v1065_v28 = vld [vmem:[%s1573_s4] sm:$0xff]  }
  0x14   :  { %v1066_v29 = vld [vmem:[%s1576_s7 + $0x8] sm:$0xff]   ;;  %v1067_v30 = vld [vmem:[%s1576_s7] sm:$0xff]   ;;  %v1069_v47 = vld [vmem:[%s1578_s9 + $0x38] sm:$0xff]  }
  0x15   :  { %932 = vmatpush3.bf16.msra.mxu0 %v1057_v20  ;;  %950 = vmatpush3.bf16.msra.mxu1 %v1058_v21  ;;  %v819_v38 = vld [vmem:[%s1571_s2] ss:$0 sm:$0xff]  ;;  %v1068_v51 = vld [vmem:[%s1577_s8 + $0x38] sm:$0xff]   ;;  %v1071_v52 = vld [vmem:[%s1578_s9 + $0x30] sm:$0xff]  }
  0x16   :  { %933 = vmatprep.subr.bf16.mxu0 %v1212_v7  ;;  %951 = vmatprep.subr.bf16.mxu1 %v1212_v7  ;;  %v820_v40 = vld [vmem:[%s1572_s3] ss:$0 sm:$0xff]  ;;  %v1070_v54 = vld [vmem:[%s1577_s8 + $0x30] sm:$0xff]   ;;  %v1073_v55 = vld [vmem:[%s1578_s9 + $0x28] sm:$0xff]  }
  0x17   :  { %v821_v43 = vld [vmem:[%s1574_s5] ss:$0 sm:$0xff]  ;;  %v1072_v56 = vld [vmem:[%s1577_s8 + $0x28] sm:$0xff]   ;;  %v1077_v59 = vld [vmem:[%s1578_s9 + $0x18] sm:$0xff]  }
  0x18   :  { %v822_v46 = vld [vmem:[%s1575_s6] ss:$0 sm:$0xff]  ;;  %v1076_v60 = vld [vmem:[%s1577_s8 + $0x18] sm:$0xff]   ;;  %v1079_v61 = vld [vmem:[%s1578_s9 + $0x10] sm:$0xff]  }
  0x19   :  { %934 = vmatpush3.bf16.msra.mxu0 %v1059_v22  ;;  %952 = vmatpush3.bf16.msra.mxu1 %v1060_v23  ;;  %v1075_v57 = vld [vmem:[%s1578_s9 + $0x20] sm:$0xff]   ;;  %v1078_v62 = vld [vmem:[%s1577_s8 + $0x10] sm:$0xff]   ;;  %v1080_v63 = vld [vmem:[%s1577_s8 + $0x8] sm:$0xff]  }
  0x1a   :  { %935 = vmatprep.subr.bf16.mxu0 %v1212_v7  ;;  %953 = vmatprep.subr.bf16.mxu1 %v1212_v7  ;;  %v1074_v58 = vld [vmem:[%s1577_s8 + $0x20] sm:$0xff]   ;;  %v1085_v4 = vld [vmem:[%s1580_s11 + $0x38] sm:$0xff]   ;;  %v1088_v18 = vld [vmem:[%s1579_s10 + $0x28] sm:$0xff]  }
  0x1b   :  { %v1083_v2 = vld [vmem:[%s1578_s9] sm:$0xff]   ;;  %v1089_v19 = vld [vmem:[%s1580_s11 + $0x28] sm:$0xff]   ;;  %v1092_v22 = vld [vmem:[%s1579_s10 + $0x18] sm:$0xff]  }
  0x1c   :  { %v1090_v20 = vld [vmem:[%s1579_s10 + $0x20] sm:$0xff]   ;;  %v1093_v23 = vld [vmem:[%s1580_s11 + $0x18] sm:$0xff]  }
  0x1d   :  { %936 = vmatpush3.bf16.msra.mxu0 %v1061_v24  ;;  %954 = vmatpush3.bf16.msra.mxu1 %v1062_v25  ;;  %v1091_v21 = vld [vmem:[%s1580_s11 + $0x20] sm:$0xff]   ;;  %v1094_v24 = vld [vmem:[%s1579_s10 + $0x10] sm:$0xff]  }
  0x1e   :  { %937 = vmatprep.subr.bf16.mxu0 %v1212_v7  ;;  %955 = vmatprep.subr.bf16.mxu1 %v1212_v7  ;;  %v1095_v25 = vld [vmem:[%s1580_s11 + $0x10] sm:$0xff]  }
  0x21   :  { %938 = vmatpush3.bf16.msra.mxu0 %v1063_v26  ;;  %956 = vmatpush3.bf16.msra.mxu1 %v1064_v27  ;;  %v1096_v26 = vld [vmem:[%s1579_s10 + $0x8] sm:$0xff]  }
  0x22   :  { %939 = vmatprep.subr.bf16.mxu0 %v1212_v7  ;;  %957 = vmatprep.subr.bf16.mxu1 %v1212_v7  ;;  %v1097_v27 = vld [vmem:[%s1580_s11 + $0x8] sm:$0xff]  }
  0x25   :  { %940 = vmatpush3.bf16.msra.mxu0 %v1065_v28  ;;  %958 = vmatpush3.bf16.msra.mxu1 %v1066_v29  ;;  %v1098_v28 = vld [vmem:[%s1579_s10] sm:$0xff]  }
  0x26   :  { %959 = vmatprep.subr.bf16.mxu1 %v1212_v7  ;;  %965 = vmatprep.subr.bf16.mxu0 %v1212_v7  ;;  %v1099_v29 = vld [vmem:[%s1580_s11] sm:$0xff]  }
  0x29   :  { %960 = vmatpush3.bf16.msra.mxu1 %v1067_v30 }
  0x2a   :  { %985 = vmatprep.subr.bf16.mxu1 %v1212_v7 }
  0x94   :  { %v56_v8 = vpop.xlane.xlu0 %55 }
  0x95   :  { %v58_v9 = vmul.f32 0.0078125, %v56_v8 }
  0x97   :  { %v59_v10 = vsub.f32 %v50_v0, %v58_v9  ;;  %v1081_v0 = vld [vmem:[%s1578_s9 + $0x8] sm:$0xff]  }
  0x98   :  { %v87_v11 = vpop.xlane.xlu0 %86 }
  0x99   :  { %v88_v12 = vmul.f32 0.0078125, %v87_v11  ;;  %v60_v13 = vmul.f32 %v59_v10, %v59_v10  ;;  %v1087_v11 = vld [vmem:[%s1580_s11 + $0x30] sm:$0xff]  }
  0x9b   :  { %v1326_v14 = vsub.f32 %v82_v1, %v88_v12  ;;  %v61_v15 = vsel %vm53_vm0, %v60_v13, 0.0  ;;  %v1082_v1 = vld [vmem:[%s1577_s8] sm:$0xff]  }
  0x9c   :  { %62 = vadd.xlane.f32.xlu1 %v61_v15 }
  0x9d   :  { %v90_v16 = vmul.f32 %v1326_v14, %v1326_v14 }
  0x9f   :  { %v91_v17 = vsel %vm53_vm0, %v90_v16, 0.0  ;;  %v1086_v16 = vld [vmem:[%s1579_s10 + $0x30] sm:$0xff]  }
  0xa0   :  { %92 = vadd.xlane.f32.xlu1 %v91_v17 }
 0x125   :  { %v63_v31 = vpop.xlane.xlu1 %62 }
 0x126   :  { %v64_v32 = vmul.f32 0.0078125, %v63_v31 }
 0x128   :  { %v65_v33 = vadd.f32 1e-05, %v64_v32 }
 0x129   :  { %v93_v34 = vpop.xlane.xlu1 %92 }
 0x12a   :  { %1100 = vrsqrt.f32 %v65_v33  ;;  %v94_v35 = vmul.f32 0.0078125, %v93_v34 }
 0x12c   :  { %v95_v36 = vadd.f32 1e-05, %v94_v35 }
 0x12e   :  { %1102 = vrsqrt.f32 %v95_v36 }
 0x137   :  { %v1101_v37 = vpop.eup %1100 }
 0x138   :  { %v67_v39 = vmul.f32 %v1101_v37, %v59_v10  ;;  %v1084_v10 = vld [vmem:[%s1579_s10 + $0x38] sm:$0xff]   ;;  %s1214_s10 = smov [#allocation4]  }
 0x139   :  { %s767_s27 = sshll.u32 %s1214_s10, 4  ;;  %s768_s27 = int_to_ptr.vmem [resolvable:$true] %s767_s27 }
 0x13a   :  { %v74_v41 = vmul.f32 %v819_v38, %v67_v39  ;;  %s1106_s11 = scalar_lea.vmem %s768_s27, 32  ;;  %p1111_p1 = scmp.lt.s32.totalorder %s768_s27, %s768_s27 }
 0x13b   :  { %v1103_v42 = vpop.eup %1102  ;;  %p1107_p0 = scmp.ne.s32.totalorder %s768_s27, %s1106_s11  ;;  %p1112_p2 = scmp.lt.s32.totalorder %s1106_s11, %s1106_s11 }
 0x13c   :  { %v81_v44 = vadd.f32 %v820_v40, %v74_v41  ;;  %v97_v45 = vmul.f32 %v1103_v42, %v1326_v14 }
 0x13d   :  { %p1113_p3 = por %p1112_p2, %p1111_p1 }
 0x13e   :  { %v112_v48 = vpack.c.bf16 %v81_v44, %v81_v44  ;;  %v104_v49 = vmul.f32 %v821_v43, %v97_v45 }
 0x13f   :  { %p1114_p4 = pnand %p1113_p3, %p1107_p0 }
 0x140   :  { %942 = vmatmul.mubr.bf16.vlgmr.msra.gmra.mxu0 %v112_v48  ;;  %v111_v50 = vadd.f32 %v822_v46, %v104_v49 }
 0x141   :  { %966 = vmatpush3.bf16.msra.mxu0 %v1069_v47  ;;  %981 = vmatprep.mubr.msk.bf16.mxu0 %vm1213_vm1, %v1212_v7 }
 0x142   :  { %v217_v53 = vpack.c.bf16 %v111_v50, %v111_v50  ;;  %967 = vmatprep.subr.bf16.mxu0 %v1212_v7 }
 0x144   :  { %962 = vmatmul.mubr.bf16.vlgmr.msra.gmra.mxu1 %v217_v53 }
 0x145   :  { %986 = vmatpush3.bf16.msra.mxu1 %v1068_v51  ;;  %968 = vmatpush3.bf16.msra.mxu0 %v1071_v52 }
 0x146   :  { %987 = vmatprep.subr.bf16.mxu1 %v1212_v7  ;;  %969 = vmatprep.subr.bf16.mxu0 %v1212_v7 }
 0x147   :  { %1001 = vmatprep.mubr.msk.bf16.mxu1 %vm1213_vm1, %v1212_v7 }
 0x149   :  { %988 = vmatpush3.bf16.msra.mxu1 %v1070_v54  ;;  %970 = vmatpush3.bf16.msra.mxu0 %v1073_v55 }
 0x14a   :  { %989 = vmatprep.subr.bf16.mxu1 %v1212_v7  ;;  %971 = vmatprep.subr.bf16.mxu0 %v1212_v7 }
 0x14d   :  { %990 = vmatpush3.bf16.msra.mxu1 %v1072_v56  ;;  %972 = vmatpush3.bf16.msra.mxu0 %v1075_v57 }
 0x14e   :  { %991 = vmatprep.subr.bf16.mxu1 %v1212_v7  ;;  %973 = vmatprep.subr.bf16.mxu0 %v1212_v7 }
 0x151   :  { %992 = vmatpush3.bf16.msra.mxu1 %v1074_v58  ;;  %974 = vmatpush3.bf16.msra.mxu0 %v1077_v59 }
 0x152   :  { %993 = vmatprep.subr.bf16.mxu1 %v1212_v7  ;;  %975 = vmatprep.subr.bf16.mxu0 %v1212_v7 }
 0x155   :  { %994 = vmatpush3.bf16.msra.mxu1 %v1076_v60  ;;  %976 = vmatpush3.bf16.msra.mxu0 %v1079_v61 }
 0x156   :  { %995 = vmatprep.subr.bf16.mxu1 %v1212_v7  ;;  %977 = vmatprep.subr.bf16.mxu0 %v1212_v7 }
 0x159   :  { %996 = vmatpush3.bf16.msra.mxu1 %v1078_v62  ;;  %978 = vmatpush3.bf16.msra.mxu0 %v1081_v0 }
 0x15a   :  { %997 = vmatprep.subr.bf16.mxu1 %v1212_v7  ;;  %979 = vmatprep.subr.bf16.mxu0 %v1212_v7 }
 0x15d   :  { %998 = vmatpush3.bf16.msra.mxu1 %v1080_v63  ;;  %980 = vmatpush3.bf16.msra.mxu0 %v1083_v2 }
 0x15e   :  { %999 = vmatprep.subr.bf16.mxu1 %v1212_v7  ;;  %1005 = vmatprep.subr.bf16.mxu0 %v1212_v7 }
 0x161   :  { %1000 = vmatpush3.bf16.msra.mxu1 %v1082_v1 }
 0x162   :  { %1025 = vmatprep.subr.bf16.mxu1 %v1212_v7 }
 0x200   :  { %v1469_v3 = vpop.f32.mrf.mxu0 }
 0x201   :  { %v324_v5 = vpack.c.bf16 %v1469_v3, %v1469_v3  ;;  %322 = vst [vmem:[#allocation2] sm:$0x3] %v1469_v3 }
 0x202   :  { %v943_v6 = vpop.f32.mrf.mxu0 }
 0x203   :  { %1002 = vmatmul.mubr.bf16.vlgmr.msra.gmra.mxu1 %v324_v5 }
 0x204   :  { %v214_v8 = vpop.f32.mrf.mxu0  ;;  %v1477_v9 = vpop.f32.mrf.mxu1  ;;  %1026 = vmatpush3.bf16.msra.mxu1 %v1085_v4  ;;  %1041 = vmatprep.mubr.msk.bf16.mxu1 %vm1213_vm1, %v1212_v7 }
 0x205   :  { %v341_v12 = vpack.c.bf16 %v1477_v9, %v1477_v9  ;;  %323 = vst [vmem:[#allocation4] sm:$0x3] %v1477_v9  ;;  %1027 = vmatprep.subr.bf16.mxu1 %v1212_v7 }
 0x206   :  { %v944_v13 = vpop.f32.mrf.mxu0  ;;  %v963_v14 = vpop.f32.mrf.mxu1 }
 0x207   :  { %982 = vmatmul.mubr.bf16.vlgmr.msra.gmra.mxu0 %v341_v12 }
 0x208   :  { %v319_v15 = vpop.f32.mrf.mxu1  ;;  %1006 = vmatpush3.bf16.msra.mxu0 %v1084_v10  ;;  %1028 = vmatpush3.bf16.msra.mxu1 %v1087_v11 }
 0x209   :  { %1007 = vmatprep.subr.bf16.mxu0 %v1212_v7  ;;  %1029 = vmatprep.subr.bf16.mxu1 %v1212_v7 }
 0x20a   :  { %v964_v17 = vpop.f32.mrf.mxu1  ;;  %1021 = vmatprep.mubr.msk.bf16.mxu0 %vm1213_vm1, %v1212_v7 }
 0x20c   :  { %1008 = vmatpush3.bf16.msra.mxu0 %v1086_v16  ;;  %1030 = vmatpush3.bf16.msra.mxu1 %v1089_v19 }
 0x20d   :  { %1009 = vmatprep.subr.bf16.mxu0 %v1212_v7  ;;  %1031 = vmatprep.subr.bf16.mxu1 %v1212_v7 }
 0x210   :  { %1010 = vmatpush3.bf16.msra.mxu0 %v1088_v18  ;;  %1032 = vmatpush3.bf16.msra.mxu1 %v1091_v21 }
 0x211   :  { %1011 = vmatprep.subr.bf16.mxu0 %v1212_v7  ;;  %1033 = vmatprep.subr.bf16.mxu1 %v1212_v7 }
 0x214   :  { %1012 = vmatpush3.bf16.msra.mxu0 %v1090_v20  ;;  %1034 = vmatpush3.bf16.msra.mxu1 %v1093_v23 }
 0x215   :  { %1013 = vmatprep.subr.bf16.mxu0 %v1212_v7  ;;  %1035 = vmatprep.subr.bf16.mxu1 %v1212_v7 }
 0x218   :  { %1014 = vmatpush3.bf16.msra.mxu0 %v1092_v22  ;;  %1036 = vmatpush3.bf16.msra.mxu1 %v1095_v25 }
 0x219   :  { %1015 = vmatprep.subr.bf16.mxu0 %v1212_v7  ;;  %1037 = vmatprep.subr.bf16.mxu1 %v1212_v7 }
 0x21c   :  { %1016 = vmatpush3.bf16.msra.mxu0 %v1094_v24  ;;  %1038 = vmatpush3.bf16.msra.mxu1 %v1097_v27 }
 0x21d   :  { %1017 = vmatprep.subr.bf16.mxu0 %v1212_v7  ;;  %1039 = vmatprep.subr.bf16.mxu1 %v1212_v7 }
 0x220   :  { %1018 = vmatpush3.bf16.msra.mxu0 %v1096_v26  ;;  %1040 = vmatpush3.bf16.msra.mxu1 %v1099_v29 }
 0x221   :  { %1019 = vmatprep.subr.bf16.mxu0 %v1212_v7 }
 0x224   :  { %1020 = vmatpush3.bf16.msra.mxu0 %v1098_v28 }
 0x2c3   :  { %v528_v30 = vpop.f32.mrf.mxu1 }
 0x2c5   :  { %v1003_v31 = vpop.f32.mrf.mxu1 }
 0x2c7   :  { %v440_v32 = vpop.f32.mrf.mxu0  ;;  %v531_v33 = vpop.f32.mrf.mxu1 }
 0x2c8   :  { %v529_v34 = vadd.f32 %v528_v30, %v440_v32 }
 0x2c9   :  { %v983_v35 = vpop.f32.mrf.mxu0  ;;  %v1004_v36 = vpop.f32.mrf.mxu1 }
 0x2ca   :  { %1104 = vtanh.f32 %v529_v34 }
 0x2cb   :  { %v443_v37 = vpop.f32.mrf.mxu0 }
 0x2cd   :  { %v984_v7 = vpop.f32.mrf.mxu0 }
 0x2d7   :  { %v1105_v38 = vpop.eup %1104 }
 0x2d8   :  { %v535_v39 = vpack.c.bf16 %v1105_v38, %v1105_v38 }
 0x2da   :  { %1022 = vmatmul.mubr.bf16.vlgmr.msra.gmra.mxu0 %v535_v39  ;;  %1042 = vmatmul.mubr.bf16.vlgmr.msra.gmra.mxu1 %v535_v39 }
 0x2db   :  { %1117 = shalt.err (!%p1114_p4)
}
 0x2dc   :  { %770 = dma.vmem_to_hbm [thread:$0]  %s768_s27, 32, %s1582_s13, [#allocation5]  }
 0x2dd   :  { %s1215_s29 = smov [#allocation2]  }
 0x2de   :  { %s757_s30 = sshll.u32 %s1215_s29, 4  ;;  %s758_s30 = int_to_ptr.vmem [resolvable:$true] %s757_s30 }
 0x2df   :  { %s1126_s0 = scalar_lea.vmem %s758_s30, 32  ;;  %p1131_p6 = scmp.lt.s32.totalorder %s758_s30, %s758_s30 }
 0x2e0   :  { %p1127_p5 = scmp.ne.s32.totalorder %s758_s30, %s1126_s0  ;;  %p1132_p7 = scmp.lt.s32.totalorder %s1126_s0, %s1126_s0 }
 0x2e2   :  { %p1133_p8 = por %p1132_p7, %p1131_p6 }
 0x2e4   :  { %p1134_p9 = pnand %p1133_p8, %p1127_p5 }
 0x2e6   :  { %1137 = shalt.err (!%p1134_p9)
}
 0x2e7   :  { %760 = dma.vmem_to_hbm [thread:$0]  %s758_s30, 32, %s1581_s12, [#allocation3]  }
 0x2e8   :  { %s1216_s3 = smov [#allocation7]   ;;  %s1217_s5 = smov [#allocation6]  }
 0x2e9   :  { %s787_s17 = sshll.u32 %s1216_s3, 4  ;;  %s777_s18 = sshll.u32 %s1217_s5, 4  ;;  %s788_s17 = int_to_ptr.vmem [resolvable:$true] %s787_s17  ;;  %s778_s18 = int_to_ptr.vmem [resolvable:$true] %s777_s18 }
 0x2ea   :  { %s1218_s13 = smov [#allocation9]   ;;  %s1146_s12 = scalar_lea.vmem %s788_s17, 32 }
 0x2eb   :  { %s797_s6 = sshll.u32 %s1218_s13, 4  ;;  %p1147_p10 = scmp.ne.s32.totalorder %s788_s17, %s1146_s12  ;;  %s1553_s6 = int_to_ptr.vmem [resolvable:$true] %s797_s6 }
 0x2ec   :  { %p1151_p11 = scmp.lt.s32.totalorder %s788_s17, %s788_s17  ;;  %p1152_p12 = scmp.lt.s32.totalorder %s1146_s12, %s1146_s12 }
 0x2ee   :  { %p1153_p13 = por %p1152_p12, %p1151_p11 }
 0x2f0   :  { %p1154_p0 = pnand %p1153_p13, %p1147_p10 }
 0x39a   :  { %v634_v40 = vpop.f32.mrf.mxu0  ;;  %v739_v41 = vpop.f32.mrf.mxu1 }
 0x39b   :  { %v640_v42 = vadd.f32 %v634_v40, %v1469_v3  ;;  %v745_v43 = vadd.f32 %v739_v41, %v1477_v9 }
 0x39c   :  { %v1023_v44 = vpop.f32.mrf.mxu0  ;;  %v1043_v45 = vpop.f32.mrf.mxu1 }
 0x39d   :  { %746 = vst [vmem:[#allocation6] sm:$0x3] %v640_v42  ;;  %v748_v46 = vadd.f32 %v745_v43, %v640_v42  ;;  %747 = vst [vmem:[#allocation7] sm:$0x3] %v745_v43 }
 0x39e   :  { %v637_v47 = vpop.f32.mrf.mxu0  ;;  %v742_v48 = vpop.f32.mrf.mxu1 }
 0x39f   :  { %1157 = shalt.err (!%p1154_p0)
}
 0x3a0   :  { %790 = dma.vmem_to_hbm [thread:$0]  %s788_s17, 32, %s1584_s15, [#allocation8]  }
 0x3a1   :  { %s1166_s21 = scalar_lea.vmem %s778_s18, 32  ;;  %p1171_p2 = scmp.lt.s32.totalorder %s778_s18, %s778_s18 }
 0x3a2   :  { %p1167_p1 = scmp.ne.s32.totalorder %s778_s18, %s1166_s21  ;;  %p1172_p3 = scmp.lt.s32.totalorder %s1166_s21, %s1166_s21 }
 0x3a4   :  { %p1173_p4 = por %p1172_p3, %p1171_p2 }
 0x3a6   :  { %p1174_p5 = pnand %p1173_p4, %p1167_p1 }
 0x3a8   :  { %1177 = shalt.err (!%p1174_p5)
}
 0x3a9   :  { %780 = dma.vmem_to_hbm [thread:$0]  %s778_s18, 32, %s1583_s14, [#allocation5]   ;;  %v749_v49 = vmul.f32 0.5, %v748_v46  ;;  %v1024_v50 = vpop.f32.mrf.mxu0  ;;  %v1044_v51 = vpop.f32.mrf.mxu1 }
 0x3aa   :  { %s1186_s8 = scalar_lea.vmem %s1553_s6, 32  ;;  %p1191_p7 = scmp.lt.s32.totalorder %s1553_s6, %s1553_s6 }
 0x3ab   :  { %750 = vst [vmem:[#allocation9] sm:$0x3] %v749_v49  ;;  %p1187_p6 = scmp.ne.s32.totalorder %s1553_s6, %s1186_s8  ;;  %p1192_p8 = scmp.lt.s32.totalorder %s1186_s8, %s1186_s8 }
 0x3ad   :  { %p1193_p9 = por %p1192_p8, %p1191_p7 }
 0x3af   :  { %p1194_p10 = pnand %p1193_p9, %p1187_p6 }
 0x3b1   :  { %1197 = shalt.err (!%p1194_p10)
}
 0x3b2   :  { %800 = dma.vmem_to_hbm [thread:$0]  %s1553_s6, 32, %s1585_s16, [#allocation8]  }
 0x3b3   :  { %1206 = dma.done.wait [#allocation3], 32  }
 0x3b4   :  { %1207 = vsyncadd [#allocation3], 4294967264 }
 0x3b5   :  { %1208 = dma.done.wait [#allocation5], 64  }
 0x3b6   :  { %1209 = vsyncadd [#allocation5], 4294967232 }
 0x3b7   :  { %1210 = dma.done.wait [#allocation8], 64  }
 0x3b8   :  { %1211 = vsyncadd [#allocation8], 4294967232 }
 0x3b9   :  { %816 = vsyncpa [#allocation3], 1 }
 0x3ba   :  { %817 = vsyncpa [#allocation5], 1 }
 0x3bb   :  { %818 = vsyncpa [#allocation8], 1 }

// kernel: clip_feature_extractor_forward.6
= control target key start
LH: loop header
LB: loop body
LE: loop exit
PB: predicated region body
PF: predicated region fallthrough
CT: control target
= control target key end

     0   :  { %s2382_s25 = smov 0   ;;  %s2384_s26 = smov 0   ;;  %s2680_s0 = inlined_call_operand.vmem [shape: f32[2,5,128], index: 0, kind: input, shape index: {}]   ;;  %s2681_s1 = inlined_call_operand.vmem [shape: f32[2,1,128], index: 1, kind: input, shape index: {}]   ;;  %s2682_s2 = inlined_call_operand.vmem [shape: f32[2,1,128], index: 2, kind: input, shape index: {}]   ;;  %s2683_s3 = inlined_call_operand.vmem [shape: bf16[2,128,384], index: 3, kind: input, shape index: {}]   ;;  %s2684_s4 = inlined_call_operand.vmem [shape: f32[2,1,384], index: 4, kind: input, shape index: {}]   ;;  %s2685_s5 = inlined_call_operand.vmem [shape: bf16[2,128,128], index: 5, kind: input, shape index: {}]   ;;  %s2686_s6 = inlined_call_operand.vmem [shape: f32[2,1,128], index: 6, kind: input, shape index: {}]   ;;  %s2687_s7 = inlined_call_operand.vmem [shape: f32[2,1,128], index: 7, kind: input, shape index: {}]   ;;  %s2688_s8 = inlined_call_operand.vmem [shape: f32[2,1,128], index: 8, kind: input, shape index: {}]   ;;  %s2689_s9 = inlined_call_operand.vmem [shape: bf16[2,128,256], index: 9, kind: input, shape index: {}]   ;;  %s2690_s10 = inlined_call_operand.vmem [shape: f32[2,1,256], index: 10, kind: input, shape index: {}]   ;;  %s2691_s11 = inlined_call_operand.vmem [shape: bf16[2,256,128], index: 11, kind: input, shape index: {}]   ;;  %s2692_s12 = inlined_call_operand.vmem [shape: f32[2,1,128], index: 12, kind: input, shape index: {}]   ;;  %s2693_s13 = inlined_call_operand.vmem [shape: f32[2,5,128], index: 13, kind: output, shape index: {}]  }
   0x1   :  { %2698 = sst [smem:[#allocation8_spill]] %s2680_s0  ;;  %s2386_s27 = smov 0  }
   0x2   :  { %2699 = sst [smem:[#allocation9_spill]] %s2682_s2  ;;  %s2388_s28 = smov 0  }
   0x3   :  { %2700 = sst [smem:[#allocation10_spill]] %s2683_s3  ;;  %s2390_s29 = smov 0  }
   0x4   :  { %2701 = sst [smem:[#allocation11_spill]] %s2684_s4 }
   0x5   :  { %2702 = sst [smem:[#allocation12_spill]] %s2685_s5 }
   0x6   :  { %2703 = sst [smem:[#allocation13_spill]] %s2693_s13 }
   0x7 LB: > { %2704 = sst [smem:[#allocation2_spill]] %s2289_s25  ;;  %s32_s30 = sadd.s32 1, %s2297_s27  ;;  %s2305_s29 = sphi %s2390_s29, %s23_s29   ;;  %s2301_s28 = sphi %s2388_s28, %s2727_s28   ;;  %s2297_s27 = sphi %s2386_s27, %s2726_s27   ;;  %s2293_s26 = sphi %s2384_s26, %s2725_s26   ;;  %s2289_s25 = sphi %s2382_s25, %s2724_s25  }
   0x8   : > { %2705 = sst [smem:[#allocation3_spill]] %s2297_s27  ;;  %s35_s14 = sadd.s32 1, %s2301_s28 }
   0x9   : > { %2706 = sst [smem:[#allocation4_spill]] %s2301_s28  ;;  %p33_p0 = scmp.ge.s32.totalorder %s32_s30, 2 }
   0xa   : > { %2707 = sst [smem:[#allocation5_spill]] %s2305_s29  ;;  %p1915_p1 = scmp.ge.s32.totalorder %s2305_s29, 1 }
   0xb   : > { %p504_p2 = scmp.lt.s32.totalorder %s2305_s29, 5  ;;  %s2729_s30 = smov (%p33_p0, %s32_s30), 0 }
   0xc   : > { %2708 = sst [smem:[#allocation6_spill]] %s2729_s30  ;;  %s2731_s14 = smov (!%p33_p0, %s35_s14), %s2301_s28 }
   0xd   : > { %p505_p3 = pnand %p1915_p1, %p504_p2  ;;  %p37_p4 = scmp.ge.s32.totalorder %s2731_s14, 2 }
   0xe   : > { %p592_p5 = scmp.lt.s32.totalorder (!%p505_p3), %s2293_s26, 1  ;;  %p596_p6 = scmp.lt.s32.totalorder (!%p505_p3), %s2289_s25, 1 }
   0xf   : > { %s2733_s14 = smov (%p37_p4, %s2731_s14), 0  ;;  %508 = sbr.rel (%p505_p3) target bundleno = 2838 (0xb16), region = 72 }
  0x10   : > { %2709 = sst [smem:[#allocation7_spill]] %s2733_s14 }
  0x11   : > { %s2710_s0 = sld [smem:[#allocation8_spill]] (!%p505_p3) }
  0x12   : > { %s2712_s3 = sld [smem:[#allocation10_spill]] (!%p505_p3) }
  0x13   : > { %s2713_s5 = sld [smem:[#allocation12_spill]] (!%p505_p3) }
  0x14   : > { %s2735_s26 = smov (!%p592_p5, %s2293_s26), 1  ;;  %s2714_s4 = sld [smem:[#allocation11_spill]] }
  0x15   : > { %s2416_s15 = scalar_select %p596_p6, %s2289_s25, 1 }
  0x16   : > { %s1916_s16 = sshll.u32 %s2735_s26, 3  ;;  %s2716_s17 = sld [smem:[#allocation2_spill]] }
  0x17   : > { %s595_s19 = scalar_lea.vmem %s2710_s0, %s1916_s16  ;;  %s2120_s30 = smul.u32 192, %s2416_s15 }
  0x18   : > { %s2121_s28 = smul.u32 3, %s2416_s15  ;;  %s2007_s27 = sshll.u32 %s2416_s15, 6 }
  0x19   : > { %s2435_s26 = scalar_lea.vmem %s2712_s3, %s2120_s30  ;;  %s2440_s18 = scalar_lea.vmem %s2713_s5, %s2007_s27 }
  0x1a   : > { %s2445_s22 = scalar_lea.vmem %s2714_s4, %s2121_s28  ;;  %s2008_s13 = sshll.u32 %s2416_s15, 7 }
  0x1b   : > { %s1922_s27 = sshll.u32 %s2416_s15, 1  ;;  %s2464_s20 = scalar_lea.vmem %s2689_s9, %s2008_s13 }
  0x1c   : > { %s2469_s23 = scalar_lea.vmem %s2690_s10, %s1922_s27  ;;  %s2474_s0 = scalar_lea.vmem %s2691_s11, %s2008_s13 }
  0x1d   : > { %s641_s30 = scalar_lea.vmem %s2692_s12, %s2416_s15  ;;  %s2715_s4 = sld [smem:[#allocation13_spill]] }
  0x1e   : > { %p1926_p7 = scmp.ne.s32.totalorder %s2716_s17, 0 }
  0x20   : > { %650 = sbr.rel (%p1926_p7) target bundleno = 39 (0x27), region = 76 }
  0x23   : > { %s2483_s5 = scalar_lea.vmem %s2715_s4, %s1916_s16 }
  0x25   : > { %v651_v0 = vld [vmem:[%s595_s19] sm:$0x1f] }
  0x26   : > { %652 = vst [vmem:[%s2483_s5] sm:$0x1f] %v651_v0 }
  0x27 PF: > { %vm658_vm0 = vcmask 1044480   ;;  %v2167_v3 = vld [vmem:[%s2435_s26 + $0xac] ss:$12 sps:$4 sm:$0xff]   ;;  %v2169_v4 = vld [vmem:[%s2435_s26 + $0xa8] ss:$12 sps:$4 sm:$0xff]   ;;  %v2307_v5 = vmov 0.0   ;;  %s2717_s14 = scalar_lea.vmem %s2681_s1, %s2416_s15  ;;  %v722_v44 = vlaneseq  ;;  %s2721_s24 = scalar_lea.vmem %s2687_s7, %s2416_s15 }
  0x28   : > { %2058 = vmatprep.subr.bf16.mxu1 %v2307_v5  ;;  %v2170_v6 = vld [vmem:[%s2435_s26 + $0xb0] ss:$12 sps:$4 sm:$0xff]   ;;  %v2171_v7 = vld [vmem:[%s2435_s26 + $0x94] ss:$12 sps:$4 sm:$0xff]   ;;  %865 = vmatprep.subr.bf16.mxu0 %v2167_v3  ;;  %v2174_v9 = vld [vmem:[%s2435_s26 + $0x98] ss:$12 sps:$4 sm:$0xff]   ;;  %s2722_s29 = scalar_lea.vmem %s2688_s8, %s2416_s15 }
  0x29   : > { %v2173_v8 = vld [vmem:[%s2435_s26 + $0x90] ss:$12 sps:$4 sm:$0xff]   ;;  %866 = vmatpush1.bf16.msra.mxu0 %v2169_v4  ;;  %2059 = vmatpush3.bf16.msra.mxu1 %v2170_v6  ;;  %v2177_v16 = vld [vmem:[%s2435_s26 + $0x78] ss:$12 sps:$4 sm:$0xff]   ;;  %v2178_v17 = vld [vmem:[%s2435_s26 + $0x80] ss:$12 sps:$4 sm:$0xff]  }
  0x2a   : > { %867 = vmatprep.subr.bf16.mxu0 %v2171_v7  ;;  %2060 = vmatprep.subr.bf16.mxu1 %v2307_v5  ;;  %v2175_v15 = vld [vmem:[%s2435_s26 + $0x7c] ss:$12 sps:$4 sm:$0xff]   ;;  %v2179_v18 = vld [vmem:[%s2435_s26 + $0x64] ss:$12 sps:$4 sm:$0xff]   ;;  %v2181_v19 = vld [vmem:[%s2435_s26 + $0x60] ss:$12 sps:$4 sm:$0xff]  }
  0x2b   : > { %v2182_v20 = vld [vmem:[%s2435_s26 + $0x68] ss:$12 sps:$4 sm:$0xff]   ;;  %v2183_v21 = vld [vmem:[%s2435_s26 + $0x4c] ss:$12 sps:$4 sm:$0xff]   ;;  %v2186_v23 = vld [vmem:[%s2435_s26 + $0x50] ss:$12 sps:$4 sm:$0xff]  }
  0x2c   : > { %v2185_v22 = vld [vmem:[%s2435_s26 + $0x48] ss:$12 sps:$4 sm:$0xff]   ;;  %v2308_v25 = vmov 0   ;;  %vm2309_vm1 = vmmov 0   ;;  %v2189_v26 = vld [vmem:[%s2435_s26 + $0x30] ss:$12 sps:$4 sm:$0xff]  }
  0x2d   : > { %v2488_v1 = vld [vmem:[%s2483_s5] sm:$0x1f]  ;;  %868 = vmatpush1.bf16.msra.mxu0 %v2173_v8  ;;  %2061 = vmatpush3.bf16.msra.mxu1 %v2174_v9  ;;  %v2191_v28 = vld [vmem:[%s2435_s26 + $0x1c] ss:$12 sps:$4 sm:$0xff]   ;;  %v2545_v45 = vshrl.u32 %v722_v44, 7  ;;  %vm1042_vm2 = vcmask 1041408  }
  0x2e   : > { %v659_v2 = vsel %vm658_vm0, %v2488_v1, 0.0  ;;  %2062 = vmatprep.subr.bf16.mxu1 %v2307_v5  ;;  %869 = vmatprep.subr.bf16.mxu0 %v2175_v15  ;;  %v2187_v24 = vld [vmem:[%s2435_s26 + $0x34] ss:$12 sps:$4 sm:$0xff]   ;;  %v2190_v27 = vld [vmem:[%s2435_s26 + $0x38] ss:$12 sps:$4 sm:$0xff]   ;;  %vm1043_vm3 = vcmask 1042432  }
  0x2f   : > { %660 = vadd.xlane.f32.xlu0 %v659_v2  ;;  %897 = vmatprep.mubr.bf16.mxu0 %v2308_v25  ;;  %v2193_v29 = vld [vmem:[%s2435_s26 + $0x18] ss:$12 sps:$4 sm:$0xff]   ;;  %v2194_v30 = vld [vmem:[%s2435_s26 + $0x20] ss:$12 sps:$4 sm:$0xff]   ;;  %v2198_v33 = vld [vmem:[%s2435_s26 + $0x8] ss:$12 sps:$4 sm:$0xff]  }
  0x30   : > { %2074 = vmatprep.mubr.msk.bf16.mxu1 %vm2309_vm1, %v2307_v5  ;;  %v2195_v31 = vld [vmem:[%s2435_s26 + $0x4] ss:$12 sps:$4 sm:$0xff]   ;;  %v2197_v32 = vld [vmem:[%s2435_s26] ss:$12 sps:$4 sm:$0xff]   ;;  %s2718_s26 = sld [smem:[#allocation9_spill]]  ;;  %v732_v46 = vsub.s32 2, %v2545_v45 }
  0x31   : > { %870 = vmatpush1.bf16.msra.mxu0 %v2177_v16  ;;  %2063 = vmatpush3.bf16.msra.mxu1 %v2178_v17  ;;  %v1927_v38 = vld [vmem:[%s2717_s14] ss:$0 sm:$0xff]  ;;  %v728_v48 = vsub.s32 1, %v2545_v45  ;;  %v724_v50 = vsub.s32 0, %v2545_v45  ;;  %v2310_v55 = vmov 65535   ;;  %vm946_vm4 = vcmask 523264  }
  0x32   : > { %2064 = vmatprep.subr.bf16.mxu1 %v2307_v5  ;;  %871 = vmatprep.subr.bf16.mxu0 %v2179_v18  ;;  %v720_v47 = vld [vmem:[%s2445_s22] sm:$0x7]  ;;  %v1044_v56 = vsel %vm1042_vm2, 4294967295, %v2310_v55  ;;  %s2311_s22 = smov 64   ;;  %vm1024_vm5 = vcmask 36864   ;;  %vm1038_vm6 = vcmask 39936  }
  0x33   : > { %v733_v49 = vrot.slane %v720_v47, %v732_v46  ;;  %v729_v51 = vrot.slane %v720_v47, %v728_v48  ;;  %v725_v57 = vrot.slane %v720_v47, %v724_v50  ;;  %v2555_v62 = vsel %vm1043_vm3, %v1044_v56, 0  ;;  %v2201_v44 = vld [vmem:[%s2440_s18 + $0x28] sm:$0xff]   ;;  %v2202_v46 = vld [vmem:[%s2440_s18 + $0x20] sm:$0xff]   ;;  %v2203_v47 = vld [vmem:[%s2440_s18 + $0x18] sm:$0xff]  }
  0x35   : > { %872 = vmatpush1.bf16.msra.mxu0 %v2181_v19  ;;  %2065 = vmatpush3.bf16.msra.mxu1 %v2182_v20 }
  0x36   : > { %873 = vmatprep.subr.bf16.mxu0 %v2183_v21  ;;  %2066 = vmatprep.subr.bf16.mxu1 %v2307_v5  ;;  %s2719_s25 = scalar_lea.vmem %s2718_s26, %s2416_s15 }
  0x37   : > { %v1928_v40 = vld [vmem:[%s2719_s25] ss:$0 sm:$0xff] }
  0x39   : > { %874 = vmatpush1.bf16.msra.mxu0 %v2185_v22  ;;  %2067 = vmatpush3.bf16.msra.mxu1 %v2186_v23 }
  0x3a   : > { %875 = vmatprep.subr.bf16.mxu0 %v2187_v24  ;;  %2068 = vmatprep.subr.bf16.mxu1 %v2307_v5 }
  0x3d   : > { %876 = vmatpush1.bf16.msra.mxu0 %v2189_v26  ;;  %2069 = vmatpush3.bf16.msra.mxu1 %v2190_v27 }
  0x3e   : > { %877 = vmatprep.subr.bf16.mxu0 %v2191_v28  ;;  %2070 = vmatprep.subr.bf16.mxu1 %v2307_v5 }
  0x41   : > { %878 = vmatpush1.bf16.msra.mxu0 %v2193_v29  ;;  %2071 = vmatpush3.bf16.msra.mxu1 %v2194_v30 }
  0x42   : > { %879 = vmatprep.subr.bf16.mxu0 %v2195_v31  ;;  %2072 = vmatprep.subr.bf16.mxu1 %v2307_v5 }
  0x45   : > { %880 = vmatpush1.bf16.msra.mxu0 %v2197_v32  ;;  %2073 = vmatpush3.bf16.msra.mxu1 %v2198_v33 }
  0x46   : > { %2078 = vmatprep.subr.mxu0 %v2307_v5  ;;  %2100 = vmatprep.subr.bf16.mxu1 %v2307_v5 }
  0xb8   : > { %v661_v10 = vpop.xlane.xlu0 %660 }
  0xb9   : > { %v663_v11 = vmul.f32 0.0078125, %v661_v10 }
  0xbb   : > { %v664_v12 = vsub.f32 %v2488_v1, %v663_v11 }
  0xbd   : > { %v665_v13 = vmul.f32 %v664_v12, %v664_v12 }
  0xbf   : > { %v666_v14 = vsel %vm658_vm0, %v665_v13, 0.0 }
  0xc0   : > { %667 = vadd.xlane.f32.xlu0 %v666_v14 }
 0x149   : > { %v668_v34 = vpop.xlane.xlu0 %667 }
 0x14a   : > { %v669_v35 = vmul.f32 0.0078125, %v668_v34 }
 0x14c   : > { %v670_v36 = vadd.f32 1e-05, %v669_v35 }
 0x14e   : > { %2247 = vrsqrt.f32 %v670_v36 }
 0x15b   : > { %v2248_v37 = vpop.eup %2247 }
 0x15c   : > { %v672_v39 = vmul.f32 %v2248_v37, %v664_v12 }
 0x15e   : > { %v679_v41 = vmul.f32 %v1927_v38, %v672_v39 }
 0x160   : > { %v686_v42 = vadd.f32 %v1928_v40, %v679_v41 }
 0x162   : > { %v687_v43 = vpack.c.bf16 %v686_v42, %v686_v42  ;;  %v2199_v42 = vld [vmem:[%s2440_s18 + $0x38] sm:$0xff]  }
 0x164   : > { %898 = vmatmul.mubr.bf16.vlgmr.msra.gmra.mxu0 %v687_v43  ;;  %2075 = vmatmul.mubr.bf16.vlgmr.msra.gmra.mxu1 %v687_v43  ;;  %v2200_v43 = vld [vmem:[%s2440_s18 + $0x30] sm:$0xff]  }
 0x165   : > { %2080 = vmatprep.mubr.msk.f32.mxu0 %vm2309_vm1, %v2307_v5  ;;  %2116 = vmatprep.mubr.msk.bf16.mxu1 %vm2309_vm1, %v2307_v5 }
 0x166   : > { %2101 = vmatpush3.bf16.msra.mxu1 %v2199_v42  ;;  %v2238_v42 = vld [vmem:[%s2474_s0 + $0x20] sm:$0xff]  }
 0x167   : > { %2102 = vmatprep.subr.bf16.mxu1 %v2307_v5 }
 0x16a   : > { %2103 = vmatpush3.bf16.msra.mxu1 %v2200_v43  ;;  %v2239_v43 = vld [vmem:[%s2474_s0 + $0x58] sm:$0xff]  }
 0x16b   : > { %2104 = vmatprep.subr.bf16.mxu1 %v2307_v5 }
 0x16e   : > { %2105 = vmatpush3.bf16.msra.mxu1 %v2201_v44  ;;  %v2240_v44 = vld [vmem:[%s2474_s0 + $0x18] sm:$0xff]  }
 0x16f   : > { %2106 = vmatprep.subr.bf16.mxu1 %v2307_v5 }
 0x172   : > { %2107 = vmatpush3.bf16.msra.mxu1 %v2202_v46  ;;  %v2241_v46 = vld [vmem:[%s2474_s0 + $0x50] sm:$0xff]  }
 0x173   : > { %2108 = vmatprep.subr.bf16.mxu1 %v2307_v5 }
 0x176   : > { %2109 = vmatpush3.bf16.msra.mxu1 %v2203_v47  ;;  %v2242_v47 = vld [vmem:[%s2474_s0 + $0x10] sm:$0xff]  }
 0x177   : > { %2110 = vmatprep.subr.bf16.mxu1 %v2307_v5 }
 0x224   : > { %v899_v52 = vpop.f32.mrf.mxu0  ;;  %v940_v53 = vpop.f32.mrf.mxu1 }
 0x225   : > { %v941_v54 = vadd.f32 %v940_v53, %v733_v49  ;;  %v900_v2 = vadd.f32 %v899_v52, %v725_v57  ;;  %v2205_v49 = vld [vmem:[%s2440_s18 + $0x8] sm:$0xff]  }
 0x226   : > { %v901_v58 = vpop.f32.mrf.mxu0  ;;  %v2076_v59 = vpop.f32.mrf.mxu1 }
 0x227   : > { %v1037_v60 = vpack.c.bf16 %v941_v54, %v941_v54  ;;  %v902_v61 = vadd.f32 %v901_v58, %v729_v51  ;;  %v2206_v51 = vld [vmem:[%s2440_s18] sm:$0xff]  }
 0x228   : > { %v903_v63 = vpop.f32.mrf.mxu0  ;;  %v943_v0 = vpop.f32.mrf.mxu1 }
 0x229   : > { %1091 = vrot.lane.b32.xlu0 %v902_v61, %s2311_s22  ;;  %2079 = vmatpush3.xpose.msk.msra.mxu0 %vm946_vm4, %v902_v61  ;;  %v1047_v6 = vand.u32 %v2555_v62, %v1037_v60 }
 0x22a   : > { %v904_v3 = vpop.f32.mrf.mxu0  ;;  %v2077_v4 = vpop.f32.mrf.mxu1  ;;  %2083 = vmatprep.subr.bf16.mxu0 %v2307_v5 }
 0x22b   : > { %v2207_v3 = vld [vmem:[%s2464_s20 + $0x70] ss:$8 sps:$4 sm:$0xff]   ;;  %v2209_v4 = vld [vmem:[%s2464_s20 + $0x74] ss:$8 sps:$4 sm:$0xff]  }
 0x22c   : > { %2081 = vmatmul.mubr.msk.f32.vlgmr.msra.gmra.mxu0 %vm946_vm4, %v900_v2 }
 0x22d   : > { %2084 = vmatpush3.bf16.msra.mxu0 %v1047_v6  ;;  %2085 = vmatprep.mubr.msk.bf16.mxu0 %vm2309_vm1, %v2307_v5  ;;  %v2212_v6 = vld [vmem:[%s2464_s20 + $0x64] ss:$8 sps:$4 sm:$0xff]  }
 0x22e   : > { %2089 = vmatprep.subr.mxu0 %v2307_v5 }
 0x29b   : > { %v1092_v20 = vpop.permute.xlu0 %1091 }
 0x2ec   : > { %v1019_v7 = vpop.f32.mrf.mxu0 }
 0x2ed   : > { %v1023_v8 = vmul.f32 0.125, %v1019_v7 }
 0x2ee   : > { %v2082_v9 = vpop.f32.mrf.mxu0 }
 0x2ef   : > { %v1025_v10 = vsel %vm1024_vm5, %v1023_v8, -inf }
 0x2f0   : > { %1026 = vmax.xlane.f32.xlu1 %v1025_v10 }
 0x379   : > { %v1027_v11 = vpop.xlane.xlu1 %1026 }
 0x37a   : > { %v1028_v12 = vsub.f32 %v1023_v8, %v1027_v11 }
 0x37c   : > { %v1029_v13 = vmul.f32 1.442695, %v1028_v12  ;;  %v2215_v12 = vld [vmem:[%s2464_s20 + $0x54] ss:$8 sps:$4 sm:$0xff]  }
 0x37e   : > { %2249 = vpow2.f32 %v1029_v13  ;;  %v2213_v13 = vld [vmem:[%s2464_s20 + $0x50] ss:$8 sps:$4 sm:$0xff]  }
 0x38b   : > { %v2250_v14 = vpop.eup %2249 }
 0x38c   : > { %v1031_v15 = vsel %vm1024_vm5, %v2250_v14, 0.0 }
 0x38d   : > { %1032 = vadd.xlane.f32.xlu1 %v1031_v15  ;;  %v2218_v15 = vld [vmem:[%s2464_s20 + $0x44] ss:$8 sps:$4 sm:$0xff]  }
 0x39e   : > { %1089 = vrot.lane.b32.xlu1 %v900_v2, %s2311_s22 }
 0x416   : > { %v1033_v16 = vpop.xlane.xlu1 %1032 }
 0x417   : > { %2251 = vrcp.f32 %v1033_v16  ;;  %v2221_v16 = vld [vmem:[%s2464_s20 + $0x34] ss:$8 sps:$4 sm:$0xff]  }
 0x41a   : > { %v1090_v21 = vpop.permute.xlu1 %1089 }
 0x424   : > { %v2252_v17 = vpop.eup %2251 }
 0x425   : > { %v1035_v18 = vmul.f32 %v2252_v17, %v2250_v14  ;;  %v2216_v14 = vld [vmem:[%s2464_s20 + $0x40] ss:$8 sps:$4 sm:$0xff]   ;;  %v2219_v17 = vld [vmem:[%s2464_s20 + $0x30] ss:$8 sps:$4 sm:$0xff]  }
 0x427   : > { %v1036_v19 = vpack.c.bf16 %v1035_v18, %v1035_v18  ;;  %v2224_v18 = vld [vmem:[%s2464_s20 + $0x24] ss:$8 sps:$4 sm:$0xff]  }
 0x429   : > { %2086 = vmatmul.mubr.msk.bf16.vlgmr.msra.gmra.mxu0 %vm1038_vm6, %v1036_v19  ;;  %v2222_v19 = vld [vmem:[%s2464_s20 + $0x20] ss:$8 sps:$4 sm:$0xff]  }
 0x42a   : > { %2090 = vmatpush3.xpose.msk.msra.mxu0 %vm946_vm4, %v1092_v20  ;;  %2091 = vmatprep.mubr.msk.f32.mxu0 %vm2309_vm1, %v2307_v5  ;;  %v2227_v20 = vld [vmem:[%s2464_s20 + $0x14] ss:$8 sps:$4 sm:$0xff]  }
 0x42b   : > { %2094 = vmatprep.subr.bf16.mxu0 %v2307_v5 }
 0x431   : > { %2092 = vmatmul.mubr.msk.f32.vlgmr.msra.gmra.mxu0 %vm946_vm4, %v1090_v21  ;;  %v2225_v21 = vld [vmem:[%s2464_s20 + $0x10] ss:$8 sps:$4 sm:$0xff]  }
 0x432   : > { %2096 = vmatprep.mubr.msk.bf16.mxu0 %vm2309_vm1, %v2307_v5 }
 0x4e9   : > { %v1083_v22 = vpop.f32.mrf.mxu0 }
 0x4eb   : > { %v2087_v23 = vpop.f32.mrf.mxu0 }
 0x4ec   : > { %v2228_v23 = vld [vmem:[%s2464_s20] ss:$8 sps:$4 sm:$0xff]  }
 0x4ed   : > { %v1086_v24 = vpop.f32.mrf.mxu0 }
 0x4ef   : > { %v2088_v26 = vpop.f32.mrf.mxu0 }
 0x4f1   : > { %v1163_v27 = vpop.f32.mrf.mxu0 }
 0x4f2   : > { %v1167_v28 = vmul.f32 0.125, %v1163_v27 }
 0x4f3   : > { %v2093_v29 = vpop.f32.mrf.mxu0 }
 0x4f4   : > { %v1168_v30 = vsel %vm1024_vm5, %v1167_v28, -inf  ;;  %v1968_v29 = vld [vmem:[%s2721_s24] ss:$0 sm:$0xff] }
 0x4f5   : > { %1169 = vmax.xlane.f32.xlu1 %v1168_v30 }
 0x57e   : > { %v1170_v31 = vpop.xlane.xlu1 %1169 }
 0x57f   : > { %v1171_v32 = vsub.f32 %v1167_v28, %v1170_v31  ;;  %v1969_v31 = vld [vmem:[%s2722_s29] ss:$0 sm:$0xff] }
 0x581   : > { %v1172_v33 = vmul.f32 1.442695, %v1171_v32 }
 0x583   : > { %2253 = vpow2.f32 %v1172_v33 }
 0x590   : > { %v2254_v34 = vpop.eup %2253 }
 0x591   : > { %v1174_v35 = vsel %vm1024_vm5, %v2254_v34, 0.0 }
 0x592   : > { %1175 = vadd.xlane.f32.xlu0 %v1174_v35  ;;  %v2231_v35 = vld [vmem:[%s2474_s0 + $0x78] sm:$0xff]  }
 0x5a8   : > { %1181 = vrot.lane.b32.xlu0 %v1037_v60, %s2311_s22 }
 0x61b   : > { %v1176_v36 = vpop.xlane.xlu0 %1175 }
 0x61c   : > { %2255 = vrcp.f32 %v1176_v36  ;;  %v2232_v36 = vld [vmem:[%s2474_s0 + $0x38] sm:$0xff]  }
 0x61f   : > { %v1182_v37 = vpop.permute.xlu0 %1181 }
 0x620   : > { %v1187_v38 = vand.u32 %v1182_v37, %v2555_v62  ;;  %v2233_v37 = vld [vmem:[%s2474_s0 + $0x70] sm:$0xff]  }
 0x622   : > { %2095 = vmatpush3.bf16.msra.mxu0 %v1187_v38  ;;  %v2234_v38 = vld [vmem:[%s2474_s0 + $0x30] sm:$0xff]  }
 0x623   : > { %1484 = vmatprep.subr.bf16.mxu0 %v2209_v4 }
 0x629   : > { %v2256_v39 = vpop.eup %2255 }
 0x62a   : > { %v1178_v40 = vmul.f32 %v2256_v39, %v2254_v34  ;;  %v2235_v39 = vld [vmem:[%s2474_s0 + $0x68] sm:$0xff]  }
 0x62c   : > { %v1179_v41 = vpack.c.bf16 %v1178_v40, %v1178_v40  ;;  %v2236_v40 = vld [vmem:[%s2474_s0 + $0x28] sm:$0xff]  }
 0x62e   : > { %2097 = vmatmul.mubr.msk.bf16.vlgmr.msra.gmra.mxu0 %vm1038_vm6, %v1179_v41  ;;  %v2237_v41 = vld [vmem:[%s2474_s0 + $0x60] sm:$0xff]  }
 0x62f   : > { %1516 = vmatprep.mubr.bf16.mxu0 %v2308_v25  ;;  %v2204_v25 = vld [vmem:[%s2440_s18 + $0x10] sm:$0xff]   ;;  %s2720_s18 = scalar_lea.vmem %s2686_s6, %s2416_s15  ;;  %1485 = vmatpush1.bf16.msra.mxu0 %v2207_v3 }
 0x630   : > { %2111 = vmatpush3.bf16.msra.mxu1 %v2204_v25  ;;  %1486 = vmatprep.subr.bf16.mxu0 %v2212_v6  ;;  %v2243_v25 = vld [vmem:[%s2474_s0 + $0x48] sm:$0xff]  }
 0x631   : > { %2112 = vmatprep.subr.bf16.mxu1 %v2307_v5 }
 0x634   : > { %2113 = vmatpush3.bf16.msra.mxu1 %v2205_v49  ;;  %v2244_v49 = vld [vmem:[%s2474_s0 + $0x8] sm:$0xff]  }
 0x635   : > { %2114 = vmatprep.subr.bf16.mxu1 %v2307_v5  ;;  %v1967_v5 = vld [vmem:[%s2720_s18] ss:$0 sm:$0xff] }
 0x638   : > { %2115 = vmatpush3.bf16.msra.mxu1 %v2206_v51  ;;  %v2245_v51 = vld [vmem:[%s2474_s0 + $0x40] sm:$0xff]  }
 0x639   : > { %2036 = vmatprep.subr.bf16.mxu1 %v2231_v35 }
 0x6ee   : > { %v1223_v52 = vpop.f32.mrf.mxu0 }
 0x6ef   : > { %1230 = vrot.lane.b32.xlu1 %v1223_v52, %s2311_s22  ;;  %v2246_v52 = vld [vmem:[%s2474_s0] sm:$0xff]  }
 0x6f0   : > { %v2098_v53 = vpop.f32.mrf.mxu0 }
 0x6f1   : > { %v1392_v53 = vld [vmem:[%s2469_s23] sm:$0x3] }
 0x6f2   : > { %v1226_v54 = vpop.f32.mrf.mxu0 }
 0x6f3   : > { %v1397_v54 = vrot.slane %v1392_v53, %v724_v50 }
 0x6f4   : > { %v2099_v55 = vpop.f32.mrf.mxu0 }
 0x6f5   : > { %v1401_v55 = vrot.slane %v1392_v53, %v728_v48 }
 0x761   : > { %v1231_v56 = vpop.permute.xlu1 %1230 }
 0x762   : > { %v1233_v57 = vsel %vm946_vm4, %v1083_v22, %v1231_v56  ;;  %v2230_v22 = vld [vmem:[%s2464_s20 + $0x4] ss:$8 sps:$4 sm:$0xff]  }
 0x763   : > { %v1234_v58 = vpack.c.bf16 %v1233_v57, %v1233_v57 }
 0x765   : > { %2117 = vmatmul.mubr.bf16.vlgmr.msra.gmra.mxu1 %v1234_v58 }
 0x766   : > { %2037 = vmatpush3.bf16.msra.mxu1 %v2232_v36 }
 0x767   : > { %2038 = vmatprep.subr.bf16.mxu1 %v2233_v37 }
 0x76a   : > { %2039 = vmatpush3.bf16.msra.mxu1 %v2234_v38 }
 0x76b   : > { %2040 = vmatprep.subr.bf16.mxu1 %v2235_v39 }
 0x76e   : > { %2041 = vmatpush3.bf16.msra.mxu1 %v2236_v40 }
 0x76f   : > { %2042 = vmatprep.subr.bf16.mxu1 %v2237_v41 }
 0x772   : > { %2043 = vmatpush3.bf16.msra.mxu1 %v2238_v42 }
 0x773   : > { %2044 = vmatprep.subr.bf16.mxu1 %v2239_v43 }
 0x776   : > { %2045 = vmatpush3.bf16.msra.mxu1 %v2240_v44 }
 0x777   : > { %2046 = vmatprep.subr.bf16.mxu1 %v2241_v46 }
 0x77a   : > { %2047 = vmatpush3.bf16.msra.mxu1 %v2242_v47 }
 0x77b   : > { %2048 = vmatprep.subr.bf16.mxu1 %v2243_v25 }
 0x77e   : > { %2049 = vmatpush3.bf16.msra.mxu1 %v2244_v49 }
 0x77f   : > { %2050 = vmatprep.subr.bf16.mxu1 %v2245_v51 }
 0x782   : > { %2051 = vmatpush3.bf16.msra.mxu1 %v2246_v52 }
 0x825   : > { %v1333_v59 = vpop.f32.mrf.mxu1 }
 0x826   : > { %v1339_v60 = vadd.f32 %v1333_v59, %v2488_v1  ;;  %v2210_v1 = vld [vmem:[%s2464_s20 + $0x60] ss:$8 sps:$4 sm:$0xff]  }
 0x827   : > { %v2118_v61 = vpop.f32.mrf.mxu1  ;;  %1487 = vmatpush1.bf16.msra.mxu0 %v2210_v1 }
 0x828   : > { %v2605_v62 = vadd.f32 %v1967_v5, %v1339_v60  ;;  %1488 = vmatprep.subr.bf16.mxu0 %v2215_v12 }
 0x829   : > { %v1336_v63 = vpop.f32.mrf.mxu1 }
 0x82a   : > { %v1348_v0 = vsel %vm658_vm0, %v2605_v62, 0.0 }
 0x82b   : > { %1349 = vadd.xlane.f32.xlu1 %v1348_v0  ;;  %v2119_v2 = vpop.f32.mrf.mxu1  ;;  %1489 = vmatpush1.bf16.msra.mxu0 %v2213_v13  ;;  %v2004_v13 = vld [vmem:[%s641_s30] ss:$0 sm:$0xff] }
 0x82c   : > { %1490 = vmatprep.subr.bf16.mxu0 %v2218_v15 }
 0x82f   : > { %1491 = vmatpush1.bf16.msra.mxu0 %v2216_v14 }
 0x830   : > { %1492 = vmatprep.subr.bf16.mxu0 %v2221_v16 }
 0x833   : > { %1493 = vmatpush1.bf16.msra.mxu0 %v2219_v17 }
 0x834   : > { %1494 = vmatprep.subr.bf16.mxu0 %v2224_v18 }
 0x837   : > { %1495 = vmatpush1.bf16.msra.mxu0 %v2222_v19 }
 0x838   : > { %1496 = vmatprep.subr.bf16.mxu0 %v2227_v20 }
 0x83b   : > { %1497 = vmatpush1.bf16.msra.mxu0 %v2225_v21 }
 0x83c   : > { %1498 = vmatprep.subr.bf16.mxu0 %v2230_v22 }
 0x83f   : > { %1499 = vmatpush1.bf16.msra.mxu0 %v2228_v23 }
 0x8b4   : > { %v1350_v7 = vpop.xlane.xlu1 %1349 }
 0x8b5   : > { %v1351_v8 = vmul.f32 0.0078125, %v1350_v7 }
 0x8b7   : > { %v1352_v9 = vsub.f32 %v2605_v62, %v1351_v8 }
 0x8b9   : > { %v1353_v10 = vmul.f32 %v1352_v9, %v1352_v9 }
 0x8bb   : > { %v1354_v11 = vsel %vm658_vm0, %v1353_v10, 0.0 }
 0x8bc   : > { %1355 = vadd.xlane.f32.xlu0 %v1354_v11 }
 0x945   : > { %v1356_v24 = vpop.xlane.xlu0 %1355 }
 0x946   : > { %v1357_v26 = vmul.f32 0.0078125, %v1356_v24 }
 0x948   : > { %v1358_v27 = vadd.f32 1e-05, %v1357_v26 }
 0x94a   : > { %2257 = vrsqrt.f32 %v1358_v27 }
 0x957   : > { %v2258_v28 = vpop.eup %2257 }
 0x958   : > { %v1360_v30 = vmul.f32 %v2258_v28, %v1352_v9 }
 0x95a   : > { %v1367_v32 = vmul.f32 %v1968_v29, %v1360_v30 }
 0x95c   : > { %v1374_v33 = vadd.f32 %v1969_v31, %v1367_v32 }
 0x95e   : > { %v1375_v34 = vpack.c.bf16 %v1374_v33, %v1374_v33 }
 0x960   : > { %1517 = vmatmul.mubr.bf16.vlgmr.msra.gmra.mxu0 %v1375_v34 }
 0xa20   : > { %v1518_v56 = vpop.f32.mrf.mxu0 }
 0xa21   : > { %v1519_v57 = vadd.f32 %v1518_v56, %v1397_v54 }
 0xa22   : > { %v1520_v58 = vpop.f32.mrf.mxu0 }
 0xa23   : > { %v1986_v59 = vmul.f32 -1.702, %v1519_v57  ;;  %v1521_v5 = vadd.f32 %v1520_v58, %v1401_v55 }
 0xa24   : > { %v1522_v60 = vpop.f32.mrf.mxu0 }
 0xa25   : > { %v1529_v61 = vmul.f32 1.442695, %v1986_v59  ;;  %v1987_v63 = vmul.f32 -1.702, %v1521_v5 }
 0xa26   : > { %v1523_v0 = vpop.f32.mrf.mxu0 }
 0xa27   : > { %2259 = vpow2.f32 %v1529_v61  ;;  %v1531_v2 = vmul.f32 1.442695, %v1987_v63 }
 0xa29   : > { %2261 = vpow2.f32 %v1531_v2 }
 0xa34   : > { %v2260_v3 = vpop.eup %2259 }
 0xa35   : > { %v1533_v4 = vadd.f32 1.0, %v2260_v3 }
 0xa36   : > { %v2262_v6 = vpop.eup %2261 }
 0xa37   : > { %2263 = vrcp.f32 %v1533_v4  ;;  %v1534_v50 = vadd.f32 1.0, %v2262_v6 }
 0xa39   : > { %2265 = vrcp.f32 %v1534_v50 }
 0xa44   : > { %v2264_v45 = vpop.eup %2263 }
 0xa45   : > { %v1539_v1 = vmul.f32 %v2264_v45, %v1519_v57 }
 0xa46   : > { %v2266_v48 = vpop.eup %2265 }
 0xa47   : > { %v1540_v7 = vmul.f32 %v2266_v48, %v1521_v5  ;;  %v1541_v9 = vpack.c.bf16 %v1539_v1, %v1539_v1 }
 0xa49   : > { %v1542_v8 = vpack.c.bf16 %v1540_v7, %v1540_v7 }
 0xa4b   : > { %1703 = vmatprep.mubr.bf16.mxu1 %v1542_v8 }
 0xa4c   : > { %1704 = vmatmul.mubr.bf16.vlgmr.msra.gmra.mxu1 %v1541_v9 }
 0xb0c   : > { %v2052_v10 = vpop.f32.mrf.mxu1 }
 0xb0e   : > { %v2053_v11 = vpop.f32.mrf.mxu1 }
 0xb0f   : > { %v2054_v12 = vadd.f32 %v2053_v11, %v2052_v10 }
 0xb10   : > { %v2055_v14 = vpop.f32.mrf.mxu1 }
 0xb11   : > { %v1711_v15 = vadd.f32 %v2054_v12, %v2605_v62 }
 0xb12   : > { %v2056_v16 = vpop.f32.mrf.mxu1 }
 0xb13   : > { %v1719_v17 = vadd.f32 %v2004_v13, %v1711_v15 }
 0xb15   : > { %1720 = vst [vmem:[%s2483_s5] sm:$0x1f] %v1719_v17 }
 0xb16 PF: > { %s2723_s17 = sld [smem:[#allocation5_spill]] }
 0xb17   : > { %s2724_s25 = sld [smem:[#allocation3_spill]] }
 0xb18   : > { %s2725_s26 = sld [smem:[#allocation4_spill]] }
 0xb19   : > { %s2726_s27 = sld [smem:[#allocation6_spill]] }
 0xb1a   : > { %s2727_s28 = sld [smem:[#allocation7_spill]] }
 0xb1c   : > { %s23_s29 = sadd.s32 1, %s2723_s17  }
 0xb1d   : > { %p20_p8 = scmp.ge.s32.totalorder %s23_s29, 6  }
 0xb1f   :  { %22 = sbr.rel (!%p20_p8) target bundleno = 7 (0x7), region = 142 }

// kernel: clip_feature_extractor_forward.4
= control target key start
LH: loop header
LB: loop body
LE: loop exit
PB: predicated region body
PF: predicated region fallthrough
CT: control target
= control target key end

     0   :  { %s2378_s25 = smov 0   ;;  %s2380_s26 = smov 0   ;;  %s2675_s0 = inlined_call_operand.vmem [shape: f32[2,8,128], index: 0, kind: input, shape index: {}]   ;;  %s2676_s1 = inlined_call_operand.vmem [shape: f32[2,1,128], index: 1, kind: input, shape index: {}]   ;;  %s2677_s2 = inlined_call_operand.vmem [shape: f32[2,1,128], index: 2, kind: input, shape index: {}]   ;;  %s2678_s3 = inlined_call_operand.vmem [shape: bf16[2,128,384], index: 3, kind: input, shape index: {}]   ;;  %s2679_s4 = inlined_call_operand.vmem [shape: f32[2,1,384], index: 4, kind: input, shape index: {}]   ;;  %s2680_s5 = inlined_call_operand.vmem [shape: bf16[2,128,128], index: 5, kind: input, shape index: {}]   ;;  %s2681_s6 = inlined_call_operand.vmem [shape: f32[2,1,128], index: 6, kind: input, shape index: {}]   ;;  %s2682_s7 = inlined_call_operand.vmem [shape: f32[2,1,128], index: 7, kind: input, shape index: {}]   ;;  %s2683_s8 = inlined_call_operand.vmem [shape: f32[2,1,128], index: 8, kind: input, shape index: {}]   ;;  %s2684_s9 = inlined_call_operand.vmem [shape: bf16[2,128,256], index: 9, kind: input, shape index: {}]   ;;  %s2685_s10 = inlined_call_operand.vmem [shape: f32[2,1,256], index: 10, kind: input, shape index: {}]   ;;  %s2686_s11 = inlined_call_operand.vmem [shape: bf16[2,256,128], index: 11, kind: input, shape index: {}]   ;;  %s2687_s12 = inlined_call_operand.vmem [shape: f32[2,1,128], index: 12, kind: input, shape index: {}]   ;;  %s2688_s13 = inlined_call_operand.vmem [shape: f32[2,8,128], index: 13, kind: output, shape index: {}]  }
   0x1   :  { %2693 = sst [smem:[#allocation8_spill]] %s2675_s0  ;;  %s2382_s27 = smov 0  }
   0x2   :  { %2694 = sst [smem:[#allocation9_spill]] %s2677_s2  ;;  %s2384_s28 = smov 0  }
   0x3   :  { %2695 = sst [smem:[#allocation10_spill]] %s2678_s3  ;;  %s2386_s29 = smov 0  }
   0x4   :  { %2696 = sst [smem:[#allocation11_spill]] %s2679_s4 }
   0x5   :  { %2697 = sst [smem:[#allocation12_spill]] %s2680_s5 }
   0x6   :  { %2698 = sst [smem:[#allocation13_spill]] %s2688_s13 }
   0x7 LB: > { %2699 = sst [smem:[#allocation2_spill]] %s2286_s25  ;;  %s32_s30 = sadd.s32 1, %s2294_s27  ;;  %s2302_s29 = sphi %s2386_s29, %s23_s29   ;;  %s2298_s28 = sphi %s2384_s28, %s2722_s28   ;;  %s2294_s27 = sphi %s2382_s27, %s2721_s27   ;;  %s2290_s26 = sphi %s2380_s26, %s2720_s26   ;;  %s2286_s25 = sphi %s2378_s25, %s2719_s25  }
   0x8   : > { %2700 = sst [smem:[#allocation3_spill]] %s2294_s27  ;;  %s35_s14 = sadd.s32 1, %s2298_s28 }
   0x9   : > { %2701 = sst [smem:[#allocation4_spill]] %s2298_s28  ;;  %p33_p0 = scmp.ge.s32.totalorder %s32_s30, 2 }
   0xa   : > { %2702 = sst [smem:[#allocation5_spill]] %s2302_s29  ;;  %p1913_p1 = scmp.ge.s32.totalorder %s2302_s29, 1 }
   0xb   : > { %p504_p2 = scmp.lt.s32.totalorder %s2302_s29, 5  ;;  %s2724_s30 = smov (%p33_p0, %s32_s30), 0 }
   0xc   : > { %2703 = sst [smem:[#allocation6_spill]] %s2724_s30  ;;  %s2726_s14 = smov (!%p33_p0, %s35_s14), %s2298_s28 }
   0xd   : > { %p505_p3 = pnand %p1913_p1, %p504_p2  ;;  %p37_p4 = scmp.ge.s32.totalorder %s2726_s14, 2 }
   0xe   : > { %p592_p5 = scmp.lt.s32.totalorder (!%p505_p3), %s2290_s26, 1  ;;  %p596_p6 = scmp.lt.s32.totalorder (!%p505_p3), %s2286_s25, 1 }
   0xf   : > { %s2728_s14 = smov (%p37_p4, %s2726_s14), 0  ;;  %508 = sbr.rel (%p505_p3) target bundleno = 2836 (0xb14), region = 72 }
  0x10   : > { %2704 = sst [smem:[#allocation7_spill]] %s2728_s14 }
  0x11   : > { %s2705_s0 = sld [smem:[#allocation8_spill]] (!%p505_p3) }
  0x12   : > { %s2707_s3 = sld [smem:[#allocation10_spill]] (!%p505_p3) }
  0x13   : > { %s2708_s5 = sld [smem:[#allocation12_spill]] (!%p505_p3) }
  0x14   : > { %s2730_s26 = smov (!%p592_p5, %s2290_s26), 1  ;;  %s2709_s4 = sld [smem:[#allocation11_spill]] }
  0x15   : > { %s2412_s15 = scalar_select %p596_p6, %s2286_s25, 1 }
  0x16   : > { %s1914_s16 = sshll.u32 %s2730_s26, 3  ;;  %s2711_s17 = sld [smem:[#allocation2_spill]] }
  0x17   : > { %s595_s19 = scalar_lea.vmem %s2705_s0, %s1914_s16  ;;  %s2118_s30 = smul.u32 192, %s2412_s15 }
  0x18   : > { %s2119_s28 = smul.u32 3, %s2412_s15  ;;  %s2005_s27 = sshll.u32 %s2412_s15, 6 }
  0x19   : > { %s2431_s26 = scalar_lea.vmem %s2707_s3, %s2118_s30  ;;  %s2436_s18 = scalar_lea.vmem %s2708_s5, %s2005_s27 }
  0x1a   : > { %s2441_s22 = scalar_lea.vmem %s2709_s4, %s2119_s28  ;;  %s2006_s13 = sshll.u32 %s2412_s15, 7 }
  0x1b   : > { %s1920_s27 = sshll.u32 %s2412_s15, 1  ;;  %s2460_s20 = scalar_lea.vmem %s2684_s9, %s2006_s13 }
  0x1c   : > { %s2465_s23 = scalar_lea.vmem %s2685_s10, %s1920_s27  ;;  %s2470_s0 = scalar_lea.vmem %s2686_s11, %s2006_s13 }
  0x1d   : > { %s641_s30 = scalar_lea.vmem %s2687_s12, %s2412_s15  ;;  %s2710_s4 = sld [smem:[#allocation13_spill]] }
  0x1e   : > { %p1924_p7 = scmp.ne.s32.totalorder %s2711_s17, 0 }
  0x20   : > { %650 = sbr.rel (%p1924_p7) target bundleno = 39 (0x27), region = 76 }
  0x23   : > { %s2479_s5 = scalar_lea.vmem %s2710_s4, %s1914_s16 }
  0x25   : > { %v651_v0 = vld [vmem:[%s595_s19] sm:$0xff] }
  0x26   : > { %652 = vst [vmem:[%s2479_s5] sm:$0xff] %v651_v0 }
  0x27 PF: > { %v2164_v2 = vld [vmem:[%s2431_s26 + $0xac] ss:$12 sps:$4 sm:$0xff]   ;;  %v2166_v3 = vld [vmem:[%s2431_s26 + $0xa8] ss:$12 sps:$4 sm:$0xff]   ;;  %v2304_v4 = vmov 0.0   ;;  %v2305_v23 = vmov 0   ;;  %s2712_s14 = scalar_lea.vmem %s2676_s1, %s2412_s15  ;;  %v719_v42 = vlaneseq  ;;  %s2716_s24 = scalar_lea.vmem %s2682_s7, %s2412_s15 }
  0x28   : > { %2056 = vmatprep.subr.bf16.mxu1 %v2304_v4  ;;  %v2167_v5 = vld [vmem:[%s2431_s26 + $0xb0] ss:$12 sps:$4 sm:$0xff]   ;;  %v2168_v6 = vld [vmem:[%s2431_s26 + $0x94] ss:$12 sps:$4 sm:$0xff]   ;;  %862 = vmatprep.subr.bf16.mxu0 %v2164_v2  ;;  %v2171_v8 = vld [vmem:[%s2431_s26 + $0x98] ss:$12 sps:$4 sm:$0xff]   ;;  %s2717_s29 = scalar_lea.vmem %s2683_s8, %s2412_s15 }
  0x29   : > { %v2170_v7 = vld [vmem:[%s2431_s26 + $0x90] ss:$12 sps:$4 sm:$0xff]   ;;  %863 = vmatpush1.bf16.msra.mxu0 %v2166_v3  ;;  %2057 = vmatpush3.bf16.msra.mxu1 %v2167_v5  ;;  %v2174_v14 = vld [vmem:[%s2431_s26 + $0x78] ss:$12 sps:$4 sm:$0xff]   ;;  %v2175_v15 = vld [vmem:[%s2431_s26 + $0x80] ss:$12 sps:$4 sm:$0xff]  }
  0x2a   : > { %864 = vmatprep.subr.bf16.mxu0 %v2168_v6  ;;  %2058 = vmatprep.subr.bf16.mxu1 %v2304_v4  ;;  %v2172_v13 = vld [vmem:[%s2431_s26 + $0x7c] ss:$12 sps:$4 sm:$0xff]   ;;  %v2176_v16 = vld [vmem:[%s2431_s26 + $0x64] ss:$12 sps:$4 sm:$0xff]   ;;  %v2178_v17 = vld [vmem:[%s2431_s26 + $0x60] ss:$12 sps:$4 sm:$0xff]  }
  0x2b   : > { %v2179_v18 = vld [vmem:[%s2431_s26 + $0x68] ss:$12 sps:$4 sm:$0xff]   ;;  %v2180_v19 = vld [vmem:[%s2431_s26 + $0x4c] ss:$12 sps:$4 sm:$0xff]   ;;  %v2183_v21 = vld [vmem:[%s2431_s26 + $0x50] ss:$12 sps:$4 sm:$0xff]   ;;  %894 = vmatprep.mubr.bf16.mxu0 %v2305_v23 }
  0x2c   : > { %v2182_v20 = vld [vmem:[%s2431_s26 + $0x48] ss:$12 sps:$4 sm:$0xff]   ;;  %vm2306_vm0 = vmmov 0   ;;  %v2186_v24 = vld [vmem:[%s2431_s26 + $0x30] ss:$12 sps:$4 sm:$0xff]   ;;  %v2539_v43 = vshrl.u32 %v719_v42, 7 }
  0x2d   : > { %v2484_v1 = vld [vmem:[%s2479_s5] sm:$0xff]  ;;  %865 = vmatpush1.bf16.msra.mxu0 %v2170_v7  ;;  %2059 = vmatpush3.bf16.msra.mxu1 %v2171_v8  ;;  %v2188_v26 = vld [vmem:[%s2431_s26 + $0x1c] ss:$12 sps:$4 sm:$0xff]   ;;  %vm948_vm1 = vcmask 523264   ;;  %vm1044_vm2 = vcmask 1043456   ;;  %v946_v0 = vand.u32 127, %v719_v42 }
  0x2e   : > { %658 = vadd.xlane.f32.xlu0 %v2484_v1  ;;  %2060 = vmatprep.subr.bf16.mxu1 %v2304_v4  ;;  %v2184_v22 = vld [vmem:[%s2431_s26 + $0x34] ss:$12 sps:$4 sm:$0xff]   ;;  %v2187_v25 = vld [vmem:[%s2431_s26 + $0x38] ss:$12 sps:$4 sm:$0xff]   ;;  %v729_v44 = vsub.s32 2, %v2539_v43  ;;  %v725_v46 = vsub.s32 1, %v2539_v43 }
  0x2f   : > { %866 = vmatprep.subr.bf16.mxu0 %v2172_v13  ;;  %2072 = vmatprep.mubr.msk.bf16.mxu1 %vm2306_vm0, %v2304_v4  ;;  %v2190_v27 = vld [vmem:[%s2431_s26 + $0x18] ss:$12 sps:$4 sm:$0xff]   ;;  %v2191_v28 = vld [vmem:[%s2431_s26 + $0x20] ss:$12 sps:$4 sm:$0xff]   ;;  %v2195_v31 = vld [vmem:[%s2431_s26 + $0x8] ss:$12 sps:$4 sm:$0xff]   ;;  %vm947_vm3 = vcmp.le.s32.totalorder %v946_v0, %v2539_v43 }
  0x30   : > { %v2192_v29 = vld [vmem:[%s2431_s26 + $0x4] ss:$12 sps:$4 sm:$0xff]   ;;  %v2194_v30 = vld [vmem:[%s2431_s26] ss:$12 sps:$4 sm:$0xff]   ;;  %s2713_s26 = sld [smem:[#allocation9_spill]]  ;;  %v721_v48 = vsub.s32 0, %v2539_v43 }
  0x31   : > { %867 = vmatpush1.bf16.msra.mxu0 %v2174_v14  ;;  %2061 = vmatpush3.bf16.msra.mxu1 %v2175_v15  ;;  %v1925_v36 = vld [vmem:[%s2712_s14] ss:$0 sm:$0xff]  ;;  %vm1027_vm4 = vcmask 64512   ;;  %v2198_v42 = vld [vmem:[%s2436_s18 + $0x28] sm:$0xff]   ;;  %v2206_v0 = vld [vmem:[%s2460_s20 + $0x74] ss:$8 sps:$4 sm:$0xff]  }
  0x32   : > { %2062 = vmatprep.subr.bf16.mxu1 %v2304_v4  ;;  %868 = vmatprep.subr.bf16.mxu0 %v2176_v16  ;;  %v717_v45 = vld [vmem:[%s2441_s22] sm:$0x7]  ;;  %s2307_s22 = smov 64  }
  0x33   : > { %v730_v47 = vrot.slane %v717_v45, %v729_v44  ;;  %v726_v49 = vrot.slane %v717_v45, %v725_v46  ;;  %v722_v53 = vrot.slane %v717_v45, %v721_v48  ;;  %v2199_v44 = vld [vmem:[%s2436_s18 + $0x20] sm:$0xff]   ;;  %v2200_v45 = vld [vmem:[%s2436_s18 + $0x18] sm:$0xff]  }
  0x35   : > { %869 = vmatpush1.bf16.msra.mxu0 %v2178_v17  ;;  %2063 = vmatpush3.bf16.msra.mxu1 %v2179_v18 }
  0x36   : > { %870 = vmatprep.subr.bf16.mxu0 %v2180_v19  ;;  %2064 = vmatprep.subr.bf16.mxu1 %v2304_v4  ;;  %s2714_s25 = scalar_lea.vmem %s2713_s26, %s2412_s15 }
  0x37   : > { %v1926_v38 = vld [vmem:[%s2714_s25] ss:$0 sm:$0xff] }
  0x39   : > { %871 = vmatpush1.bf16.msra.mxu0 %v2182_v20  ;;  %2065 = vmatpush3.bf16.msra.mxu1 %v2183_v21 }
  0x3a   : > { %872 = vmatprep.subr.bf16.mxu0 %v2184_v22  ;;  %2066 = vmatprep.subr.bf16.mxu1 %v2304_v4 }
  0x3d   : > { %873 = vmatpush1.bf16.msra.mxu0 %v2186_v24  ;;  %2067 = vmatpush3.bf16.msra.mxu1 %v2187_v25 }
  0x3e   : > { %874 = vmatprep.subr.bf16.mxu0 %v2188_v26  ;;  %2068 = vmatprep.subr.bf16.mxu1 %v2304_v4 }
  0x41   : > { %875 = vmatpush1.bf16.msra.mxu0 %v2190_v27  ;;  %2069 = vmatpush3.bf16.msra.mxu1 %v2191_v28 }
  0x42   : > { %876 = vmatprep.subr.bf16.mxu0 %v2192_v29  ;;  %2070 = vmatprep.subr.bf16.mxu1 %v2304_v4 }
  0x45   : > { %877 = vmatpush1.bf16.msra.mxu0 %v2194_v30  ;;  %2071 = vmatpush3.bf16.msra.mxu1 %v2195_v31 }
  0x46   : > { %2076 = vmatprep.subr.mxu0 %v2304_v4  ;;  %2098 = vmatprep.subr.bf16.mxu1 %v2304_v4 }
  0xb7   : > { %v659_v9 = vpop.xlane.xlu0 %658 }
  0xb8   : > { %v661_v10 = vmul.f32 0.0078125, %v659_v9 }
  0xba   : > { %v662_v11 = vsub.f32 %v2484_v1, %v661_v10 }
  0xbc   : > { %v663_v12 = vmul.f32 %v662_v11, %v662_v11 }
  0xbe   : > { %664 = vadd.xlane.f32.xlu0 %v663_v12 }
 0x147   : > { %v665_v32 = vpop.xlane.xlu0 %664 }
 0x148   : > { %v666_v33 = vmul.f32 0.0078125, %v665_v32 }
 0x14a   : > { %v667_v34 = vadd.f32 1e-05, %v666_v33 }
 0x14c   : > { %2244 = vrsqrt.f32 %v667_v34 }
 0x159   : > { %v2245_v35 = vpop.eup %2244 }
 0x15a   : > { %v669_v37 = vmul.f32 %v2245_v35, %v662_v11 }
 0x15c   : > { %v676_v39 = vmul.f32 %v1925_v36, %v669_v37 }
 0x15e   : > { %v683_v40 = vadd.f32 %v1926_v38, %v676_v39 }
 0x160   : > { %v684_v41 = vpack.c.bf16 %v683_v40, %v683_v40  ;;  %v2196_v40 = vld [vmem:[%s2436_s18 + $0x38] sm:$0xff]  }
 0x162   : > { %895 = vmatmul.mubr.bf16.vlgmr.msra.gmra.mxu0 %v684_v41  ;;  %2073 = vmatmul.mubr.bf16.vlgmr.msra.gmra.mxu1 %v684_v41  ;;  %v2197_v41 = vld [vmem:[%s2436_s18 + $0x30] sm:$0xff]  }
 0x163   : > { %2078 = vmatprep.mubr.msk.f32.mxu0 %vm2306_vm0, %v2304_v4  ;;  %2114 = vmatprep.mubr.msk.bf16.mxu1 %vm2306_vm0, %v2304_v4 }
 0x164   : > { %2099 = vmatpush3.bf16.msra.mxu1 %v2196_v40  ;;  %v2237_v40 = vld [vmem:[%s2470_s0 + $0x18] sm:$0xff]  }
 0x165   : > { %2100 = vmatprep.subr.bf16.mxu1 %v2304_v4 }
 0x168   : > { %2101 = vmatpush3.bf16.msra.mxu1 %v2197_v41  ;;  %v2238_v41 = vld [vmem:[%s2470_s0 + $0x50] sm:$0xff]  }
 0x169   : > { %2102 = vmatprep.subr.bf16.mxu1 %v2304_v4 }
 0x16c   : > { %2103 = vmatpush3.bf16.msra.mxu1 %v2198_v42  ;;  %v2239_v42 = vld [vmem:[%s2470_s0 + $0x10] sm:$0xff]  }
 0x16d   : > { %2104 = vmatprep.subr.bf16.mxu1 %v2304_v4 }
 0x170   : > { %2105 = vmatpush3.bf16.msra.mxu1 %v2199_v44  ;;  %v2240_v44 = vld [vmem:[%s2470_s0 + $0x48] sm:$0xff]  }
 0x171   : > { %2106 = vmatprep.subr.bf16.mxu1 %v2304_v4 }
 0x174   : > { %2107 = vmatpush3.bf16.msra.mxu1 %v2200_v45  ;;  %v2241_v45 = vld [vmem:[%s2470_s0 + $0x8] sm:$0xff]  }
 0x175   : > { %2108 = vmatprep.subr.bf16.mxu1 %v2304_v4 }
 0x222   : > { %v896_v50 = vpop.f32.mrf.mxu0  ;;  %v937_v51 = vpop.f32.mrf.mxu1 }
 0x223   : > { %v938_v52 = vadd.f32 %v937_v51, %v730_v47  ;;  %v897_v60 = vadd.f32 %v896_v50, %v722_v53  ;;  %v2202_v47 = vld [vmem:[%s2436_s18 + $0x8] sm:$0xff]  }
 0x224   : > { %v898_v54 = vpop.f32.mrf.mxu0  ;;  %v2074_v55 = vpop.f32.mrf.mxu1 }
 0x225   : > { %v899_v56 = vadd.f32 %v898_v54, %v726_v49  ;;  %v1040_v57 = vpack.c.bf16 %v938_v52, %v938_v52  ;;  %v2203_v49 = vld [vmem:[%s2436_s18] sm:$0xff]  }
 0x226   : > { %v900_v58 = vpop.f32.mrf.mxu0  ;;  %v940_v59 = vpop.f32.mrf.mxu1 }
 0x227   : > { %1090 = vrot.lane.b32.xlu0 %v899_v56, %s2307_s22  ;;  %2077 = vmatpush3.xpose.msk.msra.mxu0 %vm948_vm1, %v899_v56  ;;  %v1046_v63 = vsel %vm1044_vm2, %v1040_v57, 0 }
 0x228   : > { %v901_v61 = vpop.f32.mrf.mxu0  ;;  %v2075_v62 = vpop.f32.mrf.mxu1  ;;  %2081 = vmatprep.subr.bf16.mxu0 %v2304_v4 }
 0x22a   : > { %2079 = vmatmul.mubr.msk.f32.vlgmr.msra.gmra.mxu0 %vm948_vm1, %v897_v60 }
 0x22b   : > { %2082 = vmatpush3.bf16.msra.mxu0 %v1046_v63  ;;  %2083 = vmatprep.mubr.msk.bf16.mxu0 %vm2306_vm0, %v2304_v4  ;;  %v2204_v63 = vld [vmem:[%s2460_s20 + $0x70] ss:$8 sps:$4 sm:$0xff]  }
 0x22c   : > { %2087 = vmatprep.subr.mxu0 %v2304_v4 }
 0x299   : > { %v1091_v17 = vpop.permute.xlu0 %1090 }
 0x2ea   : > { %v1021_v2 = vpop.f32.mrf.mxu0 }
 0x2eb   : > { %v1025_v3 = vmul.f32 0.125, %v1021_v2  ;;  %v2209_v2 = vld [vmem:[%s2460_s20 + $0x64] ss:$8 sps:$4 sm:$0xff]  }
 0x2ec   : > { %v2080_v5 = vpop.f32.mrf.mxu0 }
 0x2ed   : > { %v1026_v6 = vsel %vm947_vm3, %v1025_v3, -1e+09  ;;  %v2207_v3 = vld [vmem:[%s2460_s20 + $0x60] ss:$8 sps:$4 sm:$0xff]  }
 0x2ee   : > { %v1028_v7 = vsel %vm1027_vm4, %v1026_v6, -inf }
 0x2ef   : > { %1029 = vmax.xlane.f32.xlu1 %v1028_v7 }
 0x378   : > { %v1030_v8 = vpop.xlane.xlu1 %1029 }
 0x379   : > { %v1031_v9 = vsub.f32 %v1026_v6, %v1030_v8  ;;  %v2212_v8 = vld [vmem:[%s2460_s20 + $0x54] ss:$8 sps:$4 sm:$0xff]  }
 0x37b   : > { %v1032_v10 = vmul.f32 1.442695, %v1031_v9  ;;  %v2210_v9 = vld [vmem:[%s2460_s20 + $0x50] ss:$8 sps:$4 sm:$0xff]  }
 0x37d   : > { %2246 = vpow2.f32 %v1032_v10  ;;  %v2213_v10 = vld [vmem:[%s2460_s20 + $0x40] ss:$8 sps:$4 sm:$0xff]  }
 0x38a   : > { %v2247_v11 = vpop.eup %2246 }
 0x38b   : > { %v1034_v12 = vsel %vm1027_vm4, %v2247_v11, 0.0 }
 0x38c   : > { %1035 = vadd.xlane.f32.xlu1 %v1034_v12  ;;  %v2218_v12 = vld [vmem:[%s2460_s20 + $0x34] ss:$8 sps:$4 sm:$0xff]  }
 0x39d   : > { %1088 = vrot.lane.b32.xlu1 %v897_v60, %s2307_s22 }
 0x415   : > { %v1036_v13 = vpop.xlane.xlu1 %1035 }
 0x416   : > { %2248 = vrcp.f32 %v1036_v13  ;;  %v2216_v13 = vld [vmem:[%s2460_s20 + $0x30] ss:$8 sps:$4 sm:$0xff]  }
 0x419   : > { %v1089_v18 = vpop.permute.xlu1 %1088 }
 0x423   : > { %v2249_v14 = vpop.eup %2248 }
 0x424   : > { %v1038_v15 = vmul.f32 %v2249_v14, %v2247_v11  ;;  %v2215_v11 = vld [vmem:[%s2460_s20 + $0x44] ss:$8 sps:$4 sm:$0xff]  }
 0x425   : > { %v2221_v14 = vld [vmem:[%s2460_s20 + $0x24] ss:$8 sps:$4 sm:$0xff]  }
 0x426   : > { %v1039_v16 = vpack.c.bf16 %v1038_v15, %v1038_v15  ;;  %v2219_v15 = vld [vmem:[%s2460_s20 + $0x20] ss:$8 sps:$4 sm:$0xff]  }
 0x428   : > { %2084 = vmatmul.mubr.msk.bf16.vlgmr.msra.gmra.mxu0 %vm1027_vm4, %v1039_v16  ;;  %v2224_v16 = vld [vmem:[%s2460_s20 + $0x14] ss:$8 sps:$4 sm:$0xff]  }
 0x429   : > { %2088 = vmatpush3.xpose.msk.msra.mxu0 %vm948_vm1, %v1091_v17  ;;  %2089 = vmatprep.mubr.msk.f32.mxu0 %vm2306_vm0, %v2304_v4  ;;  %v2222_v17 = vld [vmem:[%s2460_s20 + $0x10] ss:$8 sps:$4 sm:$0xff]  }
 0x42a   : > { %2092 = vmatprep.subr.bf16.mxu0 %v2304_v4 }
 0x430   : > { %2090 = vmatmul.mubr.msk.f32.vlgmr.msra.gmra.mxu0 %vm948_vm1, %v1089_v18  ;;  %v2227_v18 = vld [vmem:[%s2460_s20 + $0x4] ss:$8 sps:$4 sm:$0xff]  }
 0x431   : > { %2094 = vmatprep.mubr.msk.bf16.mxu0 %vm2306_vm0, %v2304_v4 }
 0x4e8   : > { %v1082_v19 = vpop.f32.mrf.mxu0 }
 0x4ea   : > { %v2085_v20 = vpop.f32.mrf.mxu0 }
 0x4ec   : > { %v1085_v21 = vpop.f32.mrf.mxu0 }
 0x4ee   : > { %v2086_v22 = vpop.f32.mrf.mxu0 }
 0x4f0   : > { %v1162_v24 = vpop.f32.mrf.mxu0 }
 0x4f1   : > { %v1166_v25 = vmul.f32 0.125, %v1162_v24 }
 0x4f2   : > { %v2091_v26 = vpop.f32.mrf.mxu0 }
 0x4f3   : > { %v1167_v27 = vsel %vm947_vm3, %v1166_v25, -1e+09  ;;  %v1966_v25 = vld [vmem:[%s2716_s24] ss:$0 sm:$0xff] }
 0x4f4   : > { %v1168_v28 = vsel %vm1027_vm4, %v1167_v27, -inf }
 0x4f5   : > { %1169 = vmax.xlane.f32.xlu1 %v1168_v28 }
 0x57e   : > { %v1170_v29 = vpop.xlane.xlu1 %1169 }
 0x57f   : > { %v1171_v30 = vsub.f32 %v1167_v27, %v1170_v29  ;;  %v1967_v27 = vld [vmem:[%s2717_s29] ss:$0 sm:$0xff] }
 0x581   : > { %v1172_v31 = vmul.f32 1.442695, %v1171_v30 }
 0x583   : > { %2250 = vpow2.f32 %v1172_v31  ;;  %v2228_v31 = vld [vmem:[%s2470_s0 + $0x78] sm:$0xff]  }
 0x590   : > { %v2251_v32 = vpop.eup %2250 }
 0x591   : > { %v1174_v33 = vsel %vm1027_vm4, %v2251_v32, 0.0 }
 0x592   : > { %1175 = vadd.xlane.f32.xlu0 %v1174_v33  ;;  %v2230_v33 = vld [vmem:[%s2470_s0 + $0x70] sm:$0xff]  }
 0x5a8   : > { %1181 = vrot.lane.b32.xlu0 %v1040_v57, %s2307_s22 }
 0x61b   : > { %v1176_v34 = vpop.xlane.xlu0 %1175 }
 0x61c   : > { %2252 = vrcp.f32 %v1176_v34  ;;  %v2231_v34 = vld [vmem:[%s2470_s0 + $0x30] sm:$0xff]  }
 0x61f   : > { %v1182_v35 = vpop.permute.xlu0 %1181 }
 0x620   : > { %v1187_v36 = vsel %vm1044_vm2, %v1182_v35, 0  ;;  %v2232_v35 = vld [vmem:[%s2470_s0 + $0x68] sm:$0xff]  }
 0x621   : > { %2093 = vmatpush3.bf16.msra.mxu0 %v1187_v36  ;;  %v2233_v36 = vld [vmem:[%s2470_s0 + $0x28] sm:$0xff]  }
 0x622   : > { %1482 = vmatprep.subr.bf16.mxu0 %v2206_v0 }
 0x629   : > { %v2253_v37 = vpop.eup %2252 }
 0x62a   : > { %v1178_v38 = vmul.f32 %v2253_v37, %v2251_v32  ;;  %v2229_v32 = vld [vmem:[%s2470_s0 + $0x38] sm:$0xff]   ;;  %v2234_v37 = vld [vmem:[%s2470_s0 + $0x60] sm:$0xff]  }
 0x62c   : > { %v1179_v39 = vpack.c.bf16 %v1178_v38, %v1178_v38  ;;  %v2235_v38 = vld [vmem:[%s2470_s0 + $0x20] sm:$0xff]  }
 0x62e   : > { %2095 = vmatmul.mubr.msk.bf16.vlgmr.msra.gmra.mxu0 %vm1027_vm4, %v1179_v39  ;;  %v2236_v39 = vld [vmem:[%s2470_s0 + $0x58] sm:$0xff]  }
 0x62f   : > { %1514 = vmatprep.mubr.bf16.mxu0 %v2305_v23  ;;  %v2201_v23 = vld [vmem:[%s2436_s18 + $0x10] sm:$0xff]   ;;  %s2715_s18 = scalar_lea.vmem %s2681_s6, %s2412_s15  ;;  %1483 = vmatpush1.bf16.msra.mxu0 %v2204_v63 }
 0x630   : > { %2109 = vmatpush3.bf16.msra.mxu1 %v2201_v23  ;;  %1484 = vmatprep.subr.bf16.mxu0 %v2209_v2  ;;  %v2242_v23 = vld [vmem:[%s2470_s0 + $0x40] sm:$0xff]  }
 0x631   : > { %2110 = vmatprep.subr.bf16.mxu1 %v2304_v4 }
 0x633   : > { %1485 = vmatpush1.bf16.msra.mxu0 %v2207_v3 }
 0x634   : > { %2111 = vmatpush3.bf16.msra.mxu1 %v2202_v47  ;;  %1486 = vmatprep.subr.bf16.mxu0 %v2212_v8  ;;  %v2243_v47 = vld [vmem:[%s2470_s0] sm:$0xff]  }
 0x635   : > { %2112 = vmatprep.subr.bf16.mxu1 %v2304_v4  ;;  %v1965_v4 = vld [vmem:[%s2715_s18] ss:$0 sm:$0xff] }
 0x637   : > { %1487 = vmatpush1.bf16.msra.mxu0 %v2210_v9  ;;  %v2002_v9 = vld [vmem:[%s641_s30] ss:$0 sm:$0xff] }
 0x638   : > { %2113 = vmatpush3.bf16.msra.mxu1 %v2203_v49  ;;  %1488 = vmatprep.subr.bf16.mxu0 %v2215_v11  ;;  %v1390_v49 = vld [vmem:[%s2465_s23] sm:$0x3] }
 0x639   : > { %2034 = vmatprep.subr.bf16.mxu1 %v2228_v31 }
 0x63b   : > { %1489 = vmatpush1.bf16.msra.mxu0 %v2213_v10 }
 0x63c   : > { %1490 = vmatprep.subr.bf16.mxu0 %v2218_v12 }
 0x63f   : > { %1491 = vmatpush1.bf16.msra.mxu0 %v2216_v13 }
 0x640   : > { %1492 = vmatprep.subr.bf16.mxu0 %v2221_v14 }
 0x643   : > { %1493 = vmatpush1.bf16.msra.mxu0 %v2219_v15 }
 0x644   : > { %1494 = vmatprep.subr.bf16.mxu0 %v2224_v16 }
 0x647   : > { %1495 = vmatpush1.bf16.msra.mxu0 %v2222_v17 }
 0x648   : > { %1496 = vmatprep.subr.bf16.mxu0 %v2227_v18 }
 0x6ee   : > { %v1223_v50 = vpop.f32.mrf.mxu0 }
 0x6ef   : > { %1230 = vrot.lane.b32.xlu1 %v1223_v50, %s2307_s22  ;;  %v1395_v50 = vrot.slane %v1390_v49, %v721_v48 }
 0x6f0   : > { %v2096_v51 = vpop.f32.mrf.mxu0 }
 0x6f1   : > { %v1399_v51 = vrot.slane %v1390_v49, %v725_v46 }
 0x6f2   : > { %v1226_v52 = vpop.f32.mrf.mxu0 }
 0x6f4   : > { %v2097_v53 = vpop.f32.mrf.mxu0 }
 0x761   : > { %v1231_v54 = vpop.permute.xlu1 %1230 }
 0x762   : > { %v1233_v55 = vsel %vm948_vm1, %v1082_v19, %v1231_v54  ;;  %v2225_v19 = vld [vmem:[%s2460_s20] ss:$8 sps:$4 sm:$0xff]  }
 0x763   : > { %v1234_v56 = vpack.c.bf16 %v1233_v55, %v1233_v55  ;;  %1497 = vmatpush1.bf16.msra.mxu0 %v2225_v19 }
 0x765   : > { %2115 = vmatmul.mubr.bf16.vlgmr.msra.gmra.mxu1 %v1234_v56 }
 0x766   : > { %2035 = vmatpush3.bf16.msra.mxu1 %v2229_v32 }
 0x767   : > { %2036 = vmatprep.subr.bf16.mxu1 %v2230_v33 }
 0x76a   : > { %2037 = vmatpush3.bf16.msra.mxu1 %v2231_v34 }
 0x76b   : > { %2038 = vmatprep.subr.bf16.mxu1 %v2232_v35 }
 0x76e   : > { %2039 = vmatpush3.bf16.msra.mxu1 %v2233_v36 }
 0x76f   : > { %2040 = vmatprep.subr.bf16.mxu1 %v2234_v37 }
 0x772   : > { %2041 = vmatpush3.bf16.msra.mxu1 %v2235_v38 }
 0x773   : > { %2042 = vmatprep.subr.bf16.mxu1 %v2236_v39 }
 0x776   : > { %2043 = vmatpush3.bf16.msra.mxu1 %v2237_v40 }
 0x777   : > { %2044 = vmatprep.subr.bf16.mxu1 %v2238_v41 }
 0x77a   : > { %2045 = vmatpush3.bf16.msra.mxu1 %v2239_v42 }
 0x77b   : > { %2046 = vmatprep.subr.bf16.mxu1 %v2240_v44 }
 0x77e   : > { %2047 = vmatpush3.bf16.msra.mxu1 %v2241_v45 }
 0x77f   : > { %2048 = vmatprep.subr.bf16.mxu1 %v2242_v23 }
 0x782   : > { %2049 = vmatpush3.bf16.msra.mxu1 %v2243_v47 }
 0x825   : > { %v1333_v57 = vpop.f32.mrf.mxu1 }
 0x826   : > { %v1339_v58 = vadd.f32 %v1333_v57, %v2484_v1 }
 0x827   : > { %v2116_v59 = vpop.f32.mrf.mxu1 }
 0x828   : > { %v2602_v60 = vadd.f32 %v1965_v4, %v1339_v58 }
 0x829   : > { %v1336_v61 = vpop.f32.mrf.mxu1 }
 0x82a   : > { %1348 = vadd.xlane.f32.xlu1 %v2602_v60 }
 0x82b   : > { %v2117_v62 = vpop.f32.mrf.mxu1 }
 0x8b3   : > { %v1349_v1 = vpop.xlane.xlu1 %1348 }
 0x8b4   : > { %v1350_v5 = vmul.f32 0.0078125, %v1349_v1 }
 0x8b6   : > { %v1351_v6 = vsub.f32 %v2602_v60, %v1350_v5 }
 0x8b8   : > { %v1352_v7 = vmul.f32 %v1351_v6, %v1351_v6 }
 0x8ba   : > { %1353 = vadd.xlane.f32.xlu0 %v1352_v7 }
 0x943   : > { %v1354_v20 = vpop.xlane.xlu0 %1353 }
 0x944   : > { %v1355_v21 = vmul.f32 0.0078125, %v1354_v20 }
 0x946   : > { %v1356_v22 = vadd.f32 1e-05, %v1355_v21 }
 0x948   : > { %2254 = vrsqrt.f32 %v1356_v22 }
 0x955   : > { %v2255_v24 = vpop.eup %2254 }
 0x956   : > { %v1358_v26 = vmul.f32 %v2255_v24, %v1351_v6 }
 0x958   : > { %v1365_v28 = vmul.f32 %v1966_v25, %v1358_v26 }
 0x95a   : > { %v1372_v29 = vadd.f32 %v1967_v27, %v1365_v28 }
 0x95c   : > { %v1373_v30 = vpack.c.bf16 %v1372_v29, %v1372_v29 }
 0x95e   : > { %1515 = vmatmul.mubr.bf16.vlgmr.msra.gmra.mxu0 %v1373_v30 }
 0xa1e   : > { %v1516_v52 = vpop.f32.mrf.mxu0 }
 0xa1f   : > { %v1517_v53 = vadd.f32 %v1516_v52, %v1395_v50 }
 0xa20   : > { %v1518_v54 = vpop.f32.mrf.mxu0 }
 0xa21   : > { %v1984_v55 = vmul.f32 -1.702, %v1517_v53  ;;  %v1519_v56 = vadd.f32 %v1518_v54, %v1399_v51 }
 0xa22   : > { %v1520_v57 = vpop.f32.mrf.mxu0 }
 0xa23   : > { %v1527_v4 = vmul.f32 1.442695, %v1984_v55  ;;  %v1985_v58 = vmul.f32 -1.702, %v1519_v56 }
 0xa24   : > { %v1521_v59 = vpop.f32.mrf.mxu0 }
 0xa25   : > { %2256 = vpow2.f32 %v1527_v4  ;;  %v1529_v61 = vmul.f32 1.442695, %v1985_v58 }
 0xa27   : > { %2258 = vpow2.f32 %v1529_v61 }
 0xa32   : > { %v2257_v62 = vpop.eup %2256 }
 0xa33   : > { %v1531_v63 = vadd.f32 1.0, %v2257_v62 }
 0xa34   : > { %v2259_v0 = vpop.eup %2258 }
 0xa35   : > { %2260 = vrcp.f32 %v1531_v63  ;;  %v1532_v48 = vadd.f32 1.0, %v2259_v0 }
 0xa37   : > { %2262 = vrcp.f32 %v1532_v48 }
 0xa42   : > { %v2261_v43 = vpop.eup %2260 }
 0xa43   : > { %v1537_v2 = vmul.f32 %v2261_v43, %v1517_v53 }
 0xa44   : > { %v2263_v46 = vpop.eup %2262 }
 0xa45   : > { %v1538_v3 = vmul.f32 %v2263_v46, %v1519_v56  ;;  %v1539_v5 = vpack.c.bf16 %v1537_v2, %v1537_v2 }
 0xa47   : > { %v1540_v1 = vpack.c.bf16 %v1538_v3, %v1538_v3 }
 0xa49   : > { %1701 = vmatprep.mubr.bf16.mxu1 %v1540_v1 }
 0xa4a   : > { %1702 = vmatmul.mubr.bf16.vlgmr.msra.gmra.mxu1 %v1539_v5 }
 0xb0a   : > { %v2050_v6 = vpop.f32.mrf.mxu1 }
 0xb0c   : > { %v2051_v7 = vpop.f32.mrf.mxu1 }
 0xb0d   : > { %v2052_v8 = vadd.f32 %v2051_v7, %v2050_v6 }
 0xb0e   : > { %v2053_v10 = vpop.f32.mrf.mxu1 }
 0xb0f   : > { %v1709_v11 = vadd.f32 %v2052_v8, %v2602_v60 }
 0xb10   : > { %v2054_v12 = vpop.f32.mrf.mxu1 }
 0xb11   : > { %v1717_v13 = vadd.f32 %v2002_v9, %v1709_v11 }
 0xb13   : > { %1718 = vst [vmem:[%s2479_s5] sm:$0xff] %v1717_v13 }
 0xb14 PF: > { %s2718_s17 = sld [smem:[#allocation5_spill]] }
 0xb15   : > { %s2719_s25 = sld [smem:[#allocation3_spill]] }
 0xb16   : > { %s2720_s26 = sld [smem:[#allocation4_spill]] }
 0xb17   : > { %s2721_s27 = sld [smem:[#allocation6_spill]] }
 0xb18   : > { %s2722_s28 = sld [smem:[#allocation7_spill]] }
 0xb1a   : > { %s23_s29 = sadd.s32 1, %s2718_s17  }
 0xb1b   : > { %p20_p8 = scmp.ge.s32.totalorder %s23_s29, 6  }
 0xb1d   :  { %22 = sbr.rel (!%p20_p8) target bundleno = 7 (0x7), region = 142 }

</bundles_post_ra>
